<compile_context>
chip_gen: v5e
topology: v5e:2x2
jax: 0.10.0
libtpu: 0.0.40
codegen_flags: <defaults>
</compile_context>

<pallas_src>
import functools
import math

import jax
import jax.numpy as jnp
from jax.experimental import pallas as pl
from jax.experimental.pallas import tpu as pltpu

BOARD_SIZE = 9
SQUARES = BOARD_SIZE * BOARD_SIZE   # 81 (hard-coded slice in the torch code)
SEQ = SQUARES + 1                   # 82 (value token appended)
S_PAD = 88                          # token dim padded to a sublane multiple
VALUE_DIM = 51
HEAD_PAD = 128                      # lane-dense fused policy+value output
LN_EPS = 1e-5

BLOCK_PARAM_ORDER = [
    "wqkv", "bqkv", "wo", "bo", "w1", "b1", "w2", "b2",
    "n1g", "n1b", "n2g", "n2b", "n3g", "n3b", "n4g", "n4b",
]


def _erf(z):
    # Abramowitz & Stegun 7.1.26 rational approximation, |err| <= 1.5e-7
    # (float32-level exact).  torch nn.GELU() is the exact erf-based GELU and
    # the erf primitive may not lower in Mosaic, so keep the polynomial.
    a1, a2, a3, a4, a5 = (0.254829592, -0.284496736, 1.421413741,
                          -1.453152027, 1.061405429)
    p = 0.3275911
    az = jnp.abs(z)
    t = 1.0 / (1.0 + p * az)
    poly = ((((a5 * t + a4) * t + a3) * t + a2) * t + a1) * t
    y = 1.0 - poly * jnp.exp(-az * az)
    return jnp.where(z < 0.0, -y, y)


def _gelu(x):
    return 0.5 * x * (1.0 + _erf(x * (1.0 / math.sqrt(2.0))))


def _layernorm(x, gamma, beta):
    mu = jnp.mean(x, axis=-1, keepdims=True)
    var = jnp.mean(jnp.square(x - mu), axis=-1, keepdims=True)
    return (x - mu) * jax.lax.rsqrt(var + LN_EPS) * gamma + beta


def normformer_kernel(x_ref, wqkv_ref, bqkv_ref, wo_ref, bo_ref,
                      w1_ref, b1_ref, w2_ref, b2_ref,
                      n1g_ref, n1b_ref, n2g_ref, n2b_ref,
                      n3g_ref, n3b_ref, n4g_ref, n4b_ref,
                      hw_ref, hb_ref, out_ref, x_sc, *, nhead, tb):
    """One transformer block per grid step (blk = program_id(1))."""
    blk = pl.program_id(1)
    d = n1g_ref.shape[-1]
    hd = d // nhead
    m = tb * S_PAD
    bf16 = jnp.bfloat16

    # Residual stream persists in VMEM scratch across the block axis.
    @pl.when(blk == 0)
    def _():
        x_sc[...] = x_ref[...].reshape(m, d)

    x = x_sc[...]

    # Keys at padded token positions (>= SEQ) must not be attended to.
    kidx = jax.lax.broadcasted_iota(jnp.int32, (1, 1, S_PAD), 2)
    kmask = jnp.where(kidx < SEQ, 0.0, -1e30).astype(jnp.float32)

    # ---- self-attention sub-block: norm1 -> MHA -> norm2, residual --------
    h = _layernorm(x, n1g_ref[...], n1b_ref[...])
    qkv = (jnp.dot(h.astype(bf16), wqkv_ref[...],
                   preferred_element_type=jnp.float32) + bqkv_ref[...])
    qkv3 = qkv.reshape(tb, S_PAD, 3 * d)
    heads = []
    for hh in range(nhead):
        lo = hh * hd
        # 1/sqrt(hd) scale is folded into the Q weight/bias wrapper-side.
        qh = qkv3[:, :, lo:lo + hd].astype(bf16)
        kh = qkv3[:, :, d + lo:d + lo + hd].astype(bf16)
        vh = qkv3[:, :, 2 * d + lo:2 * d + lo + hd].astype(bf16)
        s = jnp.einsum('bqd,bkd->bqk', qh, kh,
                       preferred_element_type=jnp.float32) + kmask
        s = s - jnp.max(s, axis=-1, keepdims=True)
        p = jnp.exp(s)
        p = p * pl.reciprocal(jnp.sum(p, axis=-1, keepdims=True), approx=True)
        heads.append(jnp.einsum('bqk,bkd->bqd', p.astype(bf16), vh,
                                preferred_element_type=jnp.float32))
    o = jnp.concatenate(heads, axis=-1).reshape(m, d)
    h = (jnp.dot(o.astype(bf16), wo_ref[...],
                 preferred_element_type=jnp.float32) + bo_ref[...])
    h = _layernorm(h, n2g_ref[...], n2b_ref[...])
    x = x + h

    # ---- feed-forward sub-block.  norm3 applied TWICE, as in the reference.
    h = _layernorm(x, n3g_ref[...], n3b_ref[...])
    h = _layernorm(h, n3g_ref[...], n3b_ref[...])
    h = (jnp.dot(h.astype(bf16), w1_ref[...],
                 preferred_element_type=jnp.float32) + b1_ref[...])
    h = _gelu(h)
    h = _layernorm(h, n4g_ref[...], n4b_ref[...])
    h = (jnp.dot(h.astype(bf16), w2_ref[...],
                 preferred_element_type=jnp.float32) + b2_ref[...])
    x = x + h

    x_sc[...] = x

    # ---- fused policy+value heads on the last block: one lane-dense bf16
    # [tb, 88, 128] store.
    @pl.when(blk == pl.num_programs(1) - 1)
    def _():
        out = (jnp.dot(x.astype(bf16), hw_ref[...],
                       preferred_element_type=jnp.float32) + hb_ref[...])
        out_ref[...] = out.reshape(tb, S_PAD, HEAD_PAD).astype(out_ref.dtype)


def normformer_forward(x_nchw, params, *, block_num, nhead, policy_channels,
                       tb=32):
    b, c_in, hh_, ww_ = x_nchw.shape
    assert hh_ == BOARD_SIZE and ww_ == BOARD_SIZE
    d = params["fe_w"].shape[1]
    dff = 4 * d
    assert d % nhead == 0
    assert policy_channels + VALUE_DIM <= HEAD_PAD

    # ---- first encoding + positional encoding + value token (XLA side) ----
    # NCHW -> [B, 81, C_in]  (matches torch view + permute([2,0,1]) ordering)
    x_tok = jnp.transpose(x_nchw.reshape(b, c_in, SQUARES), (0, 2, 1))
    enc = (jnp.einsum('bsc,cd->bsd', x_tok, params["fe_w"])
           + params["fe_b"] + params["pos"])                       # [B,81,D]
    vtok = jnp.broadcast_to(params["vtok"][None, :, :], (b, 1, d))
    pad_tok = jnp.zeros((b, S_PAD - SEQ, d), jnp.float32)
    x_in = jnp.concatenate([enc, vtok, pad_tok], axis=1)           # [B,88,D]

    # ---- board tile: big tb, but keep >= 2 parallel grid steps (v7x) ------
    if b >= 2:
        tb = max(1, min(tb, -(-b // 2)))
    else:
        tb = 1
    b_pad = -(-b // tb) * tb
    if b_pad != b:
        x_in = jnp.concatenate(
            [x_in, jnp.zeros((b_pad - b, S_PAD, d), jnp.float32)], axis=0)

    # ---- fold attention scale into the Q columns of the fused QKV ---------
    scale = 1.0 / math.sqrt(d // nhead)
    wqkv = params["wqkv"].astype(jnp.float32)
    wqkv = wqkv.at[:, :, :d].multiply(scale).astype(jnp.bfloat16)
    bqkv = params["bqkv"].at[:, :, :d].multiply(scale)
    blk_params = dict(params)
    blk_params["wqkv"] = wqkv
    blk_params["bqkv"] = bqkv
    ordered = [blk_params[k] for k in BLOCK_PARAM_ORDER]

    # ---- fuse policy+value 1x1-conv heads into one lane-dense weight ------
    hw = jnp.zeros((d, HEAD_PAD), jnp.bfloat16)
    hw = hw.at[:, :policy_channels].set(params["pw"])
    hw = hw.at[:, policy_channels:policy_channels + VALUE_DIM].set(params["vw"])
    hb = jnp.zeros((1, HEAD_PAD), jnp.float32)
    hb = hb.at[:, :policy_channels].set(params["pb"])
    hb = hb.at[:, policy_channels:policy_channels + VALUE_DIM].set(params["vb"])

    # ---- BlockSpecs: stream one transformer block's weights per grid step -
    def per_block_spec(p):
        nd = p.ndim - 1
        return pl.BlockSpec((None,) + p.shape[1:],
                            lambda i, blk, _nd=nd: (blk,) + (0,) * _nd)

    in_specs = [pl.BlockSpec((tb, S_PAD, d), lambda i, blk: (i, 0, 0))]
    in_specs += [per_block_spec(p) for p in ordered]
    in_specs += [pl.BlockSpec((d, HEAD_PAD), lambda i, blk: (0, 0)),
                 pl.BlockSpec((1, HEAD_PAD), lambda i, blk: (0, 0))]

    out_shape = jax.ShapeDtypeStruct((b_pad, S_PAD, HEAD_PAD), jnp.bfloat16)
    out_specs = pl.BlockSpec((tb, S_PAD, HEAD_PAD), lambda i, blk: (i, 0, 0))

    # ---- explicit scoped-VMEM budget (double-buffered IO/weights + acts) --
    m_rows = tb * S_PAD
    per_block_bytes = sum(
        (int(p.size) // block_num) * p.dtype.itemsize for p in ordered)
    io_bytes = (tb * S_PAD * d * 4               # x tile (f32)
                + tb * S_PAD * HEAD_PAD * 2      # out tile (bf16)
                + d * HEAD_PAD * 2 + HEAD_PAD * 4)
    act_bytes = (4 * m_rows * (6 * d + 2 * dff + 4 * d)
                 + 8 * tb * S_PAD * S_PAD)
    scratch_bytes = m_rows * d * 4
    vmem_need = 2 * (per_block_bytes + io_bytes) + scratch_bytes + act_bytes
    vmem_limit = int(min(64 * 1024 * 1024, max(32 * 1024 * 1024, 2 * vmem_need)))

    kernel = functools.partial(normformer_kernel, nhead=nhead, tb=tb)
    out = pl.pallas_call(
        kernel,
        out_shape=out_shape,
        grid_spec=pltpu.PrefetchScalarGridSpec(
            num_scalar_prefetch=0,
            grid=(b_pad // tb, block_num),
            in_specs=in_specs,
            out_specs=out_specs,
            scratch_shapes=[pltpu.VMEM((m_rows, d), jnp.float32)]),
        compiler_params=pltpu.CompilerParams(
            dimension_semantics=("parallel", "arbitrary"),
            vmem_limit_bytes=vmem_limit),
    )(x_in, *ordered, hw, hb)

    policy = jnp.transpose(out[:b, :SQUARES, :policy_channels], (0, 2, 1))
    policy = policy.astype(jnp.float32).reshape(
        b, policy_channels, BOARD_SIZE, BOARD_SIZE)
    value = out[:b, SQUARES,
                policy_channels:policy_channels + VALUE_DIM].astype(jnp.float32)
    return policy, value


def init_params(key, c_in, d, block_num, nhead, policy_channels):
    dff = 4 * d
    ks = jax.random.split(key, 16)

    def nrm(k, shape, scale=0.05, dtype=jnp.float32):
        return (scale * jax.random.normal(k, shape, dtype=jnp.float32)
                ).astype(dtype)

    p = {}
    # first encoding (applied wrapper-side in XLA), f32
    p["fe_w"] = nrm(ks[0], (c_in, d))            # pre-transposed: x @ w
    p["fe_b"] = nrm(ks[1], (1, d))
    # torch inits these to zeros; small random keeps the path non-trivial
    p["pos"] = nrm(ks[2], (SQUARES, d), 0.02)
    p["vtok"] = nrm(ks[3], (1, d), 0.02)
    # fused in_proj (Q|K|V columns, pre-transposed to [D, 3D]); weights bf16
    # (MXU operands), biases f32 (added after f32 accumulation).
    p["wqkv"] = nrm(ks[4], (block_num, d, 3 * d), dtype=jnp.bfloat16)
    p["bqkv"] = nrm(ks[5], (block_num, 1, 3 * d))
    p["wo"] = nrm(ks[6], (block_num, d, d), dtype=jnp.bfloat16)
    p["bo"] = nrm(ks[7], (block_num, 1, d))
    p["w1"] = nrm(ks[8], (block_num, d, dff), dtype=jnp.bfloat16)
    p["b1"] = nrm(ks[9], (block_num, 1, dff))
    p["w2"] = nrm(ks[10], (block_num, dff, d), dtype=jnp.bfloat16)
    p["b2"] = nrm(ks[11], (block_num, 1, d))
    # LayerNorm affine params: torch default gamma=1, beta=0 (f32)
    ones_d = jnp.ones((block_num, 1, d), jnp.float32)
    zeros_d = jnp.zeros((block_num, 1, d), jnp.float32)
    p["n1g"], p["n1b"] = ones_d, zeros_d
    p["n2g"], p["n2b"] = ones_d, zeros_d
    p["n3g"], p["n3b"] = ones_d, zeros_d
    p["n4g"] = jnp.ones((block_num, 1, dff), jnp.float32)
    p["n4b"] = jnp.zeros((block_num, 1, dff), jnp.float32)
    # 1x1 conv heads as linears, pre-transposed to [D, out]; fused in wrapper
    p["pw"] = nrm(ks[12], (d, policy_channels), dtype=jnp.bfloat16)
    p["pb"] = nrm(ks[13], (1, policy_channels))
    p["vw"] = nrm(ks[14], (d, VALUE_DIM), dtype=jnp.bfloat16)
    p["vb"] = nrm(ks[15], (1, VALUE_DIM))
    return p


if __name__ == "__main__":
    # TODO(synk): channel_num_to_nhead is undefined in the reference; nhead=4.
    B, C_IN, D, NHEAD, BLOCKS, P_CH = 2, 4, 32, 4, 2, 4
    key = jax.random.PRNGKey(0)
    k_x, k_p = jax.random.split(key)
    x = jax.random.normal(k_x, (B, C_IN, BOARD_SIZE, BOARD_SIZE),
                          dtype=jnp.float32)
    params = init_params(k_p, C_IN, D, BLOCKS, NHEAD, P_CH)

    policy, value = normformer_forward(
        x, params, block_num=BLOCKS, nhead=NHEAD, policy_channels=P_CH, tb=32)
    policy, value = jax.block_until_ready((policy, value))

    assert policy.shape == (B, P_CH, BOARD_SIZE, BOARD_SIZE)
    assert value.shape == (B, VALUE_DIM)
    assert bool(jnp.all(jnp.isfinite(policy))) and bool(jnp.all(jnp.isfinite(value)))
    print("KERNEL_OK")
</pallas_src>

<mosaic_0001>
module attributes {stable_mosaic.version = 11 : i64} {
  func.func @normformer_kernel(%arg0: i32, %arg1: i32, %arg2: memref<1x88x32xf32, #tpu.memory_space<vmem>>, %arg3: memref<1x32x96xbf16, #tpu.memory_space<vmem>>, %arg4: memref<1x1x96xf32, #tpu.memory_space<vmem>>, %arg5: memref<1x32x32xbf16, #tpu.memory_space<vmem>>, %arg6: memref<1x1x32xf32, #tpu.memory_space<vmem>>, %arg7: memref<1x32x128xbf16, #tpu.memory_space<vmem>>, %arg8: memref<1x1x128xf32, #tpu.memory_space<vmem>>, %arg9: memref<1x128x32xbf16, #tpu.memory_space<vmem>>, %arg10: memref<1x1x32xf32, #tpu.memory_space<vmem>>, %arg11: memref<1x1x32xf32, #tpu.memory_space<vmem>>, %arg12: memref<1x1x32xf32, #tpu.memory_space<vmem>>, %arg13: memref<1x1x32xf32, #tpu.memory_space<vmem>>, %arg14: memref<1x1x32xf32, #tpu.memory_space<vmem>>, %arg15: memref<1x1x32xf32, #tpu.memory_space<vmem>>, %arg16: memref<1x1x32xf32, #tpu.memory_space<vmem>>, %arg17: memref<1x1x128xf32, #tpu.memory_space<vmem>>, %arg18: memref<1x1x128xf32, #tpu.memory_space<vmem>>, %arg19: memref<32x128xbf16, #tpu.memory_space<vmem>>, %arg20: memref<1x128xf32, #tpu.memory_space<vmem>>, %arg21: memref<1x88x128xbf16, #tpu.memory_space<vmem>>, %arg22: memref<88x32xf32, #tpu.memory_space<vmem>>) attributes {dimension_semantics = [#tpu.dimension_semantics<parallel>, #tpu.dimension_semantics<arbitrary>], iteration_bounds = array<i64: 2, 2>, scalar_prefetch = 0 : i64, scratch_operands = 1 : i64, tpu.core_type = #tpu.core_type<tc>, window_params = [{transform_indices = @transform_0, window_bounds = array<i64: 1, 88, 32>}, {transform_indices = @transform_1, window_bounds = array<i64: 1, 32, 96>}, {transform_indices = @transform_2, window_bounds = array<i64: 1, 1, 96>}, {transform_indices = @transform_3, window_bounds = array<i64: 1, 32, 32>}, {transform_indices = @transform_4, window_bounds = array<i64: 1, 1, 32>}, {transform_indices = @transform_5, window_bounds = array<i64: 1, 32, 128>}, {transform_indices = @transform_6, window_bounds = array<i64: 1, 1, 128>}, {transform_indices = @transform_7, window_bounds = array<i64: 1, 128, 32>}, {transform_indices = @transform_8, window_bounds = array<i64: 1, 1, 32>}, {transform_indices = @transform_9, window_bounds = array<i64: 1, 1, 32>}, {transform_indices = @transform_10, window_bounds = array<i64: 1, 1, 32>}, {transform_indices = @transform_11, window_bounds = array<i64: 1, 1, 32>}, {transform_indices = @transform_12, window_bounds = array<i64: 1, 1, 32>}, {transform_indices = @transform_13, window_bounds = array<i64: 1, 1, 32>}, {transform_indices = @transform_14, window_bounds = array<i64: 1, 1, 32>}, {transform_indices = @transform_15, window_bounds = array<i64: 1, 1, 128>}, {transform_indices = @transform_16, window_bounds = array<i64: 1, 1, 128>}, {pipeline_mode = #tpu.pipeline_mode<synchronous>, transform_indices = @transform_17, window_bounds = array<i64: 32, 128>}, {pipeline_mode = #tpu.pipeline_mode<synchronous>, transform_indices = @transform_18, window_bounds = array<i64: 1, 128>}, {transform_indices = @transform_19, window_bounds = array<i64: 1, 88, 128>}]} {
    %c0_i32 = arith.constant 0 : i32
    %0 = arith.cmpi eq, %arg1, %c0_i32 : i32
    %1 = arith.extui %0 : i1 to i32
    %c0_i32_0 = arith.constant 0 : i32
    %2 = arith.cmpi ne, %1, %c0_i32_0 : i32
    scf.if %2 {
      %c0_120 = arith.constant 0 : index
      %c0_121 = arith.constant 0 : index
      %c0_122 = arith.constant 0 : index
      %305 = vector.load %arg2[%c0_120, %c0_121, %c0_122] : memref<1x88x32xf32, #tpu.memory_space<vmem>>, vector<1x88x32xf32>
      %306 = vector.shape_cast %305 : vector<1x88x32xf32> to vector<88x32xf32>
      %c0_123 = arith.constant 0 : index
      %c0_124 = arith.constant 0 : index
      %307 = vector.load %arg22[%c0_123, %c0_124] : memref<88x32xf32, #tpu.memory_space<vmem>>, vector<88x32xf32>
      tpu.vector_store %arg22[%c0_123, %c0_124], %306 {strides = array<i32>} : memref<88x32xf32, #tpu.memory_space<vmem>>, vector<88x32xf32>,
    } else {
    }
    %c0 = arith.constant 0 : index
    %c0_1 = arith.constant 0 : index
    %3 = vector.load %arg22[%c0, %c0_1] : memref<88x32xf32, #tpu.memory_space<vmem>>, vector<88x32xf32>
    %4 = tpu.iota {dimensions = array<i32: 2>} : vector<1x1x88xi32>
    %c82_i32 = arith.constant 82 : i32
    %5 = vector.broadcast %c82_i32 : i32 to vector<1x1x88xi32>
    %6 = arith.cmpi slt, %4, %5 : vector<1x1x88xi32>
    %cst = arith.constant 0.000000e+00 : f32
    %cst_2 = arith.constant -1.000000e+30 : f32
    %7 = vector.broadcast %cst : f32 to vector<1x1x88xf32>
    %8 = vector.broadcast %cst_2 : f32 to vector<1x1x88xf32>
    %9 = arith.select %6, %7, %8 : vector<1x1x88xi1>, vector<1x1x88xf32>
    %c0_3 = arith.constant 0 : index
    %c0_4 = arith.constant 0 : index
    %c0_5 = arith.constant 0 : index
    %10 = vector.load %arg11[%c0_3, %c0_4, %c0_5] : memref<1x1x32xf32, #tpu.memory_space<vmem>>, vector<1x1x32xf32>
    %11 = vector.shape_cast %10 : vector<1x1x32xf32> to vector<1x32xf32>
    %c0_6 = arith.constant 0 : index
    %c0_7 = arith.constant 0 : index
    %c0_8 = arith.constant 0 : index
    %12 = vector.load %arg12[%c0_6, %c0_7, %c0_8] : memref<1x1x32xf32, #tpu.memory_space<vmem>>, vector<1x1x32xf32>
    %13 = vector.shape_cast %12 : vector<1x1x32xf32> to vector<1x32xf32>
    %cst_9 = arith.constant dense<0.000000e+00> : vector<88xf32>
    %14 = vector.multi_reduction <add>, %3, %cst_9 [1] : vector<88x32xf32> to vector<88xf32>
    %15 = vector.shape_cast %14 : vector<88xf32> to vector<88x1xf32>
    %cst_10 = arith.constant 3.200000e+01 : f32
    %16 = vector.broadcast %cst_10 : f32 to vector<88x1xf32>
    %17 = arith.divf %15, %16 : vector<88x1xf32>
    %18 = vector.broadcast %17 : vector<88x1xf32> to vector<88x32xf32>
    %19 = arith.subf %3, %18 : vector<88x32xf32>
    %20 = arith.mulf %19, %19 : vector<88x32xf32>
    %cst_11 = arith.constant dense<0.000000e+00> : vector<88xf32>
    %21 = vector.multi_reduction <add>, %20, %cst_11 [1] : vector<88x32xf32> to vector<88xf32>
    %22 = vector.shape_cast %21 : vector<88xf32> to vector<88x1xf32>
    %cst_12 = arith.constant 3.200000e+01 : f32
    %23 = vector.broadcast %cst_12 : f32 to vector<88x1xf32>
    %24 = arith.divf %22, %23 : vector<88x1xf32>
    %25 = vector.broadcast %17 : vector<88x1xf32> to vector<88x32xf32>
    %26 = arith.subf %3, %25 : vector<88x32xf32>
    %cst_13 = arith.constant 9.99999974E-6 : f32
    %27 = vector.broadcast %cst_13 : f32 to vector<88x1xf32>
    %28 = arith.addf %24, %27 : vector<88x1xf32>
    %29 = math.rsqrt %28 : vector<88x1xf32>
    %30 = vector.broadcast %29 : vector<88x1xf32> to vector<88x32xf32>
    %31 = arith.mulf %26, %30 : vector<88x32xf32>
    %32 = vector.broadcast %11 : vector<1x32xf32> to vector<88x32xf32>
    %33 = arith.mulf %31, %32 : vector<88x32xf32>
    %34 = vector.broadcast %13 : vector<1x32xf32> to vector<88x32xf32>
    %35 = arith.addf %33, %34 : vector<88x32xf32>
    %36 = arith.truncf %35 : vector<88x32xf32> to vector<88x32xbf16>
    %c0_14 = arith.constant 0 : index
    %c0_15 = arith.constant 0 : index
    %c0_16 = arith.constant 0 : index
    %37 = vector.load %arg3[%c0_14, %c0_15, %c0_16] : memref<1x32x96xbf16, #tpu.memory_space<vmem>>, vector<1x32x96xbf16>
    %38 = vector.shape_cast %37 : vector<1x32x96xbf16> to vector<32x96xbf16>
    %cst_17 = arith.constant dense<0.000000e+00> : vector<88x96xf32>
    %39 = tpu.matmul %36, %38, %cst_17 {dimension_numbers = #tpu.dot_dimension_numbers<[1], [0], [0], [1], [0, 0, 1, 1], [], []>} : vector<88x32xbf16>, vector<32x96xbf16>, vector<88x96xf32> -> vector<88x96xf32>
    %c0_18 = arith.constant 0 : index
    %c0_19 = arith.constant 0 : index
    %c0_20 = arith.constant 0 : index
    %40 = vector.load %arg4[%c0_18, %c0_19, %c0_20] : memref<1x1x96xf32, #tpu.memory_space<vmem>>, vector<1x1x96xf32>
    %41 = vector.shape_cast %40 : vector<1x1x96xf32> to vector<1x96xf32>
    %42 = vector.broadcast %41 : vector<1x96xf32> to vector<88x96xf32>
    %43 = arith.addf %39, %42 : vector<88x96xf32>
    %44 = vector.shape_cast %43 : vector<88x96xf32> to vector<1x88x96xf32>
    %45 = vector.extract_strided_slice %44 {offsets = [0, 0, 0], sizes = [1, 88, 8], strides = [1, 1, 1]} : vector<1x88x96xf32> to vector<1x88x8xf32>
    %46 = arith.truncf %45 : vector<1x88x8xf32> to vector<1x88x8xbf16>
    %47 = vector.extract_strided_slice %44 {offsets = [0, 0, 32], sizes = [1, 88, 8], strides = [1, 1, 1]} : vector<1x88x96xf32> to vector<1x88x8xf32>
    %48 = arith.truncf %47 : vector<1x88x8xf32> to vector<1x88x8xbf16>
    %49 = vector.extract_strided_slice %44 {offsets = [0, 0, 64], sizes = [1, 88, 8], strides = [1, 1, 1]} : vector<1x88x96xf32> to vector<1x88x8xf32>
    %50 = arith.truncf %49 : vector<1x88x8xf32> to vector<1x88x8xbf16>
    "tpu.trace_start"() <{level = 10 : i32, message = "bqd,bkd->bqk"}> : () -> ()
    %cst_21 = arith.constant dense<0.000000e+00> : vector<1x88x88xf32>
    %51 = tpu.matmul %46, %48, %cst_21 {dimension_numbers = #tpu.dot_dimension_numbers<[2], [2], [1], [1], [0, 0, 0, 1, 1, 1], [0], [0]>} : vector<1x88x8xbf16>, vector<1x88x8xbf16>, vector<1x88x88xf32> -> vector<1x88x88xf32>
    "tpu.trace_stop"() : () -> ()
    %52 = vector.broadcast %9 : vector<1x1x88xf32> to vector<1x88x88xf32>
    %53 = arith.addf %51, %52 : vector<1x88x88xf32>
    %cst_22 = arith.constant dense<0xFF800000> : vector<1x88xf32>
    %54 = vector.multi_reduction <maximumf>, %53, %cst_22 [2] : vector<1x88x88xf32> to vector<1x88xf32>
    %55 = vector.shape_cast %54 : vector<1x88xf32> to vector<1x88x1xf32>
    %56 = vector.broadcast %55 : vector<1x88x1xf32> to vector<1x88x88xf32>
    %57 = arith.subf %53, %56 : vector<1x88x88xf32>
    %58 = math.exp %57 : vector<1x88x88xf32>
    %cst_23 = arith.constant dense<0.000000e+00> : vector<1x88xf32>
    %59 = vector.multi_reduction <add>, %58, %cst_23 [2] : vector<1x88x88xf32> to vector<1x88xf32>
    %60 = vector.shape_cast %59 : vector<1x88xf32> to vector<1x88x1xf32>
    %61 = tpu.reciprocal %60 {approx = true} : vector<1x88x1xf32> -> vector<1x88x1xf32>
    %62 = vector.broadcast %61 : vector<1x88x1xf32> to vector<1x88x88xf32>
    %63 = arith.mulf %58, %62 : vector<1x88x88xf32>
    %64 = arith.truncf %63 : vector<1x88x88xf32> to vector<1x88x88xbf16>
    "tpu.trace_start"() <{level = 10 : i32, message = "bqk,bkd->bqd"}> : () -> ()
    %cst_24 = arith.constant dense<0.000000e+00> : vector<1x88x8xf32>
    %65 = tpu.matmul %64, %50, %cst_24 {dimension_numbers = #tpu.dot_dimension_numbers<[2], [1], [1], [2], [0, 0, 0, 1, 1, 2], [0], [0]>} : vector<1x88x88xbf16>, vector<1x88x8xbf16>, vector<1x88x8xf32> -> vector<1x88x8xf32>
    "tpu.trace_stop"() : () -> ()
    %66 = vector.extract_strided_slice %44 {offsets = [0, 0, 8], sizes = [1, 88, 8], strides = [1, 1, 1]} : vector<1x88x96xf32> to vector<1x88x8xf32>
    %67 = arith.truncf %66 : vector<1x88x8xf32> to vector<1x88x8xbf16>
    %68 = vector.extract_strided_slice %44 {offsets = [0, 0, 40], sizes = [1, 88, 8], strides = [1, 1, 1]} : vector<1x88x96xf32> to vector<1x88x8xf32>
    %69 = arith.truncf %68 : vector<1x88x8xf32> to vector<1x88x8xbf16>
    %70 = vector.extract_strided_slice %44 {offsets = [0, 0, 72], sizes = [1, 88, 8], strides = [1, 1, 1]} : vector<1x88x96xf32> to vector<1x88x8xf32>
    %71 = arith.truncf %70 : vector<1x88x8xf32> to vector<1x88x8xbf16>
    "tpu.trace_start"() <{level = 10 : i32, message = "bqd,bkd->bqk"}> : () -> ()
    %cst_25 = arith.constant dense<0.000000e+00> : vector<1x88x88xf32>
    %72 = tpu.matmul %67, %69, %cst_25 {dimension_numbers = #tpu.dot_dimension_numbers<[2], [2], [1], [1], [0, 0, 0, 1, 1, 1], [0], [0]>} : vector<1x88x8xbf16>, vector<1x88x8xbf16>, vector<1x88x88xf32> -> vector<1x88x88xf32>
    "tpu.trace_stop"() : () -> ()
    %73 = vector.broadcast %9 : vector<1x1x88xf32> to vector<1x88x88xf32>
    %74 = arith.addf %72, %73 : vector<1x88x88xf32>
    %cst_26 = arith.constant dense<0xFF800000> : vector<1x88xf32>
    %75 = vector.multi_reduction <maximumf>, %74, %cst_26 [2] : vector<1x88x88xf32> to vector<1x88xf32>
    %76 = vector.shape_cast %75 : vector<1x88xf32> to vector<1x88x1xf32>
    %77 = vector.broadcast %76 : vector<1x88x1xf32> to vector<1x88x88xf32>
    %78 = arith.subf %74, %77 : vector<1x88x88xf32>
    %79 = math.exp %78 : vector<1x88x88xf32>
    %cst_27 = arith.constant dense<0.000000e+00> : vector<1x88xf32>
    %80 = vector.multi_reduction <add>, %79, %cst_27 [2] : vector<1x88x88xf32> to vector<1x88xf32>
    %81 = vector.shape_cast %80 : vector<1x88xf32> to vector<1x88x1xf32>
    %82 = tpu.reciprocal %81 {approx = true} : vector<1x88x1xf32> -> vector<1x88x1xf32>
    %83 = vector.broadcast %82 : vector<1x88x1xf32> to vector<1x88x88xf32>
    %84 = arith.mulf %79, %83 : vector<1x88x88xf32>
    %85 = arith.truncf %84 : vector<1x88x88xf32> to vector<1x88x88xbf16>
    "tpu.trace_start"() <{level = 10 : i32, message = "bqk,bkd->bqd"}> : () -> ()
    %cst_28 = arith.constant dense<0.000000e+00> : vector<1x88x8xf32>
    %86 = tpu.matmul %85, %71, %cst_28 {dimension_numbers = #tpu.dot_dimension_numbers<[2], [1], [1], [2], [0, 0, 0, 1, 1, 2], [0], [0]>} : vector<1x88x88xbf16>, vector<1x88x8xbf16>, vector<1x88x8xf32> -> vector<1x88x8xf32>
    "tpu.trace_stop"() : () -> ()
    %87 = vector.extract_strided_slice %44 {offsets = [0, 0, 16], sizes = [1, 88, 8], strides = [1, 1, 1]} : vector<1x88x96xf32> to vector<1x88x8xf32>
    %88 = arith.truncf %87 : vector<1x88x8xf32> to vector<1x88x8xbf16>
    %89 = vector.extract_strided_slice %44 {offsets = [0, 0, 48], sizes = [1, 88, 8], strides = [1, 1, 1]} : vector<1x88x96xf32> to vector<1x88x8xf32>
    %90 = arith.truncf %89 : vector<1x88x8xf32> to vector<1x88x8xbf16>
    %91 = vector.extract_strided_slice %44 {offsets = [0, 0, 80], sizes = [1, 88, 8], strides = [1, 1, 1]} : vector<1x88x96xf32> to vector<1x88x8xf32>
    %92 = arith.truncf %91 : vector<1x88x8xf32> to vector<1x88x8xbf16>
    "tpu.trace_start"() <{level = 10 : i32, message = "bqd,bkd->bqk"}> : () -> ()
    %cst_29 = arith.constant dense<0.000000e+00> : vector<1x88x88xf32>
    %93 = tpu.matmul %88, %90, %cst_29 {dimension_numbers = #tpu.dot_dimension_numbers<[2], [2], [1], [1], [0, 0, 0, 1, 1, 1], [0], [0]>} : vector<1x88x8xbf16>, vector<1x88x8xbf16>, vector<1x88x88xf32> -> vector<1x88x88xf32>
    "tpu.trace_stop"() : () -> ()
    %94 = vector.broadcast %9 : vector<1x1x88xf32> to vector<1x88x88xf32>
    %95 = arith.addf %93, %94 : vector<1x88x88xf32>
    %cst_30 = arith.constant dense<0xFF800000> : vector<1x88xf32>
    %96 = vector.multi_reduction <maximumf>, %95, %cst_30 [2] : vector<1x88x88xf32> to vector<1x88xf32>
    %97 = vector.shape_cast %96 : vector<1x88xf32> to vector<1x88x1xf32>
    %98 = vector.broadcast %97 : vector<1x88x1xf32> to vector<1x88x88xf32>
    %99 = arith.subf %95, %98 : vector<1x88x88xf32>
    %100 = math.exp %99 : vector<1x88x88xf32>
    %cst_31 = arith.constant dense<0.000000e+00> : vector<1x88xf32>
    %101 = vector.multi_reduction <add>, %100, %cst_31 [2] : vector<1x88x88xf32> to vector<1x88xf32>
    %102 = vector.shape_cast %101 : vector<1x88xf32> to vector<1x88x1xf32>
    %103 = tpu.reciprocal %102 {approx = true} : vector<1x88x1xf32> -> vector<1x88x1xf32>
    %104 = vector.broadcast %103 : vector<1x88x1xf32> to vector<1x88x88xf32>
    %105 = arith.mulf %100, %104 : vector<1x88x88xf32>
    %106 = arith.truncf %105 : vector<1x88x88xf32> to vector<1x88x88xbf16>
    "tpu.trace_start"() <{level = 10 : i32, message = "bqk,bkd->bqd"}> : () -> ()
    %cst_32 = arith.constant dense<0.000000e+00> : vector<1x88x8xf32>
    %107 = tpu.matmul %106, %92, %cst_32 {dimension_numbers = #tpu.dot_dimension_numbers<[2], [1], [1], [2], [0, 0, 0, 1, 1, 2], [0], [0]>} : vector<1x88x88xbf16>, vector<1x88x8xbf16>, vector<1x88x8xf32> -> vector<1x88x8xf32>
    "tpu.trace_stop"() : () -> ()
    %108 = vector.extract_strided_slice %44 {offsets = [0, 0, 24], sizes = [1, 88, 8], strides = [1, 1, 1]} : vector<1x88x96xf32> to vector<1x88x8xf32>
    %109 = arith.truncf %108 : vector<1x88x8xf32> to vector<1x88x8xbf16>
    %110 = vector.extract_strided_slice %44 {offsets = [0, 0, 56], sizes = [1, 88, 8], strides = [1, 1, 1]} : vector<1x88x96xf32> to vector<1x88x8xf32>
    %111 = arith.truncf %110 : vector<1x88x8xf32> to vector<1x88x8xbf16>
    %112 = vector.extract_strided_slice %44 {offsets = [0, 0, 88], sizes = [1, 88, 8], strides = [1, 1, 1]} : vector<1x88x96xf32> to vector<1x88x8xf32>
    %113 = arith.truncf %112 : vector<1x88x8xf32> to vector<1x88x8xbf16>
    "tpu.trace_start"() <{level = 10 : i32, message = "bqd,bkd->bqk"}> : () -> ()
    %cst_33 = arith.constant dense<0.000000e+00> : vector<1x88x88xf32>
    %114 = tpu.matmul %109, %111, %cst_33 {dimension_numbers = #tpu.dot_dimension_numbers<[2], [2], [1], [1], [0, 0, 0, 1, 1, 1], [0], [0]>} : vector<1x88x8xbf16>, vector<1x88x8xbf16>, vector<1x88x88xf32> -> vector<1x88x88xf32>
    "tpu.trace_stop"() : () -> ()
    %115 = vector.broadcast %9 : vector<1x1x88xf32> to vector<1x88x88xf32>
    %116 = arith.addf %114, %115 : vector<1x88x88xf32>
    %cst_34 = arith.constant dense<0xFF800000> : vector<1x88xf32>
    %117 = vector.multi_reduction <maximumf>, %116, %cst_34 [2] : vector<1x88x88xf32> to vector<1x88xf32>
    %118 = vector.shape_cast %117 : vector<1x88xf32> to vector<1x88x1xf32>
    %119 = vector.broadcast %118 : vector<1x88x1xf32> to vector<1x88x88xf32>
    %120 = arith.subf %116, %119 : vector<1x88x88xf32>
    %121 = math.exp %120 : vector<1x88x88xf32>
    %cst_35 = arith.constant dense<0.000000e+00> : vector<1x88xf32>
    %122 = vector.multi_reduction <add>, %121, %cst_35 [2] : vector<1x88x88xf32> to vector<1x88xf32>
    %123 = vector.shape_cast %122 : vector<1x88xf32> to vector<1x88x1xf32>
    %124 = tpu.reciprocal %123 {approx = true} : vector<1x88x1xf32> -> vector<1x88x1xf32>
    %125 = vector.broadcast %124 : vector<1x88x1xf32> to vector<1x88x88xf32>
    %126 = arith.mulf %121, %125 : vector<1x88x88xf32>
    %127 = arith.truncf %126 : vector<1x88x88xf32> to vector<1x88x88xbf16>
    "tpu.trace_start"() <{level = 10 : i32, message = "bqk,bkd->bqd"}> : () -> ()
    %cst_36 = arith.constant dense<0.000000e+00> : vector<1x88x8xf32>
    %128 = tpu.matmul %127, %113, %cst_36 {dimension_numbers = #tpu.dot_dimension_numbers<[2], [1], [1], [2], [0, 0, 0, 1, 1, 2], [0], [0]>} : vector<1x88x88xbf16>, vector<1x88x8xbf16>, vector<1x88x8xf32> -> vector<1x88x8xf32>
    "tpu.trace_stop"() : () -> ()
    %129 = tpu.concatenate %65, %86, %107, %128 in 2 : vector<1x88x8xf32>, vector<1x88x8xf32>, vector<1x88x8xf32>, vector<1x88x8xf32> -> vector<1x88x32xf32>
    %130 = vector.shape_cast %129 : vector<1x88x32xf32> to vector<88x32xf32>
    %131 = arith.truncf %130 : vector<88x32xf32> to vector<88x32xbf16>
    %c0_37 = arith.constant 0 : index
    %c0_38 = arith.constant 0 : index
    %c0_39 = arith.constant 0 : index
    %132 = vector.load %arg5[%c0_37, %c0_38, %c0_39] : memref<1x32x32xbf16, #tpu.memory_space<vmem>>, vector<1x32x32xbf16>
    %133 = vector.shape_cast %132 : vector<1x32x32xbf16> to vector<32x32xbf16>
    %cst_40 = arith.constant dense<0.000000e+00> : vector<88x32xf32>
    %134 = tpu.matmul %131, %133, %cst_40 {dimension_numbers = #tpu.dot_dimension_numbers<[1], [0], [0], [1], [0, 0, 1, 1], [], []>} : vector<88x32xbf16>, vector<32x32xbf16>, vector<88x32xf32> -> vector<88x32xf32>
    %c0_41 = arith.constant 0 : index
    %c0_42 = arith.constant 0 : index
    %c0_43 = arith.constant 0 : index
    %135 = vector.load %arg6[%c0_41, %c0_42, %c0_43] : memref<1x1x32xf32, #tpu.memory_space<vmem>>, vector<1x1x32xf32>
    %136 = vector.shape_cast %135 : vector<1x1x32xf32> to vector<1x32xf32>
    %137 = vector.broadcast %136 : vector<1x32xf32> to vector<88x32xf32>
    %138 = arith.addf %134, %137 : vector<88x32xf32>
    %c0_44 = arith.constant 0 : index
    %c0_45 = arith.constant 0 : index
    %c0_46 = arith.constant 0 : index
    %139 = vector.load %arg13[%c0_44, %c0_45, %c0_46] : memref<1x1x32xf32, #tpu.memory_space<vmem>>, vector<1x1x32xf32>
    %140 = vector.shape_cast %139 : vector<1x1x32xf32> to vector<1x32xf32>
    %c0_47 = arith.constant 0 : index
    %c0_48 = arith.constant 0 : index
    %c0_49 = arith.constant 0 : index
    %141 = vector.load %arg14[%c0_47, %c0_48, %c0_49] : memref<1x1x32xf32, #tpu.memory_space<vmem>>, vector<1x1x32xf32>
    %142 = vector.shape_cast %141 : vector<1x1x32xf32> to vector<1x32xf32>
    %cst_50 = arith.constant dense<0.000000e+00> : vector<88xf32>
    %143 = vector.multi_reduction <add>, %138, %cst_50 [1] : vector<88x32xf32> to vector<88xf32>
    %144 = vector.shape_cast %143 : vector<88xf32> to vector<88x1xf32>
    %cst_51 = arith.constant 3.200000e+01 : f32
    %145 = vector.broadcast %cst_51 : f32 to vector<88x1xf32>
    %146 = arith.divf %144, %145 : vector<88x1xf32>
    %147 = vector.broadcast %146 : vector<88x1xf32> to vector<88x32xf32>
    %148 = arith.subf %138, %147 : vector<88x32xf32>
    %149 = arith.mulf %148, %148 : vector<88x32xf32>
    %cst_52 = arith.constant dense<0.000000e+00> : vector<88xf32>
    %150 = vector.multi_reduction <add>, %149, %cst_52 [1] : vector<88x32xf32> to vector<88xf32>
    %151 = vector.shape_cast %150 : vector<88xf32> to vector<88x1xf32>
    %cst_53 = arith.constant 3.200000e+01 : f32
    %152 = vector.broadcast %cst_53 : f32 to vector<88x1xf32>
    %153 = arith.divf %151, %152 : vector<88x1xf32>
    %154 = vector.broadcast %146 : vector<88x1xf32> to vector<88x32xf32>
    %155 = arith.subf %138, %154 : vector<88x32xf32>
    %cst_54 = arith.constant 9.99999974E-6 : f32
    %156 = vector.broadcast %cst_54 : f32 to vector<88x1xf32>
    %157 = arith.addf %153, %156 : vector<88x1xf32>
    %158 = math.rsqrt %157 : vector<88x1xf32>
    %159 = vector.broadcast %158 : vector<88x1xf32> to vector<88x32xf32>
    %160 = arith.mulf %155, %159 : vector<88x32xf32>
    %161 = vector.broadcast %140 : vector<1x32xf32> to vector<88x32xf32>
    %162 = arith.mulf %160, %161 : vector<88x32xf32>
    %163 = vector.broadcast %142 : vector<1x32xf32> to vector<88x32xf32>
    %164 = arith.addf %162, %163 : vector<88x32xf32>
    %165 = arith.addf %3, %164 : vector<88x32xf32>
    %c0_55 = arith.constant 0 : index
    %c0_56 = arith.constant 0 : index
    %c0_57 = arith.constant 0 : index
    %166 = vector.load %arg15[%c0_55, %c0_56, %c0_57] : memref<1x1x32xf32, #tpu.memory_space<vmem>>, vector<1x1x32xf32>
    %167 = vector.shape_cast %166 : vector<1x1x32xf32> to vector<1x32xf32>
    %c0_58 = arith.constant 0 : index
    %c0_59 = arith.constant 0 : index
    %c0_60 = arith.constant 0 : index
    %168 = vector.load %arg16[%c0_58, %c0_59, %c0_60] : memref<1x1x32xf32, #tpu.memory_space<vmem>>, vector<1x1x32xf32>
    %169 = vector.shape_cast %168 : vector<1x1x32xf32> to vector<1x32xf32>
    %cst_61 = arith.constant dense<0.000000e+00> : vector<88xf32>
    %170 = vector.multi_reduction <add>, %165, %cst_61 [1] : vector<88x32xf32> to vector<88xf32>
    %171 = vector.shape_cast %170 : vector<88xf32> to vector<88x1xf32>
    %cst_62 = arith.constant 3.200000e+01 : f32
    %172 = vector.broadcast %cst_62 : f32 to vector<88x1xf32>
    %173 = arith.divf %171, %172 : vector<88x1xf32>
    %174 = vector.broadcast %173 : vector<88x1xf32> to vector<88x32xf32>
    %175 = arith.subf %165, %174 : vector<88x32xf32>
    %176 = arith.mulf %175, %175 : vector<88x32xf32>
    %cst_63 = arith.constant dense<0.000000e+00> : vector<88xf32>
    %177 = vector.multi_reduction <add>, %176, %cst_63 [1] : vector<88x32xf32> to vector<88xf32>
    %178 = vector.shape_cast %177 : vector<88xf32> to vector<88x1xf32>
    %cst_64 = arith.constant 3.200000e+01 : f32
    %179 = vector.broadcast %cst_64 : f32 to vector<88x1xf32>
    %180 = arith.divf %178, %179 : vector<88x1xf32>
    %181 = vector.broadcast %173 : vector<88x1xf32> to vector<88x32xf32>
    %182 = arith.subf %165, %181 : vector<88x32xf32>
    %cst_65 = arith.constant 9.99999974E-6 : f32
    %183 = vector.broadcast %cst_65 : f32 to vector<88x1xf32>
    %184 = arith.addf %180, %183 : vector<88x1xf32>
    %185 = math.rsqrt %184 : vector<88x1xf32>
    %186 = vector.broadcast %185 : vector<88x1xf32> to vector<88x32xf32>
    %187 = arith.mulf %182, %186 : vector<88x32xf32>
    %188 = vector.broadcast %167 : vector<1x32xf32> to vector<88x32xf32>
    %189 = arith.mulf %187, %188 : vector<88x32xf32>
    %190 = vector.broadcast %169 : vector<1x32xf32> to vector<88x32xf32>
    %191 = arith.addf %189, %190 : vector<88x32xf32>
    %c0_66 = arith.constant 0 : index
    %c0_67 = arith.constant 0 : index
    %c0_68 = arith.constant 0 : index
    %192 = vector.load %arg15[%c0_66, %c0_67, %c0_68] : memref<1x1x32xf32, #tpu.memory_space<vmem>>, vector<1x1x32xf32>
    %193 = vector.shape_cast %192 : vector<1x1x32xf32> to vector<1x32xf32>
    %c0_69 = arith.constant 0 : index
    %c0_70 = arith.constant 0 : index
    %c0_71 = arith.constant 0 : index
    %194 = vector.load %arg16[%c0_69, %c0_70, %c0_71] : memref<1x1x32xf32, #tpu.memory_space<vmem>>, vector<1x1x32xf32>
    %195 = vector.shape_cast %194 : vector<1x1x32xf32> to vector<1x32xf32>
    %cst_72 = arith.constant dense<0.000000e+00> : vector<88xf32>
    %196 = vector.multi_reduction <add>, %191, %cst_72 [1] : vector<88x32xf32> to vector<88xf32>
    %197 = vector.shape_cast %196 : vector<88xf32> to vector<88x1xf32>
    %cst_73 = arith.constant 3.200000e+01 : f32
    %198 = vector.broadcast %cst_73 : f32 to vector<88x1xf32>
    %199 = arith.divf %197, %198 : vector<88x1xf32>
    %200 = vector.broadcast %199 : vector<88x1xf32> to vector<88x32xf32>
    %201 = arith.subf %191, %200 : vector<88x32xf32>
    %202 = arith.mulf %201, %201 : vector<88x32xf32>
    %cst_74 = arith.constant dense<0.000000e+00> : vector<88xf32>
    %203 = vector.multi_reduction <add>, %202, %cst_74 [1] : vector<88x32xf32> to vector<88xf32>
    %204 = vector.shape_cast %203 : vector<88xf32> to vector<88x1xf32>
    %cst_75 = arith.constant 3.200000e+01 : f32
    %205 = vector.broadcast %cst_75 : f32 to vector<88x1xf32>
    %206 = arith.divf %204, %205 : vector<88x1xf32>
    %207 = vector.broadcast %199 : vector<88x1xf32> to vector<88x32xf32>
    %208 = arith.subf %191, %207 : vector<88x32xf32>
    %cst_76 = arith.constant 9.99999974E-6 : f32
    %209 = vector.broadcast %cst_76 : f32 to vector<88x1xf32>
    %210 = arith.addf %206, %209 : vector<88x1xf32>
    %211 = math.rsqrt %210 : vector<88x1xf32>
    %212 = vector.broadcast %211 : vector<88x1xf32> to vector<88x32xf32>
    %213 = arith.mulf %208, %212 : vector<88x32xf32>
    %214 = vector.broadcast %193 : vector<1x32xf32> to vector<88x32xf32>
    %215 = arith.mulf %213, %214 : vector<88x32xf32>
    %216 = vector.broadcast %195 : vector<1x32xf32> to vector<88x32xf32>
    %217 = arith.addf %215, %216 : vector<88x32xf32>
    %218 = arith.truncf %217 : vector<88x32xf32> to vector<88x32xbf16>
    %c0_77 = arith.constant 0 : index
    %c0_78 = arith.constant 0 : index
    %c0_79 = arith.constant 0 : index
    %219 = vector.load %arg7[%c0_77, %c0_78, %c0_79] : memref<1x32x128xbf16, #tpu.memory_space<vmem>>, vector<1x32x128xbf16>
    %220 = vector.shape_cast %219 : vector<1x32x128xbf16> to vector<32x128xbf16>
    %cst_80 = arith.constant dense<0.000000e+00> : vector<88x128xf32>
    %221 = tpu.matmul %218, %220, %cst_80 {dimension_numbers = #tpu.dot_dimension_numbers<[1], [0], [0], [1], [0, 0, 1, 1], [], []>} : vector<88x32xbf16>, vector<32x128xbf16>, vector<88x128xf32> -> vector<88x128xf32>
    %c0_81 = arith.constant 0 : index
    %c0_82 = arith.constant 0 : index
    %c0_83 = arith.constant 0 : index
    %222 = vector.load %arg8[%c0_81, %c0_82, %c0_83] : memref<1x1x128xf32, #tpu.memory_space<vmem>>, vector<1x1x128xf32>
    %223 = vector.shape_cast %222 : vector<1x1x128xf32> to vector<1x128xf32>
    %224 = vector.broadcast %223 : vector<1x128xf32> to vector<88x128xf32>
    %225 = arith.addf %221, %224 : vector<88x128xf32>
    %cst_84 = arith.constant 5.000000e-01 : f32
    %226 = vector.broadcast %cst_84 : f32 to vector<88x128xf32>
    %227 = arith.mulf %226, %225 : vector<88x128xf32>
    %cst_85 = arith.constant 0.707106769 : f32
    %228 = vector.broadcast %cst_85 : f32 to vector<88x128xf32>
    %229 = arith.mulf %225, %228 : vector<88x128xf32>
    %230 = math.absf %229 : vector<88x128xf32>
    %cst_86 = arith.constant 0.327591091 : f32
    %231 = vector.broadcast %cst_86 : f32 to vector<88x128xf32>
    %232 = arith.mulf %231, %230 : vector<88x128xf32>
    %cst_87 = arith.constant 1.000000e+00 : f32
    %233 = vector.broadcast %cst_87 : f32 to vector<88x128xf32>
    %234 = arith.addf %233, %232 : vector<88x128xf32>
    %cst_88 = arith.constant 1.000000e+00 : f32
    %235 = vector.broadcast %cst_88 : f32 to vector<88x128xf32>
    %236 = arith.divf %235, %234 : vector<88x128xf32>
    %cst_89 = arith.constant 1.06140542 : f32
    %237 = vector.broadcast %cst_89 : f32 to vector<88x128xf32>
    %238 = arith.mulf %237, %236 : vector<88x128xf32>
    %cst_90 = arith.constant -1.45315206 : f32
    %239 = vector.broadcast %cst_90 : f32 to vector<88x128xf32>
    %240 = arith.addf %238, %239 : vector<88x128xf32>
    %241 = arith.mulf %240, %236 : vector<88x128xf32>
    %cst_91 = arith.constant 1.42141378 : f32
    %242 = vector.broadcast %cst_91 : f32 to vector<88x128xf32>
    %243 = arith.addf %241, %242 : vector<88x128xf32>
    %244 = arith.mulf %243, %236 : vector<88x128xf32>
    %cst_92 = arith.constant -0.284496725 : f32
    %245 = vector.broadcast %cst_92 : f32 to vector<88x128xf32>
    %246 = arith.addf %244, %245 : vector<88x128xf32>
    %247 = arith.mulf %246, %236 : vector<88x128xf32>
    %cst_93 = arith.constant 0.254829586 : f32
    %248 = vector.broadcast %cst_93 : f32 to vector<88x128xf32>
    %249 = arith.addf %247, %248 : vector<88x128xf32>
    %250 = arith.mulf %249, %236 : vector<88x128xf32>
    %cst_94 = arith.constant 0.000000e+00 : f32
    %251 = vector.broadcast %cst_94 : f32 to vector<88x128xf32>
    %252 = arith.subf %251, %230 : vector<88x128xf32>
    %253 = arith.mulf %252, %230 : vector<88x128xf32>
    %254 = math.exp %253 : vector<88x128xf32>
    %255 = arith.mulf %250, %254 : vector<88x128xf32>
    %cst_95 = arith.constant 1.000000e+00 : f32
    %256 = vector.broadcast %cst_95 : f32 to vector<88x128xf32>
    %257 = arith.subf %256, %255 : vector<88x128xf32>
    %cst_96 = arith.constant 0.000000e+00 : f32
    %258 = vector.broadcast %cst_96 : f32 to vector<88x128xf32>
    %259 = arith.cmpf olt, %229, %258 : vector<88x128xf32>
    %cst_97 = arith.constant 0.000000e+00 : f32
    %260 = vector.broadcast %cst_97 : f32 to vector<88x128xf32>
    %261 = arith.subf %260, %257 : vector<88x128xf32>
    %262 = arith.select %259, %261, %257 : vector<88x128xi1>, vector<88x128xf32>
    %cst_98 = arith.constant 1.000000e+00 : f32
    %263 = vector.broadcast %cst_98 : f32 to vector<88x128xf32>
    %264 = arith.addf %263, %262 : vector<88x128xf32>
    %265 = arith.mulf %227, %264 : vector<88x128xf32>
    %c0_99 = arith.constant 0 : index
    %c0_100 = arith.constant 0 : index
    %c0_101 = arith.constant 0 : index
    %266 = vector.load %arg17[%c0_99, %c0_100, %c0_101] : memref<1x1x128xf32, #tpu.memory_space<vmem>>, vector<1x1x128xf32>
    %267 = vector.shape_cast %266 : vector<1x1x128xf32> to vector<1x128xf32>
    %c0_102 = arith.constant 0 : index
    %c0_103 = arith.constant 0 : index
    %c0_104 = arith.constant 0 : index
    %268 = vector.load %arg18[%c0_102, %c0_103, %c0_104] : memref<1x1x128xf32, #tpu.memory_space<vmem>>, vector<1x1x128xf32>
    %269 = vector.shape_cast %268 : vector<1x1x128xf32> to vector<1x128xf32>
    %cst_105 = arith.constant dense<0.000000e+00> : vector<88xf32>
    %270 = vector.multi_reduction <add>, %265, %cst_105 [1] : vector<88x128xf32> to vector<88xf32>
    %271 = vector.shape_cast %270 : vector<88xf32> to vector<88x1xf32>
    %cst_106 = arith.constant 1.280000e+02 : f32
    %272 = vector.broadcast %cst_106 : f32 to vector<88x1xf32>
    %273 = arith.divf %271, %272 : vector<88x1xf32>
    %274 = vector.broadcast %273 : vector<88x1xf32> to vector<88x128xf32>
    %275 = arith.subf %265, %274 : vector<88x128xf32>
    %276 = arith.mulf %275, %275 : vector<88x128xf32>
    %cst_107 = arith.constant dense<0.000000e+00> : vector<88xf32>
    %277 = vector.multi_reduction <add>, %276, %cst_107 [1] : vector<88x128xf32> to vector<88xf32>
    %278 = vector.shape_cast %277 : vector<88xf32> to vector<88x1xf32>
    %cst_108 = arith.constant 1.280000e+02 : f32
    %279 = vector.broadcast %cst_108 : f32 to vector<88x1xf32>
    %280 = arith.divf %278, %279 : vector<88x1xf32>
    %281 = vector.broadcast %273 : vector<88x1xf32> to vector<88x128xf32>
    %282 = arith.subf %265, %281 : vector<88x128xf32>
    %cst_109 = arith.constant 9.99999974E-6 : f32
    %283 = vector.broadcast %cst_109 : f32 to vector<88x1xf32>
    %284 = arith.addf %280, %283 : vector<88x1xf32>
    %285 = math.rsqrt %284 : vector<88x1xf32>
    %286 = vector.broadcast %285 : vector<88x1xf32> to vector<88x128xf32>
    %287 = arith.mulf %282, %286 : vector<88x128xf32>
    %288 = vector.broadcast %267 : vector<1x128xf32> to vector<88x128xf32>
    %289 = arith.mulf %287, %288 : vector<88x128xf32>
    %290 = vector.broadcast %269 : vector<1x128xf32> to vector<88x128xf32>
    %291 = arith.addf %289, %290 : vector<88x128xf32>
    %292 = arith.truncf %291 : vector<88x128xf32> to vector<88x128xbf16>
    %c0_110 = arith.constant 0 : index
    %c0_111 = arith.constant 0 : index
    %c0_112 = arith.constant 0 : index
    %293 = vector.load %arg9[%c0_110, %c0_111, %c0_112] : memref<1x128x32xbf16, #tpu.memory_space<vmem>>, vector<1x128x32xbf16>
    %294 = vector.shape_cast %293 : vector<1x128x32xbf16> to vector<128x32xbf16>
    %cst_113 = arith.constant dense<0.000000e+00> : vector<88x32xf32>
    %295 = tpu.matmul %292, %294, %cst_113 {dimension_numbers = #tpu.dot_dimension_numbers<[1], [0], [0], [1], [0, 0, 1, 1], [], []>} : vector<88x128xbf16>, vector<128x32xbf16>, vector<88x32xf32> -> vector<88x32xf32>
    %c0_114 = arith.constant 0 : index
    %c0_115 = arith.constant 0 : index
    %c0_116 = arith.constant 0 : index
    %296 = vector.load %arg10[%c0_114, %c0_115, %c0_116] : memref<1x1x32xf32, #tpu.memory_space<vmem>>, vector<1x1x32xf32>
    %297 = vector.shape_cast %296 : vector<1x1x32xf32> to vector<1x32xf32>
    %298 = vector.broadcast %297 : vector<1x32xf32> to vector<88x32xf32>
    %299 = arith.addf %295, %298 : vector<88x32xf32>
    %300 = arith.addf %165, %299 : vector<88x32xf32>
    %c0_117 = arith.constant 0 : index
    %c0_118 = arith.constant 0 : index
    %301 = vector.load %arg22[%c0_117, %c0_118] : memref<88x32xf32, #tpu.memory_space<vmem>>, vector<88x32xf32>
    tpu.vector_store %arg22[%c0_117, %c0_118], %300 {strides = array<i32>} : memref<88x32xf32, #tpu.memory_space<vmem>>, vector<88x32xf32>,
    %c1_i32 = arith.constant 1 : i32
    %302 = arith.cmpi eq, %arg1, %c1_i32 : i32
    %303 = arith.extui %302 : i1 to i32
    %c0_i32_119 = arith.constant 0 : i32
    %304 = arith.cmpi ne, %303, %c0_i32_119 : i32
    scf.if %304 {
      %305 = arith.truncf %300 : vector<88x32xf32> to vector<88x32xbf16>
      %c0_120 = arith.constant 0 : index
      %c0_121 = arith.constant 0 : index
      %306 = vector.load %arg19[%c0_120, %c0_121] : memref<32x128xbf16, #tpu.memory_space<vmem>>, vector<32x128xbf16>
      %cst_122 = arith.constant dense<0.000000e+00> : vector<88x128xf32>
      %307 = tpu.matmul %305, %306, %cst_122 {dimension_numbers = #tpu.dot_dimension_numbers<[1], [0], [0], [1], [0, 0, 1, 1], [], []>} : vector<88x32xbf16>, vector<32x128xbf16>, vector<88x128xf32> -> vector<88x128xf32>
      %c0_123 = arith.constant 0 : index
      %c0_124 = arith.constant 0 : index
      %308 = vector.load %arg20[%c0_123, %c0_124] : memref<1x128xf32, #tpu.memory_space<vmem>>, vector<1x128xf32>
      %309 = vector.broadcast %308 : vector<1x128xf32> to vector<88x128xf32>
      %310 = arith.addf %307, %309 : vector<88x128xf32>
      %311 = vector.shape_cast %310 : vector<88x128xf32> to vector<1x88x128xf32>
      %312 = arith.truncf %311 : vector<1x88x128xf32> to vector<1x88x128xbf16>
      %c0_125 = arith.constant 0 : index
      %c0_126 = arith.constant 0 : index
      %c0_127 = arith.constant 0 : index
      %313 = vector.load %arg21[%c0_125, %c0_126, %c0_127] : memref<1x88x128xbf16, #tpu.memory_space<vmem>>, vector<1x88x128xbf16>
      tpu.vector_store %arg21[%c0_125, %c0_126, %c0_127], %312 {strides = array<i32>} : memref<1x88x128xbf16, #tpu.memory_space<vmem>>, vector<1x88x128xbf16>,
    } else {
    }
    return
  }
  func.func @transform_0(%arg0: i32, %arg1: i32) -> (i32, i32, i32) {
    %c0_i32 = arith.constant 0 : i32
    %c0_i32_0 = arith.constant 0 : i32
    %c0_i32_1 = arith.constant 0 : i32
    return %arg0, %c0_i32, %c0_i32_0 : i32, i32, i32
  }
  func.func @transform_1(%arg0: i32, %arg1: i32) -> (i32, i32, i32) {
    %c0_i32 = arith.constant 0 : i32
    %c0_i32_0 = arith.constant 0 : i32
    %c0_i32_1 = arith.constant 0 : i32
    return %arg1, %c0_i32, %c0_i32_0 : i32, i32, i32
  }
  func.func @transform_2(%arg0: i32, %arg1: i32) -> (i32, i32, i32) {
    %c0_i32 = arith.constant 0 : i32
    %c0_i32_0 = arith.constant 0 : i32
    %c0_i32_1 = arith.constant 0 : i32
    return %arg1, %c0_i32, %c0_i32_0 : i32, i32, i32
  }
  func.func @transform_3(%arg0: i32, %arg1: i32) -> (i32, i32, i32) {
    %c0_i32 = arith.constant 0 : i32
    %c0_i32_0 = arith.constant 0 : i32
    %c0_i32_1 = arith.constant 0 : i32
    return %arg1, %c0_i32, %c0_i32_0 : i32, i32, i32
  }
  func.func @transform_4(%arg0: i32, %arg1: i32) -> (i32, i32, i32) {
    %c0_i32 = arith.constant 0 : i32
    %c0_i32_0 = arith.constant 0 : i32
    %c0_i32_1 = arith.constant 0 : i32
    return %arg1, %c0_i32, %c0_i32_0 : i32, i32, i32
  }
  func.func @transform_5(%arg0: i32, %arg1: i32) -> (i32, i32, i32) {
    %c0_i32 = arith.constant 0 : i32
    %c0_i32_0 = arith.constant 0 : i32
    %c0_i32_1 = arith.constant 0 : i32
    return %arg1, %c0_i32, %c0_i32_0 : i32, i32, i32
  }
  func.func @transform_6(%arg0: i32, %arg1: i32) -> (i32, i32, i32) {
    %c0_i32 = arith.constant 0 : i32
    %c0_i32_0 = arith.constant 0 : i32
    %c0_i32_1 = arith.constant 0 : i32
    return %arg1, %c0_i32, %c0_i32_0 : i32, i32, i32
  }
  func.func @transform_7(%arg0: i32, %arg1: i32) -> (i32, i32, i32) {
    %c0_i32 = arith.constant 0 : i32
    %c0_i32_0 = arith.constant 0 : i32
    %c0_i32_1 = arith.constant 0 : i32
    return %arg1, %c0_i32, %c0_i32_0 : i32, i32, i32
  }
  func.func @transform_8(%arg0: i32, %arg1: i32) -> (i32, i32, i32) {
    %c0_i32 = arith.constant 0 : i32
    %c0_i32_0 = arith.constant 0 : i32
    %c0_i32_1 = arith.constant 0 : i32
    return %arg1, %c0_i32, %c0_i32_0 : i32, i32, i32
  }
  func.func @transform_9(%arg0: i32, %arg1: i32) -> (i32, i32, i32) {
    %c0_i32 = arith.constant 0 : i32
    %c0_i32_0 = arith.constant 0 : i32
    %c0_i32_1 = arith.constant 0 : i32
    return %arg1, %c0_i32, %c0_i32_0 : i32, i32, i32
  }
  func.func @transform_10(%arg0: i32, %arg1: i32) -> (i32, i32, i32) {
    %c0_i32 = arith.constant 0 : i32
    %c0_i32_0 = arith.constant 0 : i32
    %c0_i32_1 = arith.constant 0 : i32
    return %arg1, %c0_i32, %c0_i32_0 : i32, i32, i32
  }
  func.func @transform_11(%arg0: i32, %arg1: i32) -> (i32, i32, i32) {
    %c0_i32 = arith.constant 0 : i32
    %c0_i32_0 = arith.constant 0 : i32
    %c0_i32_1 = arith.constant 0 : i32
    return %arg1, %c0_i32, %c0_i32_0 : i32, i32, i32
  }
  func.func @transform_12(%arg0: i32, %arg1: i32) -> (i32, i32, i32) {
    %c0_i32 = arith.constant 0 : i32
    %c0_i32_0 = arith.constant 0 : i32
    %c0_i32_1 = arith.constant 0 : i32
    return %arg1, %c0_i32, %c0_i32_0 : i32, i32, i32
  }
  func.func @transform_13(%arg0: i32, %arg1: i32) -> (i32, i32, i32) {
    %c0_i32 = arith.constant 0 : i32
    %c0_i32_0 = arith.constant 0 : i32
    %c0_i32_1 = arith.constant 0 : i32
    return %arg1, %c0_i32, %c0_i32_0 : i32, i32, i32
  }
  func.func @transform_14(%arg0: i32, %arg1: i32) -> (i32, i32, i32) {
    %c0_i32 = arith.constant 0 : i32
    %c0_i32_0 = arith.constant 0 : i32
    %c0_i32_1 = arith.constant 0 : i32
    return %arg1, %c0_i32, %c0_i32_0 : i32, i32, i32
  }
  func.func @transform_15(%arg0: i32, %arg1: i32) -> (i32, i32, i32) {
    %c0_i32 = arith.constant 0 : i32
    %c0_i32_0 = arith.constant 0 : i32
    %c0_i32_1 = arith.constant 0 : i32
    return %arg1, %c0_i32, %c0_i32_0 : i32, i32, i32
  }
  func.func @transform_16(%arg0: i32, %arg1: i32) -> (i32, i32, i32) {
    %c0_i32 = arith.constant 0 : i32
    %c0_i32_0 = arith.constant 0 : i32
    %c0_i32_1 = arith.constant 0 : i32
    return %arg1, %c0_i32, %c0_i32_0 : i32, i32, i32
  }
  func.func @transform_17(%arg0: i32, %arg1: i32) -> (i32, i32) {
    %c0_i32 = arith.constant 0 : i32
    %c0_i32_0 = arith.constant 0 : i32
    %c0_i32_1 = arith.constant 0 : i32
    return %c0_i32, %c0_i32_0 : i32, i32
  }
  func.func @transform_18(%arg0: i32, %arg1: i32) -> (i32, i32) {
    %c0_i32 = arith.constant 0 : i32
    %c0_i32_0 = arith.constant 0 : i32
    %c0_i32_1 = arith.constant 0 : i32
    return %c0_i32, %c0_i32_0 : i32, i32
  }
  func.func @transform_19(%arg0: i32, %arg1: i32) -> (i32, i32, i32) {
    %c0_i32 = arith.constant 0 : i32
    %c0_i32_0 = arith.constant 0 : i32
    %c0_i32_1 = arith.constant 0 : i32
    return %arg0, %c0_i32, %c0_i32_0 : i32, i32, i32
  }
}

</mosaic_0001>

<bundles_post_ra>
// kernel: tpu_custom_call.1
= control target key start
LH: loop header
LB: loop body
LE: loop exit
PB: predicated region body
PF: predicated region fallthrough
CT: control target
= control target key end

     0   :  { %s8296_s0 = inlined_call_operand.vmem [shape: f32[2,88,32], index: 0, kind: input, shape index: {}]   ;;  %s8297_s1 = inlined_call_operand.vmem [shape: bf16[2,32,96], index: 1, kind: input, shape index: {}]   ;;  %s8298_s2 = inlined_call_operand.vmem [shape: f32[2,1,96], index: 2, kind: input, shape index: {}]   ;;  %s8299_s3 = inlined_call_operand.vmem [shape: bf16[2,32,32], index: 3, kind: input, shape index: {}]   ;;  %s8300_s4 = inlined_call_operand.vmem [shape: f32[2,1,32], index: 4, kind: input, shape index: {}]   ;;  %s8301_s5 = inlined_call_operand.vmem [shape: bf16[2,32,128], index: 5, kind: input, shape index: {}]   ;;  %s8302_s6 = inlined_call_operand.vmem [shape: f32[2,1,128], index: 6, kind: input, shape index: {}]   ;;  %s8303_s7 = inlined_call_operand.vmem [shape: bf16[2,128,32], index: 7, kind: input, shape index: {}]   ;;  %s8304_s8 = inlined_call_operand.vmem [shape: f32[2,1,32], index: 8, kind: input, shape index: {}]   ;;  %s8305_s9 = inlined_call_operand.vmem [shape: f32[2,1,32], index: 9, kind: input, shape index: {}]   ;;  %s8306_s10 = inlined_call_operand.vmem [shape: f32[2,1,32], index: 10, kind: input, shape index: {}]   ;;  %s8307_s11 = inlined_call_operand.vmem [shape: f32[2,1,32], index: 11, kind: input, shape index: {}]   ;;  %s8308_s12 = inlined_call_operand.vmem [shape: f32[2,1,32], index: 12, kind: input, shape index: {}]   ;;  %s8309_s13 = inlined_call_operand.vmem [shape: f32[2,1,32], index: 13, kind: input, shape index: {}]   ;;  %s8310_s14 = inlined_call_operand.vmem [shape: f32[2,1,32], index: 14, kind: input, shape index: {}]   ;;  %s8311_s15 = inlined_call_operand.vmem [shape: f32[2,1,128], index: 15, kind: input, shape index: {}]   ;;  %s8312_s16 = inlined_call_operand.vmem [shape: f32[2,1,128], index: 16, kind: input, shape index: {}]   ;;  %s8313_s17 = inlined_call_operand.vmem [shape: bf16[32,128], index: 17, kind: input, shape index: {}]   ;;  %s8314_s18 = inlined_call_operand.vmem [shape: f32[1,128], index: 18, kind: input, shape index: {}]   ;;  %s8315_s19 = inlined_call_operand.hbm [shape: bf16[2,88,128], index: 19, kind: output, shape index: {}]  }
   0x1   :  { %8333 = sst [smem:[#allocation20_spill]] %s8296_s0 }
   0x2   :  { %8334 = sst [smem:[#allocation21_spill]] %s8297_s1 }
   0x3   :  { %8335 = sst [smem:[#allocation22_spill]] %s8298_s2 }
   0x4   :  { %8336 = sst [smem:[#allocation23_spill]] %s8299_s3 }
   0x5   :  { %8337 = sst [smem:[#allocation24_spill]] %s8301_s5 }
   0x6   :  { %8338 = sst [smem:[#allocation25_spill]] %s8302_s6 }
   0x7   :  { %8339 = sst [smem:[#allocation26_spill]] %s8303_s7 }
   0x8   :  { %8340 = sst [smem:[#allocation27_spill]] %s8311_s15 }
   0x9   :  { %8341 = sst [smem:[#allocation28_spill]] %s8312_s16 }
   0xa   :  { %8342 = sst [smem:[#allocation29_spill]] %s8313_s17 }
   0xb   :  { %8343 = sst [smem:[#allocation30_spill]] %s8314_s18 }
   0xc   :  { %8344 = sst [smem:[#allocation31_spill]] %s8315_s19 }
   0xd   :  { %24 = vsyncpa [#allocation4], 0 }
   0xe   :  { %26 = vsyncpa [#allocation4 + $0x1], 0  ;;  %s5919_s0 = smov 0   ;;  %s5921_s30 = smov 0  }
   0xf   :  { %s5923_s20 = smov 0   ;;  %s5925_s21 = smov 0  }
  0x10   :  { %s5927_s1 = smov 0   ;;  %s5929_s22 = smov 0  }
  0x11   :  { %s5931_s2 = smov 0   ;;  %s5933_s23 = smov 0  }
  0x12 LB: > { %8345 = sst [smem:[#allocation6_spill]] %s5771_s0  ;;  %s4966_s24 = sadd.s32 4294967295, %s5799_s23   ;;  %s5799_s23 = sphi %s5933_s23, %s32_s23   ;;  %s5795_s2 = sphi %s5931_s2, %s8409_s2   ;;  %s5791_s22 = sphi %s5929_s22, %s8408_s22   ;;  %s5787_s1 = sphi %s5927_s1, %s8407_s1   ;;  %s5783_s21 = sphi %s5925_s21, %s8406_s21   ;;  %s5779_s20 = sphi %s5923_s20, %s8405_s20   ;;  %s5775_s30 = sphi %s5921_s30, %s8404_s30   ;;  %s5771_s0 = sphi %s5919_s0, %s8403_s0  }
  0x13   : > { %8346 = sst [smem:[#allocation7_spill]] %s5775_s30  ;;  %s4967_s25 = sadd.s32 4294967294, %s5799_s23  }
  0x14   : > { %8347 = sst [smem:[#allocation8_spill]] %s5779_s20  ;;  %s41_s3 = sadd.s32 1, %s5791_s22 }
  0x15   : > { %8348 = sst [smem:[#allocation9_spill]] %s5783_s21  ;;  %p42_p0 = scmp.ge.s32.totalorder %s41_s3, 2 }
  0x16   : > { %8349 = sst [smem:[#allocation10_spill]] %s5787_s1  ;;  %s44_s26 = sadd.s32 1, %s5795_s2 }
  0x17   : > { %8350 = sst [smem:[#allocation11_spill]] %s5791_s22  ;;  %p545_p1 = scmp.ne.s32.totalorder %s5779_s20, %s5775_s30 }
  0x18   : > { %8351 = sst [smem:[#allocation12_spill]] %s5795_s2  ;;  %p546_p2 = scmp.eq.s32.totalorder %s4966_s24, 3 }
  0x19   : > { %8352 = sst [smem:[#allocation13_spill]] %s5799_s23  ;;  %s8411_s3 = smov (%p42_p0, %s41_s3), 0 }
  0x1a   : > { %8353 = sst [smem:[#allocation14_spill]] %s8411_s3  ;;  %s8413_s26 = smov (!%p42_p0, %s44_s26), %s5795_s2 }
  0x1b   : > { %p5968_p3 = por %p546_p2, %p545_p1  ;;  %p551_p4 = scmp.ne.s32.totalorder %s5775_s30, %s5771_s0 }
  0x1c   : > { %p46_p5 = scmp.ge.s32.totalorder %s8413_s26, 2  ;;  %p552_p6 = scmp.eq.s32.totalorder %s4967_s25, 3 }
  0x1d   : > { %s8354_s27 = scalar_select %p5968_p3, 1, 0 }
  0x1e   : > { %p4970_p7 = scmp.ge.s32.totalorder %s5799_s23, 1  ;;  %p688_p8 = scmp.lt.s32.totalorder %s5799_s23, 5 }
  0x1f   : > { %8355 = sst [smem:[#allocation15_spill]] %s8354_s27  ;;  %s8415_s26 = smov (%p46_p5, %s8413_s26), 0 }
  0x20   : > { %8356 = sst [smem:[#allocation16_spill]] %s8415_s26  ;;  %p5978_p9 = por %p552_p6, %p551_p4 }
  0x21   : > { %p689_p10 = pnand %p4970_p7, %p688_p8  ;;  %s532_s29 = ssub.s32 %s5795_s2, %s8415_s26 }
  0x22   : > { %s8357_s28 = scalar_select %p5978_p9, 1, 0 }
  0x23   : > { %s535_s24 = sadd.s32 1, %s5779_s20  ;;  %p533_p11 = scmp.eq.s32.totalorder %s532_s29, 0 }
  0x24   : > { %8358 = sst [smem:[#allocation17_spill]] %s8357_s28  ;;  %692 = sbr.rel (%p689_p10) target bundleno = 4030 (0xfbe), region = 96 }
  0x25   : > { %s5986_s3 = scalar_select %p533_p11, %s5779_s20, %s535_s24  }
  0x27   : > { %8359 = sst [smem:[#allocation18_spill]] %s5986_s3 }
  0x29   : > { %s8322_s25 = sand.u32 1, %s5775_s30   ;;  %p800_p12 = scmp.lt.s32.totalorder %s5787_s1, 1 }
  0x2a   : > { %s5178_s22 = smul.u32 44, %s8322_s25  ;;  %p805_p13 = scmp.lt.s32.totalorder %s5783_s21, 1 }
  0x2b   : > { %s801_s0 = scalar_select %p800_p12, %s5787_s1, 1 }
  0x2c   : > { %s5995_s23 = scalar_select %p805_p13, %s5783_s21, 1 }
  0x2d   : > { %s5179_s28 = smul.u32 88, %s801_s0  ;;  %s8360_s24 = sld [smem:[#allocation20_spill]] }
  0x2e   : > { %s5121_s0 = sshll.u32 %s5995_s23, 4  ;;  %s8363_s27 = sld [smem:[#allocation21_spill]] }
  0x2f   : > { %s8364_s17 = sld [smem:[#allocation23_spill]]  ;;  %s6076_s6 = scalar_lea.vmem [#allocation3], %s5178_s22 }
  0x30   : > { %s8365_s5 = sld [smem:[#allocation24_spill]] }
  0x31   : > { %s8367_s7 = sld [smem:[#allocation26_spill]] }
  0x32   : > { %s8369_s19 = sld [smem:[#allocation28_spill]] }
  0x33   : > { %s6000_s25 = scalar_lea.vmem %s8360_s24, %s5179_s28  ;;  %s6066_s24 = scalar_lea.vmem %s8310_s14, %s5995_s23 }
  0x34   : > { %8361 = sst [smem:[#allocation19_spill]] %s6000_s25  ;;  %s6010_s30 = scalar_lea.vmem %s8363_s27, %s5121_s0 }
  0x35   : > { %s6015_s21 = scalar_lea.vmem %s8364_s17, %s5121_s0  ;;  %s5124_s27 = sshll.u32 %s5995_s23, 6 }
  0x36   : > { %s6024_s2 = scalar_lea.vmem %s8365_s5, %s5121_s0  ;;  %s6060_s17 = scalar_lea.vmem %s8309_s13, %s5995_s23 }
  0x37   : > { %s6034_s18 = scalar_lea.vmem %s8367_s7, %s5124_s27  ;;  %s848_s27 = scalar_lea.vmem %s8308_s12, %s5995_s23 }
  0x38   : > { %s8368_s28 = sld [smem:[#allocation27_spill]]  ;;  %s860_s15 = scalar_lea.vmem %s8369_s19, %s5995_s23 }
  0x39   : > { %s8370_s26 = sld [smem:[#allocation9_spill]] }
  0x3e   : > { %s857_s5 = scalar_lea.vmem %s8368_s28, %s5995_s23 }
  0x3f   : > { %p4980_p0 = scmp.ne.s32.totalorder %s8370_s26, 0 }
  0x40   : > { %s8371_s7 = sld [smem:[#allocation19_spill]] (!%p4980_p0) }
  0x41   : > { %865 = sbr.rel (%p4980_p0) target bundleno = 82 (0x52), region = 100 }
  0x46   : > { %v866_v0 = vld [vmem:[%s8371_s7] sm:$0xff]  ;;  %vm877_vm0 = vcmask 261120   ;;  %v867_v1 = vld [vmem:[%s8371_s7 + $0x8] sm:$0xff]  ;;  %v868_v2 = vld [vmem:[%s8371_s7 + $0x10] sm:$0xff] }
  0x47   : > { %878 = vst.msk [vmem:[#allocation2] sm:$0xff] %vm877_vm0, %v866_v0  ;;  %v869_v3 = vld [vmem:[%s8371_s7 + $0x18] sm:$0xff]  ;;  %v870_v4 = vld [vmem:[%s8371_s7 + $0x20] sm:$0xff]  ;;  %v871_v5 = vld [vmem:[%s8371_s7 + $0x28] sm:$0xff] }
  0x48   : > { %879 = vst.msk [vmem:[#allocation2 + $0x8] sm:$0xff] %vm877_vm0, %v867_v1  ;;  %v872_v6 = vld [vmem:[%s8371_s7 + $0x30] sm:$0xff]  ;;  %v873_v7 = vld [vmem:[%s8371_s7 + $0x38] sm:$0xff]  ;;  %v874_v8 = vld [vmem:[%s8371_s7 + $0x40] sm:$0xff] }
  0x49   : > { %880 = vst.msk [vmem:[#allocation2 + $0x10] sm:$0xff] %vm877_vm0, %v868_v2  ;;  %v875_v9 = vld [vmem:[%s8371_s7 + $0x48] sm:$0xff]  ;;  %v876_v10 = vld [vmem:[%s8371_s7 + $0x50] sm:$0xff] }
  0x4a   : > { %881 = vst.msk [vmem:[#allocation2 + $0x18] sm:$0xff] %vm877_vm0, %v869_v3 }
  0x4b   : > { %882 = vst.msk [vmem:[#allocation2 + $0x20] sm:$0xff] %vm877_vm0, %v870_v4 }
  0x4c   : > { %883 = vst.msk [vmem:[#allocation2 + $0x28] sm:$0xff] %vm877_vm0, %v871_v5 }
  0x4d   : > { %884 = vst.msk [vmem:[#allocation2 + $0x30] sm:$0xff] %vm877_vm0, %v872_v6 }
  0x4e   : > { %885 = vst.msk [vmem:[#allocation2 + $0x38] sm:$0xff] %vm877_vm0, %v873_v7 }
  0x4f   : > { %886 = vst.msk [vmem:[#allocation2 + $0x40] sm:$0xff] %vm877_vm0, %v874_v8 }
  0x50   : > { %887 = vst.msk [vmem:[#allocation2 + $0x48] sm:$0xff] %vm877_vm0, %v875_v9 }
  0x51   : > { %888 = vst.msk [vmem:[#allocation2 + $0x50] sm:$0xff] %vm877_vm0, %v876_v10 }
  0x52 PF: > { %v891_v11 = vld [vmem:[#allocation2 + $0x10] sm:$0xff]  ;;  %vm906_vm1 = vcmask 261120   ;;  %v889_v12 = vld [vmem:[#allocation2] sm:$0xff]  ;;  %v892_v17 = vld [vmem:[#allocation2 + $0x18] sm:$0xff]  ;;  %v5801_v25 = vmov 32.0   ;;  %s8374_s19 = scalar_lea.vmem %s8305_s9, %s5995_s23  ;;  %s8375_s1 = scalar_lea.vmem %s8306_s10, %s5995_s23 }
  0x53   : > { %v893_v13 = vld [vmem:[#allocation2 + $0x20] sm:$0xff]  ;;  %v913_v14 = vsel %vm906_vm1, %v891_v11, 0.0  ;;  %v907_v15 = vsel %vm906_vm1, %v889_v12, 0.0  ;;  %v890_v18 = vld [vmem:[#allocation2 + $0x8] sm:$0xff]  ;;  %v916_v20 = vsel %vm906_vm1, %v892_v17, 0.0  ;;  %5357 = vrcp.f32 %v5801_v25  ;;  %s8376_s0 = sld [smem:[#allocation22_spill]] }
  0x54   : > { %v919_v16 = vsel %vm906_vm1, %v893_v13, 0.0  ;;  %914 = vadd.xlane.f32.xlu1 %v913_v14  ;;  %908 = vadd.xlane.f32.xlu0 %v907_v15  ;;  %v894_v19 = vld [vmem:[#allocation2 + $0x28] sm:$0xff]  ;;  %v910_v21 = vsel %vm906_vm1, %v890_v18, 0.0  ;;  %v895_v23 = vld [vmem:[#allocation2 + $0x30] sm:$0xff]  ;;  %v5125_v15 = vld [vmem:[%s6010_s30] sm:$0xff]  ;;  %s5802_s3 = smov 96  }
  0x55   : > { %920 = vadd.xlane.f32.xlu2 %v919_v16  ;;  %v922_v22 = vsel %vm906_vm1, %v894_v19, 0.0  ;;  %v925_v24 = vsel %vm906_vm1, %v895_v23, 0.0  ;;  %v896_v46 = vld [vmem:[#allocation2 + $0x38] sm:$0xff]  ;;  %s5803_s26 = smov 88   ;;  %s5804_s7 = smov 64  }
  0x56   : > { %v928_v51 = vsel %vm906_vm1, %v896_v46, 0.0  ;;  %v897_v60 = vld [vmem:[#allocation2 + $0x40] sm:$0xff]  ;;  %s5806_s22 = smov 80   ;;  %s5808_s28 = smov 112  }
  0x57   : > { %v931_v1 = vsel %vm906_vm1, %v897_v60, 0.0  ;;  %v6152_v5 = vld [vmem:[#allocation2 + $0x48] sm:$0xff]  ;;  %s5809_s29 = smov 104   ;;  %s5812_s25 = smov 40  }
  0x58   : > { %v934_v8 = vsel %vm906_vm1, %v6152_v5, 0.0  ;;  %v6158_v9 = vld [vmem:[#allocation2 + $0x50] sm:$0xff]  ;;  %s5813_s16 = smov 48  }
  0x59   : > { %v5358_v26 = vpop.eup %5357  ;;  %v937_v10 = vsel %vm906_vm1, %v6158_v9, 0.0  ;;  %s8377_s20 = scalar_lea.vmem %s8376_s0, %s5995_s23  ;;  %s5814_s0 = smov 8  }
  0x5a   : > { %v941_v27 = vmul.f32 32.0, %v5358_v26  ;;  %vm945_vm2 = vweird.f32 %v5358_v26 }
  0x5c   : > { %917 = vadd.xlane.f32.xlu1 %v916_v20  ;;  %911 = vadd.xlane.f32.xlu0 %v910_v21  ;;  %v942_v28 = vsub.f32 1.0, %v941_v27 }
  0x5d   : > { %923 = vadd.xlane.f32.xlu2 %v922_v22 }
  0x5e   : > { %v943_v29 = vmul.f32 %v5358_v26, %v942_v28 }
  0x60   : > { %v944_v30 = vadd.f32 %v5358_v26, %v943_v29 }
  0x62   : > { %v6108_v31 = vsel %vm945_vm2, %v5358_v26, %v944_v30 }
  0x65   : > { %926 = vadd.xlane.f32.xlu2 %v925_v24 }
  0xc7   : > { %v915_v32 = vpop.xlane.xlu1 %914  ;;  %v909_v33 = vpop.xlane.xlu0 %908 }
  0xc8   : > { %v947_v34 = vmul.f32 %v6108_v31, %v909_v33  ;;  %v921_v35 = vpop.xlane.xlu2 %920  ;;  %v949_v45 = vmul.f32 %v6108_v31, %v915_v32 }
  0xc9   : > { %v951_v41 = vmul.f32 %v6108_v31, %v921_v35 }
  0xca   : > { %v6111_v36 = vsub.f32 %v889_v12, %v947_v34  ;;  %v6131_v53 = vsub.f32 %v891_v11, %v949_v45  ;;  %v5126_v12 = vld [vmem:[%s6010_s30 + $0x8] sm:$0xff]  ;;  %s5805_s30 = smov 120  }
  0xcb   : > { %v6124_v49 = vsub.f32 %v893_v13, %v951_v41  ;;  %1234 = vmatpush.bf16.msra.mxu0 %v5126_v12 }
  0xcc   : > { %v969_v37 = vmul.f32 %v6111_v36, %v6111_v36  ;;  %v971_v61 = vmul.f32 %v6131_v53, %v6131_v53 }
  0xcd   : > { %v973_v58 = vmul.f32 %v6124_v49, %v6124_v49 }
  0xce   : > { %v980_v38 = vsel %vm906_vm1, %v969_v37, 0.0  ;;  %v986_v2 = vsel %vm906_vm1, %v971_v61, 0.0 }
  0xcf   : > { %v918_v39 = vpop.xlane.xlu1 %917  ;;  %981 = vadd.xlane.f32.xlu0 %v980_v38  ;;  %v912_v40 = vpop.xlane.xlu0 %911  ;;  %v992_v0 = vsel %vm906_vm1, %v973_v58, 0.0  ;;  %1235 = vmatpush.bf16.msra.mxu0 %v5125_v15 }
  0xd0   : > { %v950_v42 = vmul.f32 %v6108_v31, %v918_v39  ;;  %v948_v43 = vmul.f32 %v6108_v31, %v912_v40  ;;  %v924_v44 = vpop.xlane.xlu2 %923 }
  0xd1   : > { %v952_v56 = vmul.f32 %v6108_v31, %v924_v44 }
  0xd2   : > { %v6120_v47 = vsub.f32 %v892_v17, %v950_v42  ;;  %v6122_v48 = vsub.f32 %v890_v18, %v948_v43 }
  0xd3   : > { %v6141_v62 = vsub.f32 %v894_v19, %v952_v56 }
  0xd4   : > { %v972_v50 = vmul.f32 %v6120_v47, %v6120_v47  ;;  %v970_v52 = vmul.f32 %v6122_v48, %v6122_v48 }
  0xd5   : > { %v974_v4 = vmul.f32 %v6141_v62, %v6141_v62 }
  0xd6   : > { %v989_v54 = vsel %vm906_vm1, %v972_v50, 0.0  ;;  %v983_v55 = vsel %vm906_vm1, %v970_v52, 0.0 }
  0xd7   : > { %990 = vadd.xlane.f32.xlu2 %v989_v54  ;;  %929 = vadd.xlane.f32.xlu0 %v928_v51  ;;  %v995_v7 = vsel %vm906_vm1, %v974_v4, 0.0 }
  0xd8   : > { %984 = vadd.xlane.f32.xlu1 %v983_v55  ;;  %v927_v57 = vpop.xlane.xlu2 %926 }
  0xd9   : > { %v953_v59 = vmul.f32 %v6108_v31, %v927_v57 }
  0xdb   : > { %v6143_v63 = vsub.f32 %v895_v23, %v953_v59 }
  0xdd   : > { %v975_v3 = vmul.f32 %v6143_v63, %v6143_v63 }
  0xdf   : > { %993 = vadd.xlane.f32.xlu2 %v992_v0  ;;  %932 = vadd.xlane.f32.xlu0 %v931_v1  ;;  %v998_v6 = vsel %vm906_vm1, %v975_v3, 0.0 }
  0xe0   : > { %987 = vadd.xlane.f32.xlu1 %v986_v2 }
  0xe7   : > { %999 = vadd.xlane.f32.xlu2 %v998_v6  ;;  %996 = vadd.xlane.f32.xlu0 %v995_v7 }
  0xe8   : > { %935 = vadd.xlane.f32.xlu1 %v934_v8 }
  0xf0   : > { %938 = vadd.xlane.f32.xlu1 %v937_v10  ;;  %v6215_v10 = vld [vmem:[%s8374_s19] ss:$0 sm:$0xff]  ;;  %s5807_s19 = smov 72  }
 0x142   : > { %v982_v11 = vpop.xlane.xlu0 %981 }
 0x143   : > { %v1013_v13 = vmul.f32 %v982_v11, %v6108_v31 }
 0x145   : > { %v1024_v14 = vadd.f32 1e-05, %v1013_v13 }
 0x147   : > { %5359 = vrsqrt.f32 %v1024_v14  ;;  %vm1041_vm4 = vweird.f32 %v1024_v14 }
 0x14a   : > { %v991_v16 = vpop.xlane.xlu2 %990  ;;  %v930_v17 = vpop.xlane.xlu0 %929 }
 0x14b   : > { %v1016_v18 = vmul.f32 %v991_v16, %v6108_v31  ;;  %v985_v19 = vpop.xlane.xlu1 %984  ;;  %v954_v20 = vmul.f32 %v6108_v31, %v930_v17 }
 0x14c   : > { %v1014_v21 = vmul.f32 %v985_v19, %v6108_v31 }
 0x14d   : > { %v5360_v22 = vpop.eup %5359  ;;  %v6168_v23 = vadd.f32 1e-05, %v1016_v18  ;;  %v6170_v24 = vsub.f32 %v896_v46, %v954_v20  ;;  %v6228_v18 = vld [vmem:[%s8375_s1] ss:$0 sm:$0xff]  ;;  %s5811_s1 = smov 56  }
 0x14e   : > { %v1036_v25 = vmul.f32 %v5360_v22, %v1024_v14  ;;  %v1025_v26 = vadd.f32 1e-05, %v1014_v21  ;;  %vm1042_vm3 = vweird.f32 %v5360_v22 }
 0x14f   : > { %5361 = vrsqrt.f32 %v6168_v23  ;;  %v976_v27 = vmul.f32 %v6170_v24, %v6170_v24  ;;  %vm6190_vm5 = vmor %vm1041_vm4, %vm1042_vm3  ;;  %vm1071_vm9 = vweird.f32 %v6168_v23 }
 0x150   : > { %v1037_v28 = vmul.f32 %v5360_v22, %v1036_v25  ;;  %5363 = vrsqrt.f32 %v1025_v26  ;;  %vm1051_vm7 = vweird.f32 %v1025_v26 }
 0x151   : > { %v1001_v29 = vsel %vm906_vm1, %v976_v27, 0.0 }
 0x152   : > { %v1038_v30 = vmul.f32 0.5, %v1037_v28  ;;  %1002 = vadd.xlane.f32.xlu0 %v1001_v29  ;;  %v933_v32 = vpop.xlane.xlu0 %932  ;;  %v994_v37 = vpop.xlane.xlu2 %993 }
 0x153   : > { %v988_v33 = vpop.xlane.xlu1 %987  ;;  %v955_v34 = vmul.f32 %v6108_v31, %v933_v32  ;;  %v1017_v44 = vmul.f32 %v994_v37, %v6108_v31 }
 0x154   : > { %v1039_v35 = vsub.f32 1.5, %v1038_v30  ;;  %v1015_v38 = vmul.f32 %v988_v33, %v6108_v31 }
 0x155   : > { %v6178_v39 = vpop.eup %5361  ;;  %v6180_v40 = vsub.f32 %v897_v60, %v955_v34  ;;  %v6194_v56 = vadd.f32 1e-05, %v1017_v44 }
 0x156   : > { %v5364_v41 = vpop.eup %5363  ;;  %v6182_v42 = vadd.f32 1e-05, %v1015_v38  ;;  %v1040_v45 = vmul.f32 %v5360_v22, %v1039_v35  ;;  %v1066_v46 = vmul.f32 %v6178_v39, %v6168_v23  ;;  %vm1072_vm10 = vweird.f32 %v6178_v39 }
 0x157   : > { %v1046_v43 = vmul.f32 %v5364_v41, %v1025_v26  ;;  %v977_v51 = vmul.f32 %v6180_v40, %v6180_v40  ;;  %vm1052_vm6 = vweird.f32 %v5364_v41  ;;  %vm1073_vm12 = vmor %vm1071_vm9, %vm1072_vm10  ;;  %vm1081_vm2 = vweird.f32 %v6194_v56 }
 0x158   : > { %5365 = vrsqrt.f32 %v6182_v42  ;;  %v1044_v60 = vsel %vm6190_vm5, %v5360_v22, %v1040_v45  ;;  %v1067_v61 = vmul.f32 %v6178_v39, %v1066_v46  ;;  %vm1053_vm8 = vmor %vm1051_vm7, %vm1052_vm6  ;;  %vm1061_vm13 = vweird.f32 %v6182_v42 }
 0x159   : > { %v1047_v50 = vmul.f32 %v5364_v41, %v1046_v43  ;;  %v1004_v58 = vsel %vm906_vm1, %v977_v51, 0.0  ;;  %5367 = vrsqrt.f32 %v6194_v56  ;;  %v1145_v8 = vmul.f32 %v1044_v60, %v6111_v36 }
 0x15a   : > { %v997_v52 = vpop.xlane.xlu0 %996  ;;  %1005 = vadd.xlane.f32.xlu1 %v1004_v58  ;;  %v1068_v11 = vmul.f32 0.5, %v1067_v61 }
 0x15b   : > { %v1048_v55 = vmul.f32 0.5, %v1047_v50  ;;  %v936_v57 = vpop.xlane.xlu1 %935  ;;  %v1018_v59 = vmul.f32 %v997_v52, %v6108_v31  ;;  %v1159_v17 = vmul.f32 %v6215_v10, %v1145_v8 }
 0x15c   : > { %v956_v0 = vmul.f32 %v6108_v31, %v936_v57  ;;  %v1069_v19 = vsub.f32 1.5, %v1068_v11 }
 0x15d   : > { %v1049_v1 = vsub.f32 1.5, %v1048_v55  ;;  %v6202_v2 = vadd.f32 1e-05, %v1018_v59  ;;  %v1173_v29 = vadd.f32 %v6228_v18, %v1159_v17 }
 0x15e   : > { %v5366_v3 = vpop.eup %5365  ;;  %v6205_v4 = vsub.f32 %v6152_v5, %v956_v0  ;;  %v1070_v32 = vmul.f32 %v6178_v39, %v1069_v19 }
 0x15f   : > { %v1050_v6 = vmul.f32 %v5364_v41, %v1049_v1  ;;  %v1056_v7 = vmul.f32 %v5366_v3, %v6182_v42  ;;  %5369 = vrsqrt.f32 %v6202_v2  ;;  %v5368_v22 = vpop.eup %5367  ;;  %vm1062_vm11 = vweird.f32 %v5366_v3 }
 0x160   : > { %v978_v13 = vmul.f32 %v6205_v4, %v6205_v4  ;;  %v1076_v23 = vmul.f32 %v5368_v22, %v6194_v56  ;;  %vm1063_vm14 = vmor %vm1061_vm13, %vm1062_vm11  ;;  %v1074_v38 = vsel %vm1073_vm12, %v6178_v39, %v1070_v32  ;;  %vm1091_vm15 = vweird.f32 %v6202_v2 }
 0x161   : > { %v1054_v5 = vsel %vm1053_vm8, %v5364_v41, %v1050_v6  ;;  %v1057_v12 = vmul.f32 %v5366_v3, %v1056_v7  ;;  %v1148_v42 = vmul.f32 %v1074_v38, %v6120_v47  ;;  %vm1082_vm3 = vweird.f32 %v5368_v22 }
 0x162   : > { %v1146_v14 = vmul.f32 %v1054_v5, %v6122_v48  ;;  %v1007_v36 = vsel %vm906_vm1, %v978_v13, 0.0  ;;  %v1077_v41 = vmul.f32 %v5368_v22, %v1076_v23  ;;  %vm1083_vm5 = vmor %vm1081_vm2, %vm1082_vm3 }
 0x163   : > { %v1058_v15 = vmul.f32 0.5, %v1057_v12  ;;  %v939_v16 = vpop.xlane.xlu1 %938  ;;  %1008 = vadd.xlane.f32.xlu2 %v1007_v36  ;;  %v1162_v51 = vmul.f32 %v6215_v10, %v1148_v42 }
 0x164   : > { %v957_v20 = vmul.f32 %v6108_v31, %v939_v16  ;;  %v1160_v21 = vmul.f32 %v6215_v10, %v1146_v14  ;;  %v1078_v45 = vmul.f32 0.5, %v1077_v41 }
 0x165   : > { %v1059_v48 = vsub.f32 1.5, %v1058_v15  ;;  %v5370_v25 = vpop.eup %5369 }
 0x166   : > { %v6235_v26 = vsub.f32 %v6158_v9, %v957_v20  ;;  %v1086_v28 = vmul.f32 %v5370_v25, %v6202_v2  ;;  %v1174_v30 = vadd.f32 %v6228_v18, %v1160_v21  ;;  %v1079_v52 = vsub.f32 1.5, %v1078_v45 }
 0x167   : > { %v1060_v27 = vmul.f32 %v5366_v3, %v1059_v48  ;;  %vm1092_vm0 = vweird.f32 %v5370_v25 }
 0x168   : > { %v979_v33 = vmul.f32 %v6235_v26, %v6235_v26  ;;  %v1184_v9 = vpack.c.bf16 %v1174_v30, %v1173_v29  ;;  %v1087_v35 = vmul.f32 %v5370_v25, %v1086_v28  ;;  %vm1093_vm4 = vmor %vm1091_vm15, %vm1092_vm0  ;;  %v1080_v47 = vmul.f32 %v5368_v22, %v1079_v52 }
 0x169   : > { %v1064_v34 = vsel %vm1063_vm14, %v5366_v3, %v1060_v27  ;;  %v1000_v3 = vpop.xlane.xlu2 %999 }
 0x16a   : > { %v1010_v37 = vsel %vm906_vm1, %v979_v33, 0.0  ;;  %4989 = vmatmul.msk.bf16.vlgmr.msra.gmra.mxu0 %vm906_vm1, %v1184_v9  ;;  %v1147_v43 = vmul.f32 %v1064_v34, %v6131_v53  ;;  %v1088_v44 = vmul.f32 0.5, %v1087_v35  ;;  %v1176_v53 = vadd.f32 %v6228_v18, %v1162_v51 }
 0x16b   : > { %1011 = vadd.xlane.f32.xlu0 %v1010_v37  ;;  %v1084_v58 = vsel %vm1083_vm5, %v5368_v22, %v1080_v47  ;;  %v1019_v6 = vmul.f32 %v1000_v3, %v6108_v31 }
 0x16c   : > { %v1161_v46 = vmul.f32 %v6215_v10, %v1147_v43  ;;  %v1089_v50 = vsub.f32 1.5, %v1088_v44  ;;  %v1149_v60 = vmul.f32 %v1084_v58, %v6124_v49 }
 0x16d   : > { %v1030_v7 = vadd.f32 1e-05, %v1019_v6 }
 0x16e   : > { %v1175_v54 = vadd.f32 %v6228_v18, %v1161_v46  ;;  %v1090_v39 = vmul.f32 %v5370_v25, %v1089_v50  ;;  %v1163_v56 = vmul.f32 %v6215_v10, %v1149_v60 }
 0x16f   : > { %5371 = vrsqrt.f32 %v1030_v7  ;;  %vm1101_vm6 = vweird.f32 %v1030_v7 }
 0x170   : > { %v1185_v55 = vpack.c.bf16 %v1176_v53, %v1175_v54  ;;  %v1094_v57 = vsel %vm1093_vm4, %v5370_v25, %v1090_v39  ;;  %v1177_v1 = vadd.f32 %v6228_v18, %v1163_v56 }
 0x171   : > { %v1150_v59 = vmul.f32 %v1094_v57, %v6141_v62 }
 0x173   : > { %v1164_v61 = vmul.f32 %v6215_v10, %v1150_v59 }
 0x175   : > { %v1178_v0 = vadd.f32 %v6228_v18, %v1164_v61  ;;  %v5372_v8 = vpop.eup %5371 }
 0x176   : > { %v1096_v62 = vmul.f32 %v5372_v8, %v1030_v7  ;;  %vm1102_vm7 = vweird.f32 %v5372_v8 }
 0x177   : > { %v1186_v2 = vpack.c.bf16 %v1178_v0, %v1177_v1  ;;  %vm1103_vm8 = vmor %vm1101_vm6, %vm1102_vm7  ;;  %vm1317_vm6 = vcmask 64512   ;;  %vm1588_vm7 = vcmask 1043456  }
 0x178   : > { %v1097_v11 = vmul.f32 %v5372_v8, %v1096_v62 }
 0x17a   : > { %4990 = vmatmul.msk.bf16.gmra.mxu0 %vm906_vm1, %v1185_v55  ;;  %v1098_v13 = vmul.f32 0.5, %v1097_v11 }
 0x17c   : > { %v1099_v14 = vsub.f32 1.5, %v1098_v13 }
 0x17e   : > { %v1100_v17 = vmul.f32 %v5372_v8, %v1099_v14 }
 0x180   : > { %v1104_v22 = vsel %vm1103_vm8, %v5372_v8, %v1100_v17 }
 0x181   : > { %v1151_v29 = vmul.f32 %v1104_v22, %v6143_v63 }
 0x183   : > { %v1165_v35 = vmul.f32 %v6215_v10, %v1151_v29 }
 0x185   : > { %v1179_v63 = vadd.f32 %v6228_v18, %v1165_v35 }
 0x18a   : > { %4991 = vmatmul.msk.bf16.gmra.mxu0 %vm906_vm1, %v1186_v2 }
 0x1c5   : > { %v1003_v49 = vpop.xlane.xlu0 %1002 }
 0x1c6   : > { %v1020_v5 = vmul.f32 %v1003_v49, %v6108_v31 }
 0x1c8   : > { %v1031_v12 = vadd.f32 1e-05, %v1020_v5 }
 0x1ca   : > { %5373 = vrsqrt.f32 %v1031_v12  ;;  %vm1111_vm10 = vweird.f32 %v1031_v12 }
 0x1cd   : > { %v1006_v15 = vpop.xlane.xlu1 %1005 }
 0x1ce   : > { %v1021_v16 = vmul.f32 %v1006_v15, %v6108_v31 }
 0x1d0   : > { %v5374_v36 = vpop.eup %5373  ;;  %v1032_v20 = vadd.f32 1e-05, %v1021_v16 }
 0x1d1   : > { %v1106_v19 = vmul.f32 %v5374_v36, %v1031_v12  ;;  %vm1112_vm9 = vweird.f32 %v5374_v36 }
 0x1d2   : > { %5375 = vrsqrt.f32 %v1032_v20  ;;  %vm1113_vm11 = vmor %vm1111_vm10, %vm1112_vm9  ;;  %vm1121_vm12 = vweird.f32 %v1032_v20  ;;  %vm1392_vm9 = vcmask 719872   ;;  %vm2775_vm10 = vcmask 130048  }
 0x1d3   : > { %v1107_v21 = vmul.f32 %v5374_v36, %v1106_v19  ;;  %v5347_v19 = vld [vmem:[%s8377_s20] ss:$0 sm:$0xff]  ;;  %s5815_s20 = smov 24  }
 0x1d5   : > { %v1108_v48 = vmul.f32 0.5, %v1107_v21 }
 0x1d6   : > { %v1009_v27 = vpop.xlane.xlu2 %1008 }
 0x1d7   : > { %v1109_v25 = vsub.f32 1.5, %v1108_v48  ;;  %v1022_v28 = vmul.f32 %v1009_v27, %v6108_v31 }
 0x1d8   : > { %v5376_v32 = vpop.eup %5375 }
 0x1d9   : > { %v1110_v30 = vmul.f32 %v5374_v36, %v1109_v25  ;;  %v1033_v23 = vadd.f32 1e-05, %v1022_v28  ;;  %v1116_v9 = vmul.f32 %v5376_v32, %v1032_v20  ;;  %vm1122_vm13 = vweird.f32 %v5376_v32 }
 0x1da   : > { %vm1123_vm14 = vmor %vm1121_vm12, %vm1122_vm13 }
 0x1db   : > { %v1114_v33 = vsel %vm1113_vm11, %v5374_v36, %v1110_v30  ;;  %5377 = vrsqrt.f32 %v1033_v23  ;;  %v1117_v37 = vmul.f32 %v5376_v32, %v1116_v9  ;;  %vm1131_vm0 = vweird.f32 %v1033_v23 }
 0x1dc   : > { %v1152_v34 = vmul.f32 %v1114_v33, %v6170_v24  ;;  %vm2787_vm11 = vcmask 195584  }
 0x1dd   : > { %v1118_v43 = vmul.f32 0.5, %v1117_v37 }
 0x1de   : > { %v1012_v38 = vpop.xlane.xlu0 %1011  ;;  %v1166_v41 = vmul.f32 %v6215_v10, %v1152_v34 }
 0x1df   : > { %v1023_v44 = vmul.f32 %v1012_v38, %v6108_v31  ;;  %v1119_v45 = vsub.f32 1.5, %v1118_v43 }
 0x1e0   : > { %v1180_v42 = vadd.f32 %v6228_v18, %v1166_v41 }
 0x1e1   : > { %v1034_v46 = vadd.f32 1e-05, %v1023_v44  ;;  %v5378_v50 = vpop.eup %5377  ;;  %v1120_v52 = vmul.f32 %v5376_v32, %v1119_v45 }
 0x1e2   : > { %v1187_v51 = vpack.c.bf16 %v1180_v42, %v1179_v63  ;;  %v1126_v24 = vmul.f32 %v5378_v50, %v1033_v23  ;;  %vm1132_vm15 = vweird.f32 %v5378_v50 }
 0x1e3   : > { %5379 = vrsqrt.f32 %v1034_v46  ;;  %v1124_v39 = vsel %vm1123_vm14, %v5376_v32, %v1120_v52  ;;  %vm1133_vm2 = vmor %vm1131_vm0, %vm1132_vm15  ;;  %vm1141_vm3 = vweird.f32 %v1034_v46 }
 0x1e4   : > { %4992 = vmatmul.msk.bf16.gmra.mxu0 %vm906_vm1, %v1187_v51  ;;  %v1127_v54 = vmul.f32 %v5378_v50, %v1126_v24  ;;  %v1153_v58 = vmul.f32 %v1124_v39, %v6180_v40 }
 0x1e6   : > { %v1128_v53 = vmul.f32 0.5, %v1127_v54  ;;  %v1167_v1 = vmul.f32 %v6215_v10, %v1153_v58 }
 0x1e7   : > { %v1237_v12 = vpop.f32.mrf.mxu0 }
 0x1e8   : > { %v1129_v55 = vsub.f32 1.5, %v1128_v53  ;;  %v1181_v7 = vadd.f32 %v6228_v18, %v1167_v1  ;;  %v1238_v48 = vadd.f32 %v5347_v19, %v1237_v12 }
 0x1e9   : > { %v5380_v47 = vpop.eup %5379 }
 0x1ea   : > { %v1136_v57 = vmul.f32 %v5380_v47, %v1034_v46  ;;  %v1130_v59 = vmul.f32 %v5378_v50, %v1129_v55  ;;  %vm1142_vm4 = vweird.f32 %v5380_v47  ;;  %v1266_v30 = vpack.c.bf16 %v1238_v48, %v1238_v48 }
 0x1eb   : > { %vm1143_vm5 = vmor %vm1141_vm3, %vm1142_vm4 }
 0x1ec   : > { %v1137_v60 = vmul.f32 %v5380_v47, %v1136_v57  ;;  %v1134_v61 = vsel %vm1133_vm2, %v5378_v50, %v1130_v59  ;;  %v1288_v33 = vunpack.c.l.b16 %v1266_v30 }
 0x1ed   : > { %v1154_v0 = vmul.f32 %v1134_v61, %v6205_v4 }
 0x1ee   : > { %v1138_v56 = vmul.f32 0.5, %v1137_v60 }
 0x1ef   : > { %v1168_v3 = vmul.f32 %v6215_v10, %v1154_v0  ;;  %v1239_v13 = vpop.f32.mrf.mxu0 }
 0x1f0   : > { %v1139_v2 = vsub.f32 1.5, %v1138_v56 }
 0x1f1   : > { %v1182_v40 = vadd.f32 %v6228_v18, %v1168_v3 }
 0x1f2   : > { %v1140_v6 = vmul.f32 %v5380_v47, %v1139_v2 }
 0x1f3   : > { %v1188_v8 = vpack.c.bf16 %v1182_v40, %v1181_v7 }
 0x1f4   : > { %v1144_v62 = vsel %vm1143_vm5, %v5380_v47, %v1140_v6 }
 0x1f5   : > { %4993 = vmatmul.msk.bf16.gmra.mxu0 %vm906_vm1, %v1188_v8  ;;  %v1155_v4 = vmul.f32 %v1144_v62, %v6235_v26 }
 0x1f7   : > { %v1169_v11 = vmul.f32 %v6215_v10, %v1155_v4  ;;  %v1242_v14 = vpop.f32.mrf.mxu0 }
 0x1f8   : > { %v1243_v63 = vadd.f32 %v5347_v19, %v1242_v14 }
 0x1f9   : > { %v1183_v49 = vadd.f32 %v6228_v18, %v1169_v11  ;;  %v1240_v18 = vadd.f32 %v5347_v19, %v1239_v13 }
 0x1fa   : > { %v1268_v54 = vpack.c.bf16 %v1243_v63, %v1243_v63 }
 0x1fb   : > { %v1189_v5 = vpack.c.bf16 %v1183_v49, %v1183_v49  ;;  %v1267_v28 = vpack.c.bf16 %v1240_v18, %v1240_v18 }
 0x1fc   : > { %v1290_v58 = vunpack.c.l.b16 %v1268_v54 }
 0x1fd   : > { %v1289_v23 = vunpack.c.l.b16 %v1267_v28 }
 0x1ff   : > { %v1244_v15 = vpop.f32.mrf.mxu0  ;;  %v6296_v9 = vpack.c.b16 %v1289_v23, %v1288_v33 }
 0x200   : > { %v1245_v41 = vadd.f32 %v5347_v19, %v1244_v15 }
 0x202   : > { %v1269_v50 = vpack.c.bf16 %v1245_v41, %v1245_v41 }
 0x204   : > { %v1291_v47 = vunpack.c.l.b16 %v1269_v50 }
 0x205   : > { %4994 = vmatmul.msk.bf16.gmra.mxu0 %vm906_vm1, %v1189_v5 }
 0x206   : > { %v6306_v61 = vpack.c.b16 %v1291_v47, %v1290_v58 }
 0x207   : > { %v1247_v36 = vpop.f32.mrf.mxu0 }
 0x208   : > { %v1248_v42 = vadd.f32 %v5347_v19, %v1247_v36 }
 0x20a   : > { %v1270_v39 = vpack.c.bf16 %v1248_v42, %v1248_v42 }
 0x20c   : > { %v1292_v59 = vunpack.c.l.b16 %v1270_v39 }
 0x20f   : > { %v1249_v16 = vpop.f32.mrf.mxu0 }
 0x210   : > { %v1250_v43 = vadd.f32 %v5347_v19, %v1249_v16 }
 0x212   : > { %v1271_v51 = vpack.c.bf16 %v1250_v43, %v1250_v43 }
 0x214   : > { %v1293_v55 = vunpack.c.l.b16 %v1271_v51 }
 0x216   : > { %v6308_v56 = vpack.c.b16 %v1293_v55, %v1292_v59 }
 0x261   : > { %v1252_v17 = vpop.f32.mrf.mxu0 }
 0x262   : > { %v1253_v26 = vadd.f32 %v5347_v19, %v1252_v17 }
 0x264   : > { %v1272_v10 = vpack.c.bf16 %v1253_v26, %v1253_v26 }
 0x266   : > { %v1294_v25 = vunpack.c.l.b16 %v1272_v10 }
 0x269   : > { %v1254_v20 = vpop.f32.mrf.mxu0 }
 0x26a   : > { %v1255_v21 = vadd.f32 %v5347_v19, %v1254_v20 }
 0x26c   : > { %v1273_v22 = vpack.c.bf16 %v1255_v21, %v1255_v21 }
 0x26e   : > { %v1295_v27 = vunpack.c.l.b16 %v1273_v22 }
 0x270   : > { %v6292_v29 = vpack.c.b16 %v1295_v27, %v1294_v25 }
 0x272   : > { %1311 = vrot.lane.b32.xlu0 %v6292_v29, %s5802_s3  ;;  %v1257_v32 = vpop.f32.mrf.mxu0 }
 0x273   : > { %v1258_v34 = vadd.f32 %v5347_v19, %v1257_v32 }
 0x275   : > { %v1274_v37 = vpack.c.bf16 %v1258_v34, %v1258_v34 }
 0x277   : > { %v1296_v45 = vunpack.c.l.b16 %v1274_v37 }
 0x27a   : > { %1305 = vrot.lane.b32.xlu0 %v6296_v9, %s5802_s3  ;;  %v1259_v35 = vpop.f32.mrf.mxu0 }
 0x27b   : > { %v1260_v38 = vadd.f32 %v5347_v19, %v1259_v35 }
 0x27d   : > { %v1275_v44 = vpack.c.bf16 %v1260_v38, %v1260_v38 }
 0x27f   : > { %v1297_v46 = vunpack.c.l.b16 %v1275_v44 }
 0x281   : > { %v6300_v52 = vpack.c.b16 %v1297_v46, %v1296_v45 }
 0x282   : > { %v1262_v24 = vpop.f32.mrf.mxu0 }
 0x283   : > { %v1263_v53 = vadd.f32 %v5347_v19, %v1262_v24  ;;  %1313 = vrot.lane.b32.xlu2 %v6300_v52, %s5802_s3  ;;  %1650 = vrot.lane.b32.xlu0 %v6300_v52, %s5803_s26 }
 0x285   : > { %v1276_v57 = vpack.c.bf16 %v1263_v53, %v1263_v53 }
 0x287   : > { %v1298_v60 = vunpack.c.l.b16 %v1276_v57 }
 0x289   : > { %v6310_v0 = vpack.c.b16 %v1298_v60, %v1298_v60 }
 0x28a   : > { %v1264_v1 = vpop.f32.mrf.mxu0 }
 0x28b   : > { %1309 = vrot.lane.b32.xlu2 %v6308_v56, %s5802_s3  ;;  %1644 = vrot.lane.b32.xlu0 %v6306_v61, %s5803_s26 }
 0x28c   : > { %1315 = vrot.lane.b32.xlu1 %v6310_v0, %s5802_s3 }
 0x293   : > { %1648 = vrot.lane.b32.xlu2 %v6292_v29, %s5803_s26  ;;  %1642 = vrot.lane.b32.xlu0 %v6296_v9, %s5803_s26 }
 0x294   : > { %1307 = vrot.lane.b32.xlu1 %v6306_v61, %s5802_s3  ;;  %s5816_s3 = smov 16  }
 0x29b   : > { %1561 = vrot.lane.b32.xlu2 %v6300_v52, %s5804_s7  ;;  %1630 = vrot.lane.b32.xlu0 %v6296_v9, %s5805_s30 }
 0x29c   : > { %1646 = vrot.lane.b32.xlu1 %v6308_v56, %s5803_s26 }
 0x2a3   : > { %1557 = vrot.lane.b32.xlu2 %v6308_v56, %s5804_s7  ;;  %1632 = vrot.lane.b32.xlu0 %v6306_v61, %s5805_s30 }
 0x2a4   : > { %1559 = vrot.lane.b32.xlu1 %v6292_v29, %s5804_s7 }
 0x2ab   : > { %1553 = vrot.lane.b32.xlu2 %v6296_v9, %s5804_s7  ;;  %1634 = vrot.lane.b32.xlu0 %v6308_v56, %s5805_s30 }
 0x2ac   : > { %1555 = vrot.lane.b32.xlu1 %v6306_v61, %s5804_s7 }
 0x2b3   : > { %1638 = vrot.lane.b32.xlu2 %v6300_v52, %s5805_s30  ;;  %1984 = vrot.lane.b32.xlu0 %v6300_v52, %s5806_s22 }
 0x2b4   : > { %1636 = vrot.lane.b32.xlu1 %v6292_v29, %s5805_s30 }
 0x2bb   : > { %1980 = vrot.lane.b32.xlu2 %v6308_v56, %s5806_s22  ;;  %2318 = vrot.lane.b32.xlu0 %v6300_v52, %s5807_s19 }
 0x2bc   : > { %1982 = vrot.lane.b32.xlu1 %v6292_v29, %s5806_s22 }
 0x2c3   : > { %1978 = vrot.lane.b32.xlu2 %v6306_v61, %s5806_s22  ;;  %1964 = vrot.lane.b32.xlu0 %v6296_v9, %s5808_s28 }
 0x2c4   : > { %2316 = vrot.lane.b32.xlu1 %v6292_v29, %s5807_s19 }
 0x2cb   : > { %2312 = vrot.lane.b32.xlu2 %v6306_v61, %s5807_s19  ;;  %2304 = vrot.lane.b32.xlu0 %v6292_v29, %s5809_s29 }
 0x2cc   : > { %2314 = vrot.lane.b32.xlu1 %v6308_v56, %s5807_s19 }
 0x2d3   : > { %2310 = vrot.lane.b32.xlu2 %v6296_v9, %s5807_s19  ;;  %1563 = vrot.lane.b32.xlu0 %v6310_v0, %s5804_s7 }
 0x2d4   : > { %1976 = vrot.lane.b32.xlu1 %v6296_v9, %s5806_s22 }
 0x2db   : > { %1966 = vrot.lane.b32.xlu2 %v6306_v61, %s5808_s28  ;;  %1986 = vrot.lane.b32.xlu0 %v6310_v0, %s5806_s22 }
 0x2dc   : > { %2298 = vrot.lane.b32.xlu1 %v6296_v9, %s5809_s29 }
 0x2dd   : > { %v1314_v8 = vpop.permute.xlu2 %1313 }
 0x2de   : > { %v1349_v49 = vsel %vm1317_vm6, %v1314_v8, 0 }
 0x2e3   : > { %1968 = vrot.lane.b32.xlu2 %v6308_v56, %s5808_s28 }
 0x2e4   : > { %v1312_v2 = vpop.permute.xlu0 %1311  ;;  %2300 = vrot.lane.b32.xlu1 %v6306_v61, %s5809_s29 }
 0x2e5   : > { %v1310_v5 = vpop.permute.xlu2 %1309  ;;  %v1346_v14 = vsel %vm1317_vm6, %v1312_v2, 0 }
 0x2e6   : > { %v1343_v17 = vsel %vm1317_vm6, %v1310_v5, 0  ;;  %v900_v5 = vlaneseq }
 0x2eb   : > { %1970 = vrot.lane.b32.xlu2 %v6292_v29, %s5808_s28 }
 0x2ec   : > { %v1306_v3 = vpop.permute.xlu0 %1305  ;;  %2302 = vrot.lane.b32.xlu1 %v6308_v56, %s5809_s29 }
 0x2ed   : > { %v6397_v15 = vpop.permute.xlu2 %1648  ;;  %v1337_v48 = vsel %vm1317_vm6, %v1306_v3, 0 }
 0x2ee   : > { %v1682_v1 = vsel %vm1317_vm6, %v6397_v15, 0  ;;  %v5810_v15 = vmov -1e+30  }
 0x2f3   : > { %2306 = vrot.lane.b32.xlu2 %v6300_v52, %s5809_s29 }
 0x2f4   : > { %1972 = vrot.lane.b32.xlu1 %v6300_v52, %s5808_s28 }
 0x2f5   : > { %v6379_v6 = vpop.permute.xlu0 %1650  ;;  %v1562_v19 = vpop.permute.xlu2 %1561 }
 0x2f6   : > { %v1685_v59 = vsel %vm1317_vm6, %v6379_v6, 0 }
 0x2fb   : > { %2320 = vrot.lane.b32.xlu2 %v6310_v0, %s5807_s19 }
 0x2fc   : > { %1652 = vrot.lane.b32.xlu1 %v6310_v0, %s5803_s26 }
 0x2fd   : > { %v6384_v7 = vpop.permute.xlu0 %1644  ;;  %v1558_v22 = vpop.permute.xlu2 %1557 }
 0x2fe   : > { %v1316_v40 = vpop.permute.xlu1 %1315  ;;  %v1676_v8 = vsel %vm1317_vm6, %v6384_v7, 0 }
 0x2ff   : > { %v1352_v62 = vsel %vm1317_vm6, %v1316_v40, 0 }
 0x300   : > { %1356 = vmatpush.bf16.xpose.msra.mxu1 %v1352_v62 }
 0x304   : > { %1640 = vrot.lane.b32.xlu1 %v6310_v0, %s5805_s30  ;;  %s8380_s30 = scalar_lea.vmem %s8300_s4, %s5995_s23 }
 0x305   : > { %v6389_v4 = vpop.permute.xlu0 %1642  ;;  %v1554_v28 = vpop.permute.xlu2 %1553 }
 0x306   : > { %v1308_v11 = vpop.permute.xlu1 %1307 }
 0x307   : > { %v1340_v10 = vsel %vm1317_vm6, %v1308_v11, 0  ;;  %v1673_v11 = vsel %vm1317_vm6, %v6389_v4, 0 }
 0x308   : > { %1357 = vmatpush.bf16.xpose.msra.mxu1 %v1349_v49 }
 0x30d   : > { %v6392_v12 = vpop.permute.xlu0 %1630  ;;  %v6416_v23 = vpop.permute.xlu2 %1638 }
 0x30e   : > { %v6394_v13 = vpop.permute.xlu1 %1646 }
 0x30f   : > { %v1679_v40 = vsel %vm1317_vm6, %v6394_v13, 0 }
 0x310   : > { %1358 = vmatpush.bf16.xpose.msra.mxu1 %v1346_v14  ;;  %v901_v14 = vand.u32 127, %v900_v5 }
 0x312   : > { %vm902_vm8 = vcmp.lt.s32.totalorder %v901_v14, 82 }
 0x313   : > { %v6473_v4 = vsel %vm902_vm8, 0.0, %v5810_v15 }
 0x315   : > { %v6399_v36 = vpop.permute.xlu0 %1632  ;;  %v1981_v35 = vpop.permute.xlu2 %1980 }
 0x316   : > { %v1560_v16 = vpop.permute.xlu1 %1559  ;;  %v2013_v57 = vsel %vm1317_vm6, %v1981_v35, 0 }
 0x318   : > { %1359 = vmatpush.bf16.xpose.msra.mxu1 %v1343_v17 }
 0x31d   : > { %v6402_v26 = vpop.permute.xlu0 %1634  ;;  %v1979_v44 = vpop.permute.xlu2 %1978 }
 0x31e   : > { %v1556_v20 = vpop.permute.xlu1 %1555  ;;  %v2010_v60 = vsel %vm1317_vm6, %v1979_v44, 0 }
 0x320   : > { %1360 = vmatpush.bf16.xpose.msra.mxu1 %v1340_v10 }
 0x325   : > { %v1985_v21 = vpop.permute.xlu0 %1984  ;;  %v2313_v45 = vpop.permute.xlu2 %2312 }
 0x326   : > { %v6405_v18 = vpop.permute.xlu1 %1636  ;;  %v2019_v24 = vsel %vm1317_vm6, %v1985_v21, 0 }
 0x328   : > { %1361 = vmatpush.bf16.xpose.msra.mxu1 %v1337_v48 }
 0x32d   : > { %v6408_v25 = vpop.permute.xlu0 %2318  ;;  %v2311_v51 = vpop.permute.xlu2 %2310 }
 0x32e   : > { %v1983_v27 = vpop.permute.xlu1 %1982  ;;  %v2353_v13 = vsel %vm1317_vm6, %v6408_v25, 0  ;;  %v2341_v48 = vsel %vm1317_vm6, %v2311_v51, 0 }
 0x32f   : > { %4995 = vmatmul.msk.bf16.vlgmr.msra.gmra.mxu1 %vm1317_vm6, %v6296_v9  ;;  %v2016_v39 = vsel %vm1317_vm6, %v1983_v27, 0 }
 0x335   : > { %v6412_v30 = vpop.permute.xlu0 %1964  ;;  %v6440_v53 = vpop.permute.xlu2 %1966 }
 0x336   : > { %v6414_v32 = vpop.permute.xlu1 %2316 }
 0x337   : > { %v2350_v7 = vsel %vm1317_vm6, %v6414_v32, 0 }
 0x33d   : > { %v6418_v33 = vpop.permute.xlu0 %2304  ;;  %v6446_v58 = vpop.permute.xlu2 %1968 }
 0x33e   : > { %v6420_v34 = vpop.permute.xlu1 %2314 }
 0x33f   : > { %4996 = vmatmul.msk.bf16.gmra.mxu1 %vm1317_vm6, %v6306_v61 }
 0x345   : > { %v1564_v37 = vpop.permute.xlu0 %1563  ;;  %v6455_v2 = vpop.permute.xlu2 %1970 }
 0x346   : > { %v1977_v38 = vpop.permute.xlu1 %1976  ;;  %v1590_v41 = vsel %vm1588_vm7, %v1564_v37, 0 }
 0x347   : > { %1594 = vmatpush.bf16.msra.mxu2 %v1590_v41  ;;  %v2007_v3 = vsel %vm1317_vm6, %v1977_v38, 0 }
 0x34b   : > { %1595 = vmatpush.bf16.msra.mxu2 %v1562_v19  ;;  %v2347_v19 = vsel %vm1317_vm6, %v6420_v34, 0 }
 0x34d   : > { %v1987_v42 = vpop.permute.xlu0 %1986  ;;  %v6460_v6 = vpop.permute.xlu2 %2306 }
 0x34e   : > { %v6425_v43 = vpop.permute.xlu1 %2298  ;;  %v2022_v46 = vsel %vm1317_vm6, %v1987_v42, 0 }
 0x34f   : > { %4997 = vmatmul.msk.bf16.gmra.mxu1 %vm1317_vm6, %v6308_v56  ;;  %1596 = vmatpush.bf16.msra.mxu2 %v1560_v16 }
 0x353   : > { %1597 = vmatpush.bf16.msra.mxu2 %v1558_v22  ;;  %v2344_v22 = vsel %vm1317_vm6, %v2313_v45, 0 }
 0x355   : > { %v2321_v62 = vpop.permute.xlu2 %2320 }
 0x356   : > { %v6429_v63 = vpop.permute.xlu1 %2300  ;;  %v2356_v49 = vsel %vm1317_vm6, %v2321_v62, 0 }
 0x357   : > { %1598 = vmatpush.bf16.msra.mxu2 %v1556_v20 }
 0x35b   : > { %1599 = vmatpush.bf16.msra.mxu2 %v1554_v28 }
 0x35e   : > { %v6432_v50 = vpop.permute.xlu1 %2302 }
 0x35f   : > { %2026 = vmatpush.bf16.xpose.msrb.mxu2 %v2022_v46  ;;  %4998 = vmatmul.msk.bf16.gmra.mxu1 %vm1317_vm6, %v6292_v29 }
 0x366   : > { %v6437_v54 = vpop.permute.xlu1 %1972 }
 0x367   : > { %2027 = vmatpush.bf16.xpose.msrb.mxu2 %v2019_v24 }
 0x36e   : > { %v1653_v47 = vpop.permute.xlu1 %1652 }
 0x36f   : > { %2028 = vmatpush.bf16.xpose.msrb.mxu2 %v2016_v39  ;;  %4999 = vmatmul.msk.bf16.gmra.mxu1 %vm1317_vm6, %v6300_v52  ;;  %v1688_v55 = vsel %vm1317_vm6, %v1653_v47, 0 }
 0x370   : > { %1692 = vmatpush.bf16.xpose.msra.mxu3 %v1688_v55 }
 0x376   : > { %v1641_v37 = vpop.permute.xlu1 %1640 }
 0x377   : > { %2029 = vmatpush.bf16.xpose.msrb.mxu2 %v2013_v57 }
 0x378   : > { %1693 = vmatpush.bf16.xpose.msra.mxu3 %v1685_v59 }
 0x37f   : > { %2030 = vmatpush.bf16.xpose.msrb.mxu2 %v2010_v60  ;;  %5000 = vmatmul.msk.bf16.gmra.mxu1 %vm1317_vm6, %v6310_v0 }
 0x380   : > { %1694 = vmatpush.bf16.xpose.msra.mxu3 %v1682_v1 }
 0x387   : > { %2031 = vmatpush.bf16.xpose.msrb.mxu2 %v2007_v3 }
 0x388   : > { %1695 = vmatpush.bf16.xpose.msra.mxu3 %v1679_v40 }
 0x390   : > { %1696 = vmatpush.bf16.xpose.msra.mxu3 %v1676_v8 }
 0x398   : > { %1697 = vmatpush.bf16.xpose.msra.mxu3 %v1673_v11 }
 0x39f   : > { %5007 = vmatmul.msk.bf16.vlgmr.msra.gmra.mxu3 %vm1317_vm6, %v6392_v12 }
 0x3a0   : > { %2360 = vmatpush.bf16.xpose.msrb.mxu3 %v2356_v49 }
 0x3a8   : > { %2361 = vmatpush.bf16.xpose.msrb.mxu3 %v2353_v13 }
 0x3ac   : > { %v1363_v16 = vpop.f32.mrf.mxu1 }
 0x3ad   : > { %v6476_v17 = vadd.f32 %v1363_v16, %v6473_v4 }
 0x3af   : > { %5008 = vmatmul.msk.bf16.gmra.mxu3 %vm1317_vm6, %v6399_v36  ;;  %v1393_v12 = vsel %vm1392_vm9, %v6476_v17, -inf }
 0x3b0   : > { %2362 = vmatpush.bf16.xpose.msrb.mxu3 %v2350_v7  ;;  %1394 = vmax.xlane.f32.xlu2 %v1393_v12 }
 0x3b4   : > { %v1365_v20 = vpop.f32.mrf.mxu1 }
 0x3b5   : > { %v6485_v10 = vadd.f32 %v1365_v20, %v6473_v4 }
 0x3b7   : > { %v1396_v21 = vsel %vm1392_vm9, %v6485_v10, -inf }
 0x3b8   : > { %2363 = vmatpush.bf16.xpose.msrb.mxu3 %v2347_v19  ;;  %1397 = vmax.xlane.f32.xlu1 %v1396_v21 }
 0x3bc   : > { %v1368_v36 = vpop.f32.mrf.mxu1 }
 0x3bd   : > { %v6512_v42 = vadd.f32 %v1368_v36, %v6473_v4 }
 0x3bf   : > { %5009 = vmatmul.msk.bf16.gmra.mxu3 %vm1317_vm6, %v6402_v26  ;;  %v1399_v46 = vsel %vm1392_vm9, %v6512_v42, -inf }
 0x3c0   : > { %2364 = vmatpush.bf16.xpose.msrb.mxu3 %v2344_v22 }
 0x3c4   : > { %v1370_v25 = vpop.f32.mrf.mxu1 }
 0x3c8   : > { %2365 = vmatpush.bf16.xpose.msrb.mxu3 %v2341_v48 }
 0x3cc   : > { %v1373_v27 = vpop.f32.mrf.mxu1 }
 0x3cd   : > { %v6557_v62 = vadd.f32 %v1373_v27, %v6473_v4 }
 0x3cf   : > { %5010 = vmatmul.msk.bf16.gmra.mxu3 %vm1317_vm6, %v6405_v18 }
 0x3d1   : > { %1974 = vrot.lane.b32.xlu1 %v6310_v0, %s5808_s28  ;;  %s8381_s28 = scalar_lea.vmem %s8307_s11, %s5995_s23 }
 0x3d4   : > { %v1375_v28 = vpop.f32.mrf.mxu1 }
 0x3d5   : > { %v6570_v16 = vadd.f32 %v1375_v28, %v6473_v4 }
 0x3d7   : > { %v1408_v19 = vsel %vm1392_vm9, %v6570_v16, -inf }
 0x3dc   : > { %v1378_v32 = vpop.f32.mrf.mxu1 }
 0x3dd   : > { %v6551_v40 = vadd.f32 %v1378_v32, %v6473_v4 }
 0x3df   : > { %5011 = vmatmul.msk.bf16.gmra.mxu3 %vm1317_vm6, %v6416_v23  ;;  %v1411_v14 = vsel %vm1392_vm9, %v6551_v40, -inf }
 0x3e4   : > { %v1380_v34 = vpop.f32.mrf.mxu1 }
 0x3ec   : > { %v1383_v35 = vpop.f32.mrf.mxu1 }
 0x3ed   : > { %v6534_v55 = vadd.f32 %v1383_v35, %v6473_v4 }
 0x3ef   : > { %5012 = vmatmul.msk.bf16.gmra.mxu3 %vm1317_vm6, %v1641_v37  ;;  %v1417_v60 = vsel %vm1392_vm9, %v6534_v55, -inf }
 0x3f4   : > { %v1385_v26 = vpop.f32.mrf.mxu1 }
 0x3f5   : > { %v6567_v7 = vadd.f32 %v1385_v26, %v6473_v4 }
 0x3f7   : > { %v1420_v12 = vsel %vm1392_vm9, %v6567_v7, -inf }
 0x3fc   : > { %v1388_v38 = vpop.f32.mrf.mxu1 }
 0x3fd   : > { %v6554_v8 = vadd.f32 %v1388_v38, %v6473_v4 }
 0x3ff   : > { %5031 = vmatmul.msk.bf16.vlgmr.msrb.gmra.mxu3 %vm1317_vm6, %v6425_v43  ;;  %v1423_v13 = vsel %vm1392_vm9, %v6554_v8, -inf }
 0x404   : > { %v1390_v41 = vpop.f32.mrf.mxu1 }
 0x40f   : > { %5032 = vmatmul.msk.bf16.gmra.mxu3 %vm1317_vm6, %v6429_v63 }
 0x41f   : > { %5033 = vmatmul.msk.bf16.gmra.mxu3 %vm1317_vm6, %v6432_v50  ;;  %v6524_v50 = vadd.f32 %v1380_v34, %v6473_v4 }
 0x421   : > { %v1414_v39 = vsel %vm1392_vm9, %v6524_v50, -inf }
 0x422   : > { %v1699_v18 = vpop.f32.mrf.mxu3 }
 0x423   : > { %v6507_v23 = vadd.f32 %v1699_v18, %v6473_v4  ;;  %v1395_v11 = vpop.xlane.xlu2 %1394 }
 0x424   : > { %v1426_v5 = vsub.f32 %v6476_v17, %v1395_v11 }
 0x425   : > { %v1728_v44 = vsel %vm1392_vm9, %v6507_v23, -inf }
 0x426   : > { %1729 = vmax.xlane.f32.xlu0 %v1728_v44  ;;  %v1437_v15 = vmul.f32 1.442695, %v1426_v5 }
 0x428   : > { %5381 = vpow2.f32 %v1437_v15 }
 0x42a   : > { %v1701_v45 = vpop.f32.mrf.mxu3 }
 0x42b   : > { %v6515_v43 = vadd.f32 %v1701_v45, %v6473_v4  ;;  %v1398_v20 = vpop.xlane.xlu1 %1397 }
 0x42c   : > { %v1427_v48 = vsub.f32 %v6485_v10, %v1398_v20 }
 0x42d   : > { %v1731_v63 = vsel %vm1392_vm9, %v6515_v43, -inf }
 0x42e   : > { %1732 = vmax.xlane.f32.xlu1 %v1731_v63  ;;  %1400 = vmax.xlane.f32.xlu0 %v1399_v46  ;;  %v6579_v36 = vpop.eup %5381  ;;  %v1439_v28 = vmul.f32 1.442695, %v1427_v48 }
 0x42f   : > { %5034 = vmatmul.msk.bf16.gmra.mxu3 %vm1317_vm6, %v6418_v33  ;;  %v6537_v33 = vadd.f32 %v1370_v25, %v6473_v4  ;;  %v1459_v27 = vsel %vm1392_vm9, %v6579_v36, 0.0 }
 0x430   : > { %5383 = vpow2.f32 %v1439_v28 }
 0x431   : > { %v1402_v3 = vsel %vm1392_vm9, %v6537_v33, -inf }
 0x432   : > { %v1704_v51 = vpop.f32.mrf.mxu3 }
 0x433   : > { %v6527_v24 = vadd.f32 %v1704_v51, %v6473_v4 }
 0x435   : > { %v1734_v47 = vsel %vm1392_vm9, %v6527_v24, -inf }
 0x436   : > { %1415 = vmax.xlane.f32.xlu1 %v1414_v39  ;;  %1735 = vmax.xlane.f32.xlu2 %v1734_v47  ;;  %v6596_v26 = vpop.eup %5383 }
 0x437   : > { %v1462_v41 = vsel %vm1392_vm9, %v6596_v26, 0.0 }
 0x43a   : > { %v1706_v57 = vpop.f32.mrf.mxu3 }
 0x43b   : > { %v6540_v59 = vadd.f32 %v1706_v57, %v6473_v4 }
 0x43d   : > { %v1737_v1 = vsel %vm1392_vm9, %v6540_v59, -inf }
 0x43e   : > { %1418 = vmax.xlane.f32.xlu1 %v1417_v60  ;;  %1738 = vmax.xlane.f32.xlu0 %v1737_v1 }
 0x43f   : > { %1403 = vmax.xlane.f32.xlu2 %v1402_v3  ;;  %5035 = vmatmul.msk.bf16.gmra.mxu3 %vm1317_vm6, %v6460_v6  ;;  %v1405_v6 = vsel %vm1392_vm9, %v6557_v62, -inf }
 0x442   : > { %v1709_v49 = vpop.f32.mrf.mxu3 }
 0x443   : > { %v6577_v21 = vadd.f32 %v1709_v49, %v6473_v4  ;;  %v6610_v63 = vpop.permute.xlu1 %1974 }
 0x445   : > { %v1740_v25 = vsel %vm1392_vm9, %v6577_v21, -inf }
 0x446   : > { %1424 = vmax.xlane.f32.xlu1 %v1423_v13  ;;  %1412 = vmax.xlane.f32.xlu0 %v1411_v14 }
 0x447   : > { %1406 = vmax.xlane.f32.xlu2 %v1405_v6 }
 0x44a   : > { %v1711_v17 = vpop.f32.mrf.mxu3 }
 0x44b   : > { %v6587_v32 = vadd.f32 %v1711_v17, %v6473_v4 }
 0x44d   : > { %v1743_v37 = vsel %vm1392_vm9, %v6587_v32, -inf }
 0x44e   : > { %1421 = vmax.xlane.f32.xlu0 %v1420_v12 }
 0x44f   : > { %1409 = vmax.xlane.f32.xlu2 %v1408_v19 }
 0x452   : > { %v1714_v22 = vpop.f32.mrf.mxu3 }
 0x453   : > { %v6626_v13 = vadd.f32 %v1714_v22, %v6473_v4 }
 0x455   : > { %v1746_v15 = vsel %vm1392_vm9, %v6626_v13, -inf }
 0x456   : > { %1741 = vmax.xlane.f32.xlu0 %v1740_v25 }
 0x457   : > { %1460 = vadd.xlane.f32.xlu2 %v1459_v27 }
 0x45a   : > { %v1716_v34 = vpop.f32.mrf.mxu3 }
 0x45b   : > { %v6590_v35 = vadd.f32 %v1716_v34, %v6473_v4 }
 0x45d   : > { %v1749_v10 = vsel %vm1392_vm9, %v6590_v35, -inf }
 0x45e   : > { %1750 = vmax.xlane.f32.xlu1 %v1749_v10  ;;  %1744 = vmax.xlane.f32.xlu0 %v1743_v37 }
 0x462   : > { %v6598_v38 = vpop.f32.mrf.mxu3 }
 0x466   : > { %1463 = vadd.xlane.f32.xlu0 %v1462_v41 }
 0x46a   : > { %v6602_v18 = vpop.f32.mrf.mxu3 }
 0x46f   : > { %2308 = vrot.lane.b32.xlu2 %v6310_v0, %s5809_s29 }
 0x472   : > { %v6606_v44 = vpop.f32.mrf.mxu3 }
 0x47a   : > { %v1726_v45 = vpop.f32.mrf.mxu3  ;;  %1898 = vrot.lane.b32.xlu0 %v6310_v0, %s5811_s1 }
 0x499   : > { %v6612_v46 = vpop.xlane.xlu0 %1729 }
 0x4a1   : > { %v6614_v51 = vpop.xlane.xlu1 %1732  ;;  %v1401_v39 = vpop.xlane.xlu0 %1400 }
 0x4a2   : > { %v1428_v47 = vsub.f32 %v6512_v42, %v1401_v39 }
 0x4a4   : > { %v1441_v57 = vmul.f32 1.442695, %v1428_v47 }
 0x4a6   : > { %5385 = vpow2.f32 %v1441_v57 }
 0x4a9   : > { %v1416_v60 = vpop.xlane.xlu1 %1415  ;;  %v6617_v1 = vpop.xlane.xlu2 %1735 }
 0x4ac   : > { %v6619_v3 = vpop.eup %5385 }
 0x4ad   : > { %v1465_v11 = vsel %vm1392_vm9, %v6619_v3, 0.0 }
 0x4ae   : > { %1466 = vadd.xlane.f32.xlu2 %v1465_v11 }
 0x4b1   : > { %v1419_v49 = vpop.xlane.xlu1 %1418  ;;  %v6623_v5 = vpop.xlane.xlu0 %1738 }
 0x4b2   : > { %v1404_v14 = vpop.xlane.xlu2 %1403  ;;  %v1434_v39 = vsub.f32 %v6534_v55, %v1419_v49 }
 0x4b3   : > { %v1429_v42 = vsub.f32 %v6537_v33, %v1404_v14 }
 0x4b4   : > { %v1453_v11 = vmul.f32 1.442695, %v1434_v39 }
 0x4b5   : > { %v1443_v6 = vmul.f32 1.442695, %v1429_v42 }
 0x4b6   : > { %1747 = vmax.xlane.f32.xlu2 %v1746_v15 }
 0x4b7   : > { %5387 = vpow2.f32 %v1443_v6 }
 0x4b9   : > { %v1425_v17 = vpop.xlane.xlu1 %1424  ;;  %v1413_v12 = vpop.xlane.xlu0 %1412 }
 0x4ba   : > { %v1436_v19 = vsub.f32 %v6554_v8, %v1425_v17  ;;  %v1407_v20 = vpop.xlane.xlu2 %1406  ;;  %v1432_v28 = vsub.f32 %v6551_v40, %v1413_v12 }
 0x4bb   : > { %v1430_v48 = vsub.f32 %v6557_v62, %v1407_v20  ;;  %v1433_v62 = vsub.f32 %v6524_v50, %v1416_v60 }
 0x4bc   : > { %v1457_v25 = vmul.f32 1.442695, %v1436_v19  ;;  %v1449_v34 = vmul.f32 1.442695, %v1432_v28 }
 0x4bd   : > { %v6633_v27 = vpop.eup %5387  ;;  %v1445_v22 = vmul.f32 1.442695, %v1430_v48 }
 0x4be   : > { %5389 = vpow2.f32 %v1457_v25  ;;  %v1468_v33 = vsel %vm1392_vm9, %v6633_v27, 0.0 }
 0x4bf   : > { %5391 = vpow2.f32 %v1445_v22  ;;  %1469 = vadd.xlane.f32.xlu1 %v1468_v33 }
 0x4c0   : > { %5393 = vpow2.f32 %v1449_v34 }
 0x4c1   : > { %v1422_v10 = vpop.xlane.xlu0 %1421 }
 0x4c2   : > { %v1410_v37 = vpop.xlane.xlu2 %1409  ;;  %v1435_v49 = vsub.f32 %v6567_v7, %v1422_v10  ;;  %v1762_v7 = vsub.f32 %v6515_v43, %v6614_v51 }
 0x4c3   : > { %v1431_v8 = vsub.f32 %v6570_v16, %v1410_v37  ;;  %v1451_v16 = vmul.f32 1.442695, %v1433_v62 }
 0x4c4   : > { %v6639_v41 = vpop.eup %5389  ;;  %v1455_v15 = vmul.f32 1.442695, %v1435_v49  ;;  %v1774_v22 = vmul.f32 1.442695, %v1762_v7  ;;  %v1764_v7 = vsub.f32 %v6540_v59, %v6623_v5 }
 0x4c5   : > { %v6642_v45 = vpop.eup %5391  ;;  %v1447_v40 = vmul.f32 1.442695, %v1431_v8  ;;  %v1489_v47 = vsel %vm1392_vm9, %v6639_v41, 0.0 }
 0x4c6   : > { %v1471_v57 = vsel %vm1392_vm9, %v6642_v45, 0.0  ;;  %1490 = vadd.xlane.f32.xlu0 %v1489_v47  ;;  %v6651_v60 = vpop.eup %5393 }
 0x4c7   : > { %5395 = vpow2.f32 %v1447_v40  ;;  %1472 = vadd.xlane.f32.xlu1 %v1471_v57  ;;  %v1477_v6 = vsel %vm1392_vm9, %v6651_v60, 0.0 }
 0x4c8   : > { %5397 = vpow2.f32 %v1451_v16 }
 0x4c9   : > { %v6649_v14 = vpop.xlane.xlu0 %1741  ;;  %5399 = vpow2.f32 %v1453_v11 }
 0x4ca   : > { %v1461_v50 = vpop.xlane.xlu2 %1460 }
 0x4cb   : > { %5401 = vrcp.f32 %v1461_v50  ;;  %v6691_v50 = vpop.f32.mrf.mxu3 }
 0x4cc   : > { %5403 = vpow2.f32 %v1455_v15 }
 0x4cd   : > { %v6653_v55 = vpop.eup %5395 }
 0x4ce   : > { %v1474_v42 = vsel %vm1392_vm9, %v6653_v55, 0.0  ;;  %v6662_v12 = vpop.eup %5397 }
 0x4cf   : > { %1475 = vadd.xlane.f32.xlu2 %v1474_v42  ;;  %1478 = vadd.xlane.f32.xlu1 %v1477_v6  ;;  %v6664_v20 = vpop.eup %5399  ;;  %v1480_v48 = vsel %vm1392_vm9, %v6662_v12, 0.0 }
 0x4d0   : > { %v1483_v25 = vsel %vm1392_vm9, %v6664_v20, 0.0 }
 0x4d1   : > { %v6660_v17 = vpop.xlane.xlu0 %1744  ;;  %v5402_v33 = vpop.eup %5401 }
 0x4d2   : > { %v2309_v19 = vpop.permute.xlu2 %2308  ;;  %v6675_v34 = vpop.eup %5403  ;;  %v1503_v43 = vmul.f32 %v5402_v33, %v6579_v36 }
 0x4d3   : > { %5036 = vmatmul.msk.bf16.gmra.mxu3 %vm1317_vm6, %v2309_v19  ;;  %v1486_v51 = vsel %vm1392_vm9, %v6675_v34, 0.0  ;;  %v2369_v42 = vpop.f32.mrf.mxu3 }
 0x4d4   : > { %v1514_v8 = vpack.c.bf16 %v1503_v43, %v1503_v43 }
 0x4d6   : > { %v1536_v40 = vunpack.c.l.b16 %v1514_v8  ;;  %v1751_v8 = vpop.xlane.xlu1 %1750 }
 0x4d7   : > { %1481 = vadd.xlane.f32.xlu2 %v1480_v48  ;;  %1484 = vadd.xlane.f32.xlu1 %v1483_v25  ;;  %v6705_v48 = vadd.f32 %v6598_v38, %v6473_v4  ;;  %v1765_v25 = vsub.f32 %v6577_v21, %v6649_v14  ;;  %v6723_v14 = vadd.f32 %v6602_v18, %v6473_v4 }
 0x4d8   : > { %v6735_v18 = vadd.f32 %v6606_v44, %v6473_v4 }
 0x4d9   : > { %v1464_v28 = vpop.xlane.xlu0 %1463  ;;  %v1780_v59 = vmul.f32 1.442695, %v1765_v25 }
 0x4da   : > { %5405 = vrcp.f32 %v1464_v28  ;;  %1896 = vrot.lane.b32.xlu0 %v6300_v52, %s5811_s1 }
 0x4db   : > { %5407 = vpow2.f32 %v1774_v22  ;;  %v6699_v19 = vpop.f32.mrf.mxu3  ;;  %v1752_v22 = vsel %vm1392_vm9, %v6705_v48, -inf }
 0x4df   : > { %1487 = vadd.xlane.f32.xlu2 %v1486_v51  ;;  %v1766_v51 = vsub.f32 %v6587_v32, %v6660_v17  ;;  %v1758_v17 = vsel %vm1392_vm9, %v6735_v18, -inf }
 0x4e0   : > { %v5406_v10 = vpop.eup %5405 }
 0x4e1   : > { %v1504_v37 = vmul.f32 %v5406_v10, %v6596_v26  ;;  %v6681_v62 = vpop.eup %5407  ;;  %v1761_v26 = vsub.f32 %v6507_v23, %v6612_v46  ;;  %v1778_v46 = vmul.f32 1.442695, %v1764_v7  ;;  %v1755_v10 = vsel %vm1392_vm9, %v6723_v14, -inf }
 0x4e2   : > { %v1797_v57 = vsel %vm1392_vm9, %v6681_v62, 0.0 }
 0x4e3   : > { %v1515_v39 = vpack.c.bf16 %v1504_v37, %v1504_v37  ;;  %v1772_v49 = vmul.f32 1.442695, %v1761_v26  ;;  %v2374_v23 = vpop.f32.mrf.mxu3 }
 0x4e5   : > { %v1537_v47 = vunpack.c.l.b16 %v1515_v39  ;;  %5409 = vpow2.f32 %v1772_v49  ;;  %v1782_v39 = vmul.f32 1.442695, %v1766_v51  ;;  %v6750_v49 = vadd.f32 %v2374_v23, %v6473_v4 }
 0x4e6   : > { %5411 = vpow2.f32 %v1778_v46 }
 0x4e7   : > { %1798 = vadd.xlane.f32.xlu2 %v1797_v57  ;;  %v1547_v16 = vpack.c.b16 %v1537_v47, %v1536_v40  ;;  %5413 = vpow2.f32 %v1780_v59  ;;  %v6738_v47 = vadd.f32 %v2369_v42, %v6473_v4  ;;  %v2405_v46 = vsel %vm1392_vm9, %v6750_v49, -inf }
 0x4e9   : > { %5001 = vmatmul.msk.bf16.vlgmr.msra.gmra.mxu2 %vm1392_vm9, %v1547_v16  ;;  %v2399_v16 = vsel %vm1392_vm9, %v6738_v47, -inf }
 0x4eb   : > { %v6695_v6 = vpop.eup %5409  ;;  %v6713_v28 = vpop.f32.mrf.mxu3 }
 0x4ec   : > { %v1899_v36 = vpop.permute.xlu0 %1898  ;;  %v1794_v15 = vsel %vm1392_vm9, %v6695_v6, 0.0  ;;  %v6715_v5 = vpop.eup %5411 }
 0x4ed   : > { %v1924_v11 = vsel %vm1588_vm7, %v1899_v36, 0  ;;  %v1803_v38 = vsel %vm1392_vm9, %v6715_v5, 0.0  ;;  %v6725_v33 = vpop.eup %5413 }
 0x4ee   : > { %1928 = vmatpush.bf16.msrb.mxu0 %v1924_v11  ;;  %v1806_v37 = vsel %vm1392_vm9, %v6725_v33, 0.0 }
 0x4f0   : > { %1894 = vrot.lane.b32.xlu1 %v6292_v29, %s5811_s1 }
 0x4f3   : > { %v2379_v43 = vpop.f32.mrf.mxu3 }
 0x4f4   : > { %v6765_v51 = vadd.f32 %v2379_v43, %v6473_v4 }
 0x4fb   : > { %v6743_v57 = vpop.f32.mrf.mxu3 }
 0x4ff   : > { %1892 = vrot.lane.b32.xlu2 %v6308_v56, %s5811_s1 }
 0x503   : > { %v6759_v25 = vpop.f32.mrf.mxu3 }
 0x504   : > { %1795 = vadd.xlane.f32.xlu0 %v1794_v15  ;;  %v1763_v15 = vsub.f32 %v6527_v24, %v6617_v1 }
 0x50b   : > { %v6772_v43 = vpop.f32.mrf.mxu3 }
 0x518   : > { %1890 = vrot.lane.b32.xlu0 %v6306_v61, %s5811_s1 }
 0x51a   : > { %1753 = vmax.xlane.f32.xlu1 %v1752_v22 }
 0x520   : > { %1888 = vrot.lane.b32.xlu0 %v6296_v9, %s5811_s1 }
 0x521   : > { %v1467_v21 = vpop.xlane.xlu2 %1466 }
 0x522   : > { %1804 = vadd.xlane.f32.xlu1 %v1803_v38  ;;  %5415 = vrcp.f32 %v1467_v21 }
 0x523   : > { %5417 = vpow2.f32 %v1782_v39 }
 0x528   : > { %1756 = vmax.xlane.f32.xlu2 %v1755_v10  ;;  %v5416_v11 = vpop.eup %5415 }
 0x529   : > { %v1748_v40 = vpop.xlane.xlu2 %1747  ;;  %v6747_v26 = vpop.eup %5417 }
 0x52a   : > { %1807 = vadd.xlane.f32.xlu1 %v1806_v37  ;;  %v1767_v32 = vsub.f32 %v6626_v13, %v1748_v40  ;;  %v1505_v13 = vmul.f32 %v5416_v11, %v6619_v3  ;;  %v1809_v42 = vsel %vm1392_vm9, %v6747_v26, 0.0  ;;  %v1776_v3 = vmul.f32 1.442695, %v1763_v15 }
 0x52c   : > { %v1784_v36 = vmul.f32 1.442695, %v1767_v32  ;;  %v1516_v59 = vpack.c.bf16 %v1505_v13, %v1505_v13 }
 0x52e   : > { %v1538_v24 = vunpack.c.l.b16 %v1516_v59  ;;  %v6783_v59 = vadd.f32 %v6691_v50, %v6473_v4 }
 0x530   : > { %1759 = vmax.xlane.f32.xlu2 %v1758_v17 }
 0x532   : > { %v1470_v44 = vpop.xlane.xlu1 %1469  ;;  %2400 = vmax.xlane.f32.xlu1 %v2399_v16 }
 0x533   : > { %5419 = vrcp.f32 %v1470_v44 }
 0x534   : > { %5421 = vpow2.f32 %v1784_v36  ;;  %v1768_v36 = vsub.f32 %v6590_v35, %v1751_v8  ;;  %v6785_v35 = vpop.f32.mrf.mxu3 }
 0x538   : > { %1810 = vadd.xlane.f32.xlu2 %v1809_v42 }
 0x539   : > { %v5420_v7 = vpop.eup %5419  ;;  %v1491_v32 = vpop.xlane.xlu0 %1490 }
 0x53a   : > { %v1473_v22 = vpop.xlane.xlu1 %1472  ;;  %2406 = vmax.xlane.f32.xlu1 %v2405_v46  ;;  %v1506_v23 = vmul.f32 %v5420_v7, %v6633_v27  ;;  %v6762_v38 = vpop.eup %5421  ;;  %v2411_v27 = vsel %vm1392_vm9, %v6765_v51, -inf  ;;  %v1786_v46 = vmul.f32 1.442695, %v1768_v36 }
 0x53b   : > { %5423 = vrcp.f32 %v1473_v22  ;;  %v1812_v10 = vsel %vm1392_vm9, %v6762_v38, 0.0 }
 0x53c   : > { %v1517_v21 = vpack.c.bf16 %v1506_v23, %v1506_v23  ;;  %5425 = vpow2.f32 %v1776_v3 }
 0x53e   : > { %v1539_v1 = vunpack.c.l.b16 %v1517_v21 }
 0x540   : > { %1813 = vadd.xlane.f32.xlu2 %v1812_v10  ;;  %v1548_v37 = vpack.c.b16 %v1539_v1, %v1538_v24 }
 0x541   : > { %v5424_v40 = vpop.eup %5423 }
 0x542   : > { %v1476_v39 = vpop.xlane.xlu2 %1475  ;;  %2412 = vmax.xlane.f32.xlu1 %v2411_v27  ;;  %5002 = vmatmul.msk.bf16.gmra.mxu2 %vm1392_vm9, %v1548_v37  ;;  %v6774_v17 = vpop.eup %5425  ;;  %v1507_v16 = vmul.f32 %v5424_v40, %v6642_v45 }
 0x543   : > { %5427 = vrcp.f32 %v1476_v39  ;;  %v1800_v11 = vsel %vm1392_vm9, %v6774_v17, 0.0  ;;  %v1479_v13 = vpop.xlane.xlu1 %1478 }
 0x544   : > { %v1518_v7 = vpack.c.bf16 %v1507_v16, %v1507_v16 }
 0x546   : > { %v1540_v45 = vunpack.c.l.b16 %v1518_v7 }
 0x549   : > { %v5428_v44 = vpop.eup %5427 }
 0x54a   : > { %v1482_v42 = vpop.xlane.xlu2 %1481  ;;  %1801 = vadd.xlane.f32.xlu0 %v1800_v11  ;;  %v1508_v15 = vmul.f32 %v5428_v44, %v6653_v55  ;;  %v2396_v55 = vsel %vm1392_vm9, %v6783_v59, -inf  ;;  %v6802_v11 = vadd.f32 %v6699_v19, %v6473_v4 }
 0x54b   : > { %5429 = vrcp.f32 %v1482_v42  ;;  %v1485_v16 = vpop.xlane.xlu1 %1484 }
 0x54c   : > { %v1897_v22 = vpop.permute.xlu0 %1896  ;;  %v1519_v23 = vpack.c.bf16 %v1508_v15, %v1508_v15  ;;  %5431 = vrcp.f32 %v1479_v13  ;;  %v2402_v7 = vsel %vm1392_vm9, %v6802_v11, -inf }
 0x54d   : > { %1929 = vmatpush.bf16.msrb.mxu0 %v1897_v22  ;;  %5433 = vpow2.f32 %v1786_v46 }
 0x54e   : > { %v1541_v8 = vunpack.c.l.b16 %v1519_v23 }
 0x550   : > { %v1549_v3 = vpack.c.b16 %v1541_v8, %v1540_v45 }
 0x551   : > { %v5430_v21 = vpop.eup %5429 }
 0x552   : > { %v1488_v24 = vpop.xlane.xlu2 %1487  ;;  %5003 = vmatmul.msk.bf16.gmra.mxu2 %vm1392_vm9, %v1549_v3  ;;  %2397 = vmax.xlane.f32.xlu0 %v2396_v55  ;;  %v5432_v1 = vpop.eup %5431  ;;  %v1510_v50 = vmul.f32 %v5430_v21, %v6662_v12 }
 0x553   : > { %v6791_v10 = vpop.eup %5433  ;;  %v1509_v27 = vmul.f32 %v5432_v1, %v6651_v60  ;;  %5435 = vrcp.f32 %v1488_v24 }
 0x554   : > { %v1521_v39 = vpack.c.bf16 %v1510_v50, %v1510_v50  ;;  %v1815_v40 = vsel %vm1392_vm9, %v6791_v10, 0.0  ;;  %5437 = vrcp.f32 %v1485_v16 }
 0x555   : > { %v1520_v36 = vpack.c.bf16 %v1509_v27, %v1509_v27  ;;  %5439 = vrcp.f32 %v1491_v32 }
 0x556   : > { %v6793_v37 = vpop.f32.mrf.mxu3  ;;  %v1543_v12 = vunpack.c.l.b16 %v1521_v39 }
 0x557   : > { %v1542_v13 = vunpack.c.l.b16 %v1520_v36 }
 0x559   : > { %v1550_v42 = vpack.c.b16 %v1543_v12, %v1542_v13  ;;  %v5436_v15 = vpop.eup %5435 }
 0x55a   : > { %1816 = vadd.xlane.f32.xlu0 %v1815_v40  ;;  %v1799_v44 = vpop.xlane.xlu2 %1798  ;;  %v5438_v22 = vpop.eup %5437  ;;  %v1512_v23 = vmul.f32 %v5436_v15, %v6675_v34  ;;  %v6813_v34 = vadd.f32 %v6759_v25, %v6473_v4 }
 0x55b   : > { %2566 = vrot.lane.b32.xlu1 %v6310_v0, %s5812_s25  ;;  %v1511_v19 = vmul.f32 %v5438_v22, %v6664_v20  ;;  %v5440_v1 = vpop.eup %5439 }
 0x55c   : > { %v1523_v8 = vpack.c.bf16 %v1512_v23, %v1512_v23  ;;  %v1513_v50 = vmul.f32 %v5440_v1, %v6639_v41  ;;  %v2417_v32 = vsel %vm1392_vm9, %v6813_v34, -inf }
 0x55d   : > { %v1522_v3 = vpack.c.bf16 %v1511_v19, %v1511_v19  ;;  %v6831_v19 = vadd.f32 %v6743_v57, %v6473_v4 }
 0x55e   : > { %v2394_v60 = vpop.f32.mrf.mxu3  ;;  %v1545_v21 = vunpack.c.l.b16 %v1523_v8  ;;  %v1524_v27 = vpack.c.bf16 %v1513_v50, %v1513_v50 }
 0x55f   : > { %v1544_v55 = vunpack.c.l.b16 %v1522_v3  ;;  %v2414_v3 = vsel %vm1392_vm9, %v6831_v19, -inf }
 0x560   : > { %v1546_v40 = vunpack.c.l.b16 %v1524_v27 }
 0x561   : > { %v1551_v24 = vpack.c.b16 %v1545_v21, %v1544_v55  ;;  %v6847_v55 = vadd.f32 %v6713_v28, %v6473_v4 }
 0x562   : > { %v1895_v46 = vpop.permute.xlu1 %1894  ;;  %5004 = vmatmul.msk.bf16.gmra.mxu2 %vm1392_vm9, %v1550_v42  ;;  %2403 = vmax.xlane.f32.xlu0 %v2402_v7  ;;  %v1893_v45 = vpop.permute.xlu2 %1892  ;;  %v1552_v20 = vpack.c.b16 %v1546_v40, %v1546_v40 }
 0x563   : > { %1930 = vmatpush.bf16.msrb.mxu0 %v1895_v46 }
 0x567   : > { %1931 = vmatpush.bf16.msrb.mxu0 %v1893_v45 }
 0x56c   : > { %v6853_v1 = vpop.f32.mrf.mxu2 }
 0x572   : > { %5005 = vmatmul.msk.bf16.gmra.mxu2 %vm1392_vm9, %v1551_v24  ;;  %v2408_v24 = vsel %vm1392_vm9, %v6847_v55, -inf }
 0x577   : > { %v1796_v39 = vpop.xlane.xlu0 %1795 }
 0x578   : > { %5441 = vrcp.f32 %v1796_v39  ;;  %v6859_v39 = vpop.f32.mrf.mxu2 }
 0x579   : > { %5443 = vrcp.f32 %v1799_v44 }
 0x57e   : > { %v5442_v16 = vpop.eup %5441 }
 0x57f   : > { %v5444_v36 = vpop.eup %5443  ;;  %v1838_v41 = vmul.f32 %v5442_v16, %v6695_v6 }
 0x580   : > { %v1839_v12 = vmul.f32 %v5444_v36, %v6681_v62 }
 0x581   : > { %v1849_v13 = vpack.c.bf16 %v1838_v41, %v1838_v41 }
 0x582   : > { %5006 = vmatmul.msk.bf16.gmra.mxu2 %vm1392_vm9, %v1552_v20  ;;  %v1850_v25 = vpack.c.bf16 %v1839_v12, %v1839_v12 }
 0x583   : > { %v1871_v7 = vunpack.c.l.b16 %v1849_v13 }
 0x584   : > { %v1872_v22 = vunpack.c.l.b16 %v1850_v25 }
 0x585   : > { %2418 = vmax.xlane.f32.xlu1 %v2417_v32 }
 0x586   : > { %v1882_v23 = vpack.c.b16 %v1872_v22, %v1871_v7 }
 0x58a   : > { %v1891_v60 = vpop.permute.xlu0 %1890 }
 0x58b   : > { %1932 = vmatpush.bf16.msrb.mxu0 %v1891_v60 }
 0x58d   : > { %v1754_v42 = vpop.xlane.xlu1 %1753 }
 0x58e   : > { %v1769_v15 = vsub.f32 %v6705_v48, %v1754_v42 }
 0x590   : > { %v1788_v44 = vmul.f32 1.442695, %v1769_v15 }
 0x592   : > { %5445 = vpow2.f32 %v1788_v44  ;;  %5019 = vmatmul.msk.bf16.vlgmr.msrb.gmra.mxu2 %vm1317_vm6, %v6412_v30  ;;  %v1889_v46 = vpop.permute.xlu0 %1888 }
 0x593   : > { %1933 = vmatpush.bf16.msrb.mxu0 %v1889_v46 }
 0x595   : > { %v1805_v30 = vpop.xlane.xlu1 %1804 }
 0x596   : > { %5013 = vmatmul.msk.bf16.vlgmr.msrb.gmra.mxu0 %vm1392_vm9, %v1882_v23 }
 0x598   : > { %v6824_v62 = vpop.eup %5445 }
 0x599   : > { %v1818_v6 = vsel %vm1392_vm9, %v6824_v62, 0.0 }
 0x59a   : > { %1819 = vadd.xlane.f32.xlu2 %v1818_v6 }
 0x59b   : > { %v1757_v45 = vpop.xlane.xlu2 %1756 }
 0x59c   : > { %v1770_v48 = vsub.f32 %v6723_v14, %v1757_v45 }
 0x59d   : > { %v1808_v14 = vpop.xlane.xlu1 %1807 }
 0x59e   : > { %v1790_v8 = vmul.f32 1.442695, %v1770_v48  ;;  %2562 = vrot.lane.b32.xlu1 %v6292_v29, %s5812_s25 }
 0x5a0   : > { %5447 = vpow2.f32 %v1790_v8 }
 0x5a1   : > { %5449 = vrcp.f32 %v1805_v30 }
 0x5a2   : > { %2415 = vmax.xlane.f32.xlu2 %v2414_v3  ;;  %5020 = vmatmul.msk.bf16.gmra.mxu2 %vm1317_vm6, %v6440_v53 }
 0x5a3   : > { %v1760_v50 = vpop.xlane.xlu2 %1759 }
 0x5a5   : > { %v2401_v53 = vpop.xlane.xlu1 %2400 }
 0x5a6   : > { %v6839_v21 = vpop.eup %5447  ;;  %2224 = vrot.lane.b32.xlu1 %v6306_v61, %s5813_s16  ;;  %v2430_v28 = vsub.f32 %v6738_v47, %v2401_v53 }
 0x5a7   : > { %v1821_v57 = vsel %vm1392_vm9, %v6839_v21, 0.0  ;;  %v5450_v20 = vpop.eup %5449 }
 0x5a8   : > { %1822 = vadd.xlane.f32.xlu0 %v1821_v57  ;;  %v2442_v32 = vmul.f32 1.442695, %v2430_v28  ;;  %v1841_v16 = vmul.f32 %v5450_v20, %v6715_v5 }
 0x5aa   : > { %v1852_v12 = vpack.c.bf16 %v1841_v16, %v1841_v16 }
 0x5ac   : > { %v1874_v13 = vunpack.c.l.b16 %v1852_v12 }
 0x5ad   : > { %v6857_v27 = vpop.xlane.xlu1 %2406 }
 0x5b0   : > { %2409 = vmax.xlane.f32.xlu0 %v2408_v24 }
 0x5b2   : > { %5021 = vmatmul.msk.bf16.gmra.mxu2 %vm1317_vm6, %v6446_v58  ;;  %v1811_v58 = vpop.xlane.xlu2 %1810 }
 0x5b5   : > { %v6869_v36 = vpop.xlane.xlu1 %2412 }
 0x5ba   : > { %2228 = vrot.lane.b32.xlu2 %v6292_v29, %s5813_s16  ;;  %v1814_v45 = vpop.xlane.xlu2 %1813 }
 0x5bd   : > { %v1802_v40 = vpop.xlane.xlu0 %1801 }
 0x5be   : > { %5451 = vrcp.f32 %v1802_v40 }
 0x5bf   : > { %5453 = vpow2.f32 %v2442_v32 }
 0x5c0   : > { %5455 = vrcp.f32 %v1811_v58 }
 0x5c1   : > { %5457 = vrcp.f32 %v1808_v14 }
 0x5c2   : > { %2558 = vrot.lane.b32.xlu2 %v6306_v61, %s5812_s25  ;;  %5022 = vmatmul.msk.bf16.gmra.mxu2 %vm1317_vm6, %v6455_v2 }
 0x5c4   : > { %v5452_v29 = vpop.eup %5451  ;;  %2232 = vrot.lane.b32.xlu0 %v6310_v0, %s5813_s16 }
 0x5c5   : > { %v6871_v47 = vpop.f32.mrf.mxu2  ;;  %v1840_v41 = vmul.f32 %v5452_v29, %v6774_v17  ;;  %v2398_v61 = vpop.xlane.xlu0 %2397 }
 0x5c6   : > { %v6874_v2 = vpop.eup %5453  ;;  %v2429_v53 = vsub.f32 %v6783_v59, %v2398_v61 }
 0x5c7   : > { %v1851_v5 = vpack.c.bf16 %v1840_v41, %v1840_v41  ;;  %v5456_v25 = vpop.eup %5455  ;;  %v2465_v7 = vsel %vm1392_vm9, %v6874_v2, 0.0 }
 0x5c8   : > { %v5458_v17 = vpop.eup %5457  ;;  %v1843_v46 = vmul.f32 %v5456_v25, %v6747_v26  ;;  %v1771_v26 = vsub.f32 %v6735_v18, %v1760_v50  ;;  %v2440_v50 = vmul.f32 1.442695, %v2429_v53 }
 0x5c9   : > { %v1873_v60 = vunpack.c.l.b16 %v1851_v5  ;;  %v1842_v22 = vmul.f32 %v5458_v17, %v6725_v33 }
 0x5ca   : > { %v1854_v6 = vpack.c.bf16 %v1843_v46, %v1843_v46 }
 0x5cb   : > { %v1883_v42 = vpack.c.b16 %v1874_v13, %v1873_v60  ;;  %v1853_v30 = vpack.c.bf16 %v1842_v22, %v1842_v22 }
 0x5cc   : > { %2230 = vrot.lane.b32.xlu0 %v6300_v52, %s5813_s16  ;;  %v1876_v8 = vunpack.c.l.b16 %v1854_v6 }
 0x5cd   : > { %v2567_v0 = vpop.permute.xlu1 %2566  ;;  %v6878_v15 = vpop.f32.mrf.mxu2  ;;  %5014 = vmatmul.msk.bf16.gmra.mxu0 %vm1392_vm9, %v1883_v42  ;;  %v1875_v3 = vunpack.c.l.b16 %v1853_v30 }
 0x5ce   : > { %v2592_v44 = vsel %vm1588_vm7, %v2567_v0, 0  ;;  %v1817_v23 = vpop.xlane.xlu0 %1816 }
 0x5cf   : > { %2596 = vmatpush.bf16.msra.mxu0 %v2592_v44  ;;  %5459 = vrcp.f32 %v1817_v23  ;;  %v1884_v14 = vpack.c.b16 %v1876_v8, %v1875_v3 }
 0x5d0   : > { %2466 = vadd.xlane.f32.xlu1 %v2465_v7  ;;  %5461 = vrcp.f32 %v1814_v45 }
 0x5d2   : > { %5023 = vmatmul.msk.bf16.gmra.mxu2 %vm1317_vm6, %v6437_v54  ;;  %v1792_v54 = vmul.f32 1.442695, %v1771_v26 }
 0x5d4   : > { %2564 = vrot.lane.b32.xlu0 %v6300_v52, %s5812_s25  ;;  %5463 = vpow2.f32 %v1792_v54 }
 0x5d5   : > { %v6890_v48 = vpop.f32.mrf.mxu2  ;;  %v5460_v33 = vpop.eup %5459  ;;  %5465 = vpow2.f32 %v2440_v50 }
 0x5d6   : > { %v5462_v52 = vpop.eup %5461  ;;  %v1845_v24 = vmul.f32 %v5460_v33, %v6791_v10  ;;  %v6924_v61 = vpop.xlane.xlu0 %2403 }
 0x5d7   : > { %v1844_v28 = vmul.f32 %v5462_v52, %v6762_v38 }
 0x5d8   : > { %v1856_v18 = vpack.c.bf16 %v1845_v24, %v1845_v24 }
 0x5d9   : > { %v1855_v20 = vpack.c.bf16 %v1844_v28, %v1844_v28 }
 0x5da   : > { %v6907_v32 = vpop.eup %5463  ;;  %v1878_v16 = vunpack.c.l.b16 %v1856_v18 }
 0x5db   : > { %v1877_v10 = vunpack.c.l.b16 %v1855_v20  ;;  %v1824_v59 = vsel %vm1392_vm9, %v6907_v32, 0.0 }
 0x5dc   : > { %2226 = vrot.lane.b32.xlu0 %v6308_v56, %s5813_s16 }
 0x5dd   : > { %v6895_v57 = vpop.f32.mrf.mxu2  ;;  %5015 = vmatmul.msk.bf16.gmra.mxu0 %vm1392_vm9, %v1884_v14  ;;  %v1885_v38 = vpack.c.b16 %v1878_v16, %v1877_v10 }
 0x5e2   : > { %5024 = vmatmul.msk.bf16.gmra.mxu2 %vm1317_vm6, %v6610_v63  ;;  %v6914_v63 = vpop.eup %5465 }
 0x5e4   : > { %2560 = vrot.lane.b32.xlu0 %v6308_v56, %s5812_s25  ;;  %v2462_v56 = vsel %vm1392_vm9, %v6914_v63, 0.0 }
 0x5e5   : > { %v6905_v40 = vpop.f32.mrf.mxu2 }
 0x5eb   : > { %1825 = vadd.xlane.f32.xlu2 %v1824_v59 }
 0x5ed   : > { %v6911_v58 = vpop.f32.mrf.mxu2  ;;  %5016 = vmatmul.msk.bf16.gmra.mxu0 %vm1392_vm9, %v1885_v38 }
 0x5f3   : > { %2463 = vadd.xlane.f32.xlu2 %v2462_v56 }
 0x5f5   : > { %v6918_v29 = vpop.f32.mrf.mxu2 }
 0x5fd   : > { %v6920_v41 = vpop.f32.mrf.mxu2 }
 0x605   : > { %v6922_v12 = vpop.f32.mrf.mxu2 }
 0x60d   : > { %v1628_v5 = vpop.f32.mrf.mxu2  ;;  %v1820_v60 = vpop.xlane.xlu2 %1819 }
 0x60e   : > { %5467 = vrcp.f32 %v1820_v60  ;;  %v6964_v5 = vpop.xlane.xlu1 %2418 }
 0x613   : > { %v6955_v20 = vpop.f32.mrf.mxu0 }
 0x614   : > { %v5468_v17 = vpop.eup %5467 }
 0x615   : > { %v2033_v13 = vpop.f32.mrf.mxu2  ;;  %v1846_v46 = vmul.f32 %v5468_v17, %v6824_v62  ;;  %v6957_v16 = vpop.xlane.xlu2 %2415 }
 0x616   : > { %v6927_v42 = vadd.f32 %v2033_v13, %v6473_v4 }
 0x617   : > { %v1857_v45 = vpack.c.bf16 %v1846_v46, %v1846_v46  ;;  %v2563_v46 = vpop.permute.xlu1 %2562 }
 0x618   : > { %v2062_v25 = vsel %vm1392_vm9, %v6927_v42, -inf }
 0x619   : > { %2063 = vmax.xlane.f32.xlu1 %v2062_v25  ;;  %v1879_v3 = vunpack.c.l.b16 %v1857_v45 }
 0x61b   : > { %v1823_v0 = vpop.xlane.xlu0 %1822  ;;  %v6968_v13 = vpop.f32.mrf.mxu0 }
 0x61c   : > { %5469 = vrcp.f32 %v1823_v0 }
 0x61d   : > { %v2035_v44 = vpop.f32.mrf.mxu2  ;;  %v2229_v25 = vpop.permute.xlu2 %2228 }
 0x61e   : > { %v6932_v7 = vadd.f32 %v2035_v44, %v6473_v4 }
 0x620   : > { %v2065_v22 = vsel %vm1392_vm9, %v6932_v7, -inf }
 0x621   : > { %2066 = vmax.xlane.f32.xlu2 %v2065_v22 }
 0x622   : > { %v5470_v23 = vpop.eup %5469 }
 0x623   : > { %v1847_v6 = vmul.f32 %v5470_v23, %v6839_v21  ;;  %v6944_v52 = vpop.xlane.xlu0 %2409 }
 0x625   : > { %v2038_v30 = vpop.f32.mrf.mxu2  ;;  %v1858_v8 = vpack.c.bf16 %v1847_v6, %v1847_v6 }
 0x626   : > { %v6939_v26 = vadd.f32 %v2038_v30, %v6473_v4 }
 0x627   : > { %v1880_v14 = vunpack.c.l.b16 %v1858_v8 }
 0x628   : > { %v2068_v33 = vsel %vm1392_vm9, %v6939_v26, -inf }
 0x629   : > { %2069 = vmax.xlane.f32.xlu1 %v2068_v33  ;;  %v1886_v62 = vpack.c.b16 %v1880_v14, %v1879_v3  ;;  %v2225_v3 = vpop.permute.xlu1 %2224 }
 0x62b   : > { %5017 = vmatmul.msk.bf16.gmra.mxu0 %vm1392_vm9, %v1886_v62 }
 0x62d   : > { %v2040_v54 = vpop.f32.mrf.mxu2 }
 0x62e   : > { %v6947_v21 = vadd.f32 %v2040_v54, %v6473_v4  ;;  %v2431_v54 = vsub.f32 %v6802_v11, %v6924_v61 }
 0x630   : > { %v2071_v24 = vsel %vm1392_vm9, %v6947_v21, -inf }
 0x631   : > { %2072 = vmax.xlane.f32.xlu2 %v2071_v24  ;;  %v2559_v24 = vpop.permute.xlu2 %2558 }
 0x635   : > { %v2043_v53 = vpop.f32.mrf.mxu2 }
 0x636   : > { %v6952_v28 = vadd.f32 %v2043_v53, %v6473_v4  ;;  %v2233_v18 = vpop.permute.xlu0 %2232 }
 0x637   : > { %v2258_v50 = vsel %vm1588_vm7, %v2233_v18, 0 }
 0x638   : > { %2262 = vmatpush.bf16.msrb.mxu1 %v2258_v50  ;;  %v2074_v10 = vsel %vm1392_vm9, %v6952_v28, -inf }
 0x639   : > { %2075 = vmax.xlane.f32.xlu1 %v2074_v10  ;;  %v2444_v10 = vmul.f32 1.442695, %v2431_v54 }
 0x63b   : > { %5471 = vpow2.f32 %v2444_v10 }
 0x63d   : > { %v2045_v59 = vpop.f32.mrf.mxu2 }
 0x63e   : > { %v6962_v38 = vadd.f32 %v2045_v59, %v6473_v4  ;;  %v2231_v56 = vpop.permute.xlu0 %2230 }
 0x63f   : > { %2263 = vmatpush.bf16.msrb.mxu1 %v2231_v56  ;;  %v6997_v56 = vadd.f32 %v6785_v35, %v6473_v4 }
 0x640   : > { %v2077_v60 = vsel %vm1392_vm9, %v6962_v38, -inf }
 0x641   : > { %2078 = vmax.xlane.f32.xlu2 %v2077_v60 }
 0x643   : > { %2264 = vmatpush.bf16.msrb.mxu1 %v2229_v25  ;;  %v2423_v25 = vsel %vm1392_vm9, %v6997_v56, -inf }
 0x645   : > { %v2048_v0 = vpop.f32.mrf.mxu2 }
 0x646   : > { %v6971_v17 = vadd.f32 %v2048_v0, %v6473_v4  ;;  %v2565_v44 = vpop.permute.xlu0 %2564 }
 0x647   : > { %2597 = vmatpush.bf16.msra.mxu0 %v2565_v44 }
 0x648   : > { %v2080_v22 = vsel %vm1392_vm9, %v6971_v17, -inf }
 0x649   : > { %2081 = vmax.xlane.f32.xlu2 %v2080_v22 }
 0x64a   : > { %v6975_v23 = vpop.f32.mrf.mxu0 }
 0x64b   : > { %2598 = vmatpush.bf16.msra.mxu0 %v2563_v46  ;;  %v7010_v46 = vpop.eup %5471 }
 0x64d   : > { %v2050_v6 = vpop.f32.mrf.mxu2 }
 0x64e   : > { %v6978_v45 = vadd.f32 %v2050_v6, %v6473_v4  ;;  %v2227_v30 = vpop.permute.xlu0 %2226 }
 0x64f   : > { %2265 = vmatpush.bf16.msrb.mxu1 %v2227_v30 }
 0x650   : > { %v2083_v8 = vsel %vm1392_vm9, %v6978_v45, -inf }
 0x651   : > { %2084 = vmax.xlane.f32.xlu2 %v2083_v8  ;;  %v2468_v8 = vsel %vm1392_vm9, %v7010_v46, 0.0 }
 0x652   : > { %v6982_v14 = vpop.f32.mrf.mxu0 }
 0x653   : > { %v5285_v33 = vpack.i.bf16 %v6982_v14, %v6975_v23  ;;  %2266 = vmatpush.bf16.msrb.mxu1 %v2225_v3 }
 0x655   : > { %v2053_v62 = vpop.f32.mrf.mxu2 }
 0x656   : > { %v6989_v53 = vadd.f32 %v2053_v62, %v6473_v4  ;;  %v2561_v18 = vpop.permute.xlu0 %2560 }
 0x657   : > { %2599 = vmatpush.bf16.msra.mxu0 %v2561_v18 }
 0x658   : > { %v2086_v50 = vsel %vm1392_vm9, %v6989_v53, -inf }
 0x659   : > { %2087 = vmax.xlane.f32.xlu0 %v2086_v50 }
 0x65a   : > { %v6993_v59 = vpop.f32.mrf.mxu0 }
 0x65b   : > { %2600 = vmatpush.bf16.msra.mxu0 %v2559_v24 }
 0x65d   : > { %v2055_v60 = vpop.f32.mrf.mxu2 }
 0x65e   : > { %v7000_v11 = vadd.f32 %v2055_v60, %v6473_v4  ;;  %v1826_v61 = vpop.xlane.xlu2 %1825 }
 0x65f   : > { %5473 = vrcp.f32 %v1826_v61 }
 0x660   : > { %v2089_v0 = vsel %vm1392_vm9, %v7000_v11, -inf }
 0x661   : > { %2424 = vmax.xlane.f32.xlu0 %v2423_v25  ;;  %2090 = vmax.xlane.f32.xlu1 %v2089_v0 }
 0x662   : > { %v7006_v44 = vpop.f32.mrf.mxu0 }
 0x665   : > { %v5474_v22 = vpop.eup %5473  ;;  %v7012_v6 = vpop.f32.mrf.mxu2 }
 0x666   : > { %v1848_v30 = vmul.f32 %v5474_v22, %v6907_v32  ;;  %v7026_v32 = vpop.xlane.xlu1 %2466  ;;  %v7028_v60 = vpop.xlane.xlu2 %2463 }
 0x668   : > { %v1859_v3 = vpack.c.bf16 %v1848_v30, %v1848_v30 }
 0x669   : > { %2469 = vadd.xlane.f32.xlu0 %v2468_v8 }
 0x66a   : > { %v7017_v62 = vpop.f32.mrf.mxu0  ;;  %v1881_v54 = vunpack.c.l.b16 %v1859_v3 }
 0x66c   : > { %v1887_v24 = vpack.c.b16 %v1881_v54, %v1881_v54 }
 0x66d   : > { %v2060_v18 = vpop.f32.mrf.mxu2 }
 0x66e   : > { %5018 = vmatmul.msk.bf16.gmra.mxu0 %vm1392_vm9, %v1887_v24 }
 0x672   : > { %v7020_v50 = vpop.f32.mrf.mxu0 }
 0x67a   : > { %2556 = vrot.lane.b32.xlu1 %v6296_v9, %s5812_s25  ;;  %s8382_s25 = sld [smem:[#allocation25_spill]] }
 0x68c   : > { %v2064_v61 = vpop.xlane.xlu1 %2063 }
 0x68d   : > { %v2095_v25 = vsub.f32 %v6927_v42, %v2064_v61 }
 0x68f   : > { %v2106_v0 = vmul.f32 1.442695, %v2095_v25 }
 0x691   : > { %5475 = vpow2.f32 %v2106_v0  ;;  %v2434_v0 = vsub.f32 %v6765_v51, %v6869_v36 }
 0x694   : > { %v2067_v22 = vpop.xlane.xlu2 %2066 }
 0x695   : > { %v2096_v30 = vsub.f32 %v6932_v7, %v2067_v22 }
 0x697   : > { %v7032_v8 = vpop.eup %5475  ;;  %v2108_v3 = vmul.f32 1.442695, %v2096_v30 }
 0x698   : > { %v2128_v54 = vsel %vm1392_vm9, %v7032_v8, 0.0 }
 0x699   : > { %5477 = vpow2.f32 %v2108_v3  ;;  %2129 = vadd.xlane.f32.xlu2 %v2128_v54  ;;  %v2450_v3 = vmul.f32 1.442695, %v2434_v0  ;;  %v2436_v0 = vsub.f32 %v6813_v34, %v6964_v5 }
 0x69c   : > { %v2070_v24 = vpop.xlane.xlu1 %2069 }
 0x69d   : > { %v2097_v18 = vsub.f32 %v6939_v26, %v2070_v24 }
 0x69f   : > { %v7037_v10 = vpop.eup %5477  ;;  %v2110_v35 = vmul.f32 1.442695, %v2097_v18 }
 0x6a0   : > { %v2131_v42 = vsel %vm1392_vm9, %v7037_v10, 0.0 }
 0x6a1   : > { %5479 = vpow2.f32 %v2110_v35  ;;  %2132 = vadd.xlane.f32.xlu0 %v2131_v42 }
 0x6a4   : > { %v2073_v7 = vpop.xlane.xlu2 %2072 }
 0x6a5   : > { %v2098_v61 = vsub.f32 %v6947_v21, %v2073_v7 }
 0x6a7   : > { %v7042_v25 = vpop.eup %5479  ;;  %v2112_v22 = vmul.f32 1.442695, %v2098_v61 }
 0x6a8   : > { %v7046_v30 = vpop.f32.mrf.mxu0  ;;  %v2134_v26 = vsel %vm1392_vm9, %v7042_v25, 0.0 }
 0x6a9   : > { %5481 = vpow2.f32 %v2112_v22  ;;  %2135 = vadd.xlane.f32.xlu0 %v2134_v26 }
 0x6aa   : > { %5483 = vpow2.f32 %v2450_v3 }
 0x6ac   : > { %v2076_v54 = vpop.xlane.xlu1 %2075 }
 0x6ad   : > { %v2099_v35 = vsub.f32 %v6952_v28, %v2076_v54 }
 0x6af   : > { %v7051_v24 = vpop.eup %5481  ;;  %v2114_v21 = vmul.f32 1.442695, %v2099_v35 }
 0x6b0   : > { %v7053_v18 = vpop.f32.mrf.mxu0  ;;  %v2137_v51 = vsel %vm1392_vm9, %v7051_v24, 0.0  ;;  %v7061_v7 = vpop.eup %5483 }
 0x6b1   : > { %5485 = vpow2.f32 %v2114_v21  ;;  %v5330_v36 = vpack.i.bf16 %v7053_v18, %v7046_v30  ;;  %2222 = vrot.lane.b32.xlu2 %v6296_v9, %s5813_s16  ;;  %2138 = vadd.xlane.f32.xlu0 %v2137_v51  ;;  %v2477_v3 = vsel %vm1392_vm9, %v7061_v7, 0.0  ;;  %v2454_v9 = vmul.f32 1.442695, %v2436_v0  ;;  %s8383_s16 = scalar_lea.vmem %s8382_s25, %s5995_s23 }
 0x6b2   : > { %v2432_v0 = vsub.f32 %v6750_v49, %v6857_v27  ;;  %v2433_v49 = vsub.f32 %v6847_v55, %v6944_v52  ;;  %v2435_v55 = vsub.f32 %v6831_v19, %v6957_v16 }
 0x6b4   : > { %v2079_v42 = vpop.xlane.xlu2 %2078 }
 0x6b5   : > { %v2100_v28 = vsub.f32 %v6962_v38, %v2079_v42 }
 0x6b7   : > { %v7064_v61 = vpop.eup %5485  ;;  %v2116_v22 = vmul.f32 1.442695, %v2100_v28 }
 0x6b8   : > { %v2140_v26 = vsel %vm1392_vm9, %v7064_v61, 0.0 }
 0x6b9   : > { %5487 = vpow2.f32 %v2116_v22  ;;  %2141 = vadd.xlane.f32.xlu1 %v2140_v26  ;;  %2478 = vadd.xlane.f32.xlu0 %v2477_v3  ;;  %v2446_v26 = vmul.f32 1.442695, %v2432_v0  ;;  %v7089_v3 = vadd.f32 %v6793_v37, %v6473_v4  ;;  %v2452_v0 = vmul.f32 1.442695, %v2435_v55 }
 0x6ba   : > { %5489 = vpow2.f32 %v2454_v9  ;;  %v7093_v9 = vadd.f32 %v6772_v43, %v6473_v4  ;;  %v2448_v43 = vmul.f32 1.442695, %v2433_v49 }
 0x6bb   : > { %v2426_v27 = vsel %vm1392_vm9, %v7089_v3, -inf }
 0x6bc   : > { %v2082_v54 = vpop.xlane.xlu2 %2081  ;;  %v2420_v37 = vsel %vm1392_vm9, %v7093_v9, -inf }
 0x6bd   : > { %v2101_v16 = vsub.f32 %v6971_v17, %v2082_v54 }
 0x6bf   : > { %v7072_v35 = vpop.eup %5487 }
 0x6c0   : > { %v2143_v38 = vsel %vm1392_vm9, %v7072_v35, 0.0  ;;  %v7076_v5 = vpop.eup %5489 }
 0x6c1   : > { %2144 = vadd.xlane.f32.xlu0 %v2143_v38  ;;  %v2483_v42 = vsel %vm1392_vm9, %v7076_v5, 0.0 }
 0x6c4   : > { %v2085_v34 = vpop.xlane.xlu2 %2084 }
 0x6c5   : > { %v2102_v21 = vsub.f32 %v6978_v45, %v2085_v34 }
 0x6c7   : > { %v2120_v51 = vmul.f32 1.442695, %v2102_v21 }
 0x6c9   : > { %5491 = vpow2.f32 %v2120_v51  ;;  %2484 = vadd.xlane.f32.xlu0 %v2483_v42 }
 0x6ca   : > { %5493 = vpow2.f32 %v2446_v26 }
 0x6cb   : > { %5495 = vrcp.f32 %v7028_v60 }
 0x6cc   : > { %v2088_v54 = vpop.xlane.xlu0 %2087 }
 0x6cf   : > { %v7081_v28 = vpop.eup %5491 }
 0x6d0   : > { %v2149_v22 = vsel %vm1392_vm9, %v7081_v28, 0.0 }
 0x6d1   : > { %2150 = vadd.xlane.f32.xlu0 %v2149_v22 }
 0x6d4   : > { %v2091_v45 = vpop.xlane.xlu1 %2090 }
 0x6d5   : > { %v2104_v38 = vsub.f32 %v7000_v11, %v2091_v45  ;;  %v7104_v11 = vpop.eup %5493 }
 0x6d6   : > { %v5496_v21 = vpop.eup %5495  ;;  %v2471_v42 = vsel %vm1392_vm9, %v7104_v11, 0.0 }
 0x6d7   : > { %v2124_v34 = vmul.f32 1.442695, %v2104_v38 }
 0x6d9   : > { %5497 = vpow2.f32 %v2124_v34  ;;  %2427 = vmax.xlane.f32.xlu0 %v2426_v27 }
 0x6da   : > { %2421 = vmax.xlane.f32.xlu2 %v2420_v37  ;;  %5499 = vrcp.f32 %v7026_v32  ;;  %v2506_v32 = vmul.f32 %v5496_v21, %v6914_v63  ;;  %v2118_v63 = vmul.f32 1.442695, %v2101_v16 }
 0x6db   : > { %5501 = vpow2.f32 %v2448_v43 }
 0x6dc   : > { %v2517_v45 = vpack.c.bf16 %v2506_v32, %v2506_v32  ;;  %5503 = vpow2.f32 %v2452_v0  ;;  %v7135_v32 = vadd.f32 %v7012_v6, %v6473_v4  ;;  %v2425_v0 = vpop.xlane.xlu0 %2424 }
 0x6dd   : > { %5505 = vpow2.f32 %v2118_v63 }
 0x6de   : > { %v2539_v34 = vunpack.c.l.b16 %v2517_v45  ;;  %v2092_v45 = vsel %vm1392_vm9, %v7135_v32, -inf }
 0x6df   : > { %v7106_v51 = vpop.eup %5497 }
 0x6e0   : > { %v2155_v52 = vsel %vm1392_vm9, %v7106_v51, 0.0  ;;  %v5500_v60 = vpop.eup %5499 }
 0x6e1   : > { %2156 = vadd.xlane.f32.xlu1 %v2155_v52  ;;  %v2507_v22 = vmul.f32 %v5500_v60, %v6874_v2  ;;  %v7116_v26 = vpop.eup %5501  ;;  %v2103_v52 = vsub.f32 %v6989_v53, %v2088_v54 }
 0x6e2   : > { %2472 = vadd.xlane.f32.xlu2 %v2471_v42  ;;  %v2474_v38 = vsel %vm1392_vm9, %v7116_v26, 0.0  ;;  %v7123_v43 = vpop.eup %5503 }
 0x6e3   : > { %v2518_v19 = vpack.c.bf16 %v2507_v22, %v2507_v22  ;;  %v2480_v17 = vsel %vm1392_vm9, %v7123_v43, 0.0  ;;  %v7128_v55 = vpop.eup %5505  ;;  %v2122_v42 = vmul.f32 1.442695, %v2103_v52  ;;  %v2438_v22 = vsub.f32 %v6997_v56, %v2425_v0 }
 0x6e4   : > { %v2146_v60 = vsel %vm1392_vm9, %v7128_v55, 0.0 }
 0x6e5   : > { %v2540_v27 = vunpack.c.l.b16 %v2518_v19  ;;  %5507 = vpow2.f32 %v2122_v42  ;;  %v2458_v19 = vmul.f32 1.442695, %v2438_v22 }
 0x6e7   : > { %v2550_v2 = vpack.c.b16 %v2540_v27, %v2539_v34  ;;  %5509 = vpow2.f32 %v2458_v19  ;;  %v5270_v19 = vpack.i.bf16 %v6968_v13, %v6955_v20 }
 0x6ea   : > { %2475 = vadd.xlane.f32.xlu2 %v2474_v38  ;;  %v2470_v38 = vpop.xlane.xlu0 %2469 }
 0x6eb   : > { %v7121_v49 = vpop.f32.mrf.mxu0  ;;  %v7140_v16 = vpop.eup %5507 }
 0x6ec   : > { %v2557_v37 = vpop.permute.xlu1 %2556  ;;  %v2152_v53 = vsel %vm1392_vm9, %v7140_v16, 0.0 }
 0x6ed   : > { %2601 = vmatpush.bf16.msra.mxu0 %v2557_v37  ;;  %v7144_v4 = vpop.eup %5509 }
 0x6ee   : > { %v2489_v56 = vsel %vm1392_vm9, %v7144_v4, 0.0 }
 0x6f0   : > { %5037 = vmatmul.msk.bf16.vlgmr.msra.gmra.mxu0 %vm1392_vm9, %v2550_v2 }
 0x6f2   : > { %2481 = vadd.xlane.f32.xlu2 %v2480_v17 }
 0x6f3   : > { %v1962_v21 = vpop.f32.mrf.mxu0 }
 0x6fa   : > { %2147 = vadd.xlane.f32.xlu2 %v2146_v60 }
 0x702   : > { %2093 = vmax.xlane.f32.xlu2 %v2092_v45 }
 0x70a   : > { %2153 = vadd.xlane.f32.xlu2 %v2152_v53 }
 0x70c   : > { %v2130_v34 = vpop.xlane.xlu2 %2129 }
 0x70d   : > { %5511 = vrcp.f32 %v2130_v34 }
 0x712   : > { %2490 = vadd.xlane.f32.xlu2 %v2489_v56 }
 0x713   : > { %v5512_v63 = vpop.eup %5511 }
 0x714   : > { %v2223_v6 = vpop.permute.xlu2 %2222  ;;  %v2133_v27 = vpop.xlane.xlu0 %2132  ;;  %v2172_v37 = vmul.f32 %v5512_v63, %v7032_v8 }
 0x715   : > { %5513 = vrcp.f32 %v2133_v27  ;;  %2267 = vmatpush.bf16.msrb.mxu1 %v2223_v6 }
 0x716   : > { %v2183_v17 = vpack.c.bf16 %v2172_v37, %v2172_v37 }
 0x718   : > { %v2205_v60 = vunpack.c.l.b16 %v2183_v17 }
 0x71b   : > { %v5514_v2 = vpop.eup %5513 }
 0x71c   : > { %v2173_v54 = vmul.f32 %v5514_v2, %v7037_v10  ;;  %v2136_v21 = vpop.xlane.xlu0 %2135 }
 0x71d   : > { %5515 = vrcp.f32 %v2136_v21 }
 0x71e   : > { %v2184_v52 = vpack.c.bf16 %v2173_v54, %v2173_v54 }
 0x720   : > { %v2206_v42 = vunpack.c.l.b16 %v2184_v52 }
 0x722   : > { %v2216_v0 = vpack.c.b16 %v2206_v42, %v2205_v60  ;;  %v8379_v60 = vpack.i.bf16 %v7020_v50, %v7017_v62 }
 0x723   : > { %v5516_v45 = vpop.eup %5515 }
 0x724   : > { %5025 = vmatmul.msk.bf16.vlgmr.msrb.gmra.mxu1 %vm1392_vm9, %v2216_v0  ;;  %v2139_v22 = vpop.xlane.xlu0 %2138  ;;  %v2174_v8 = vmul.f32 %v5516_v45, %v7042_v25 }
 0x725   : > { %5517 = vrcp.f32 %v2139_v22 }
 0x726   : > { %v2185_v6 = vpack.c.bf16 %v2174_v8, %v2174_v8 }
 0x728   : > { %v2207_v63 = vunpack.c.l.b16 %v2185_v6 }
 0x72a   : > { %5271 = vrot.lane.b32.xlu2 %v5270_v19, %s5814_s0 }
 0x72b   : > { %v5518_v10 = vpop.eup %5517 }
 0x72c   : > { %v2142_v53 = vpop.xlane.xlu1 %2141  ;;  %v2479_v34 = vpop.xlane.xlu0 %2478  ;;  %v2175_v56 = vmul.f32 %v5518_v10, %v7051_v24  ;;  %v8378_v24 = vpack.i.bf16 %v7006_v44, %v6993_v59 }
 0x72d   : > { %5519 = vrcp.f32 %v2142_v53 }
 0x72e   : > { %v2186_v27 = vpack.c.bf16 %v2175_v56, %v2175_v56 }
 0x730   : > { %v2208_v37 = vunpack.c.l.b16 %v2186_v27 }
 0x732   : > { %5286 = vrot.lane.b32.xlu2 %v5285_v33, %s5814_s0  ;;  %v2217_v20 = vpack.c.b16 %v2208_v37, %v2207_v63 }
 0x733   : > { %v5520_v25 = vpop.eup %5519 }
 0x734   : > { %5026 = vmatmul.msk.bf16.gmra.mxu1 %vm1392_vm9, %v2217_v20  ;;  %v2145_v13 = vpop.xlane.xlu0 %2144  ;;  %v2176_v2 = vmul.f32 %v5520_v25, %v7064_v61 }
 0x735   : > { %5521 = vrcp.f32 %v2145_v13 }
 0x736   : > { %v2187_v52 = vpack.c.bf16 %v2176_v2, %v2176_v2  ;;  %5523 = vrcp.f32 %v2470_v38 }
 0x738   : > { %v2209_v14 = vunpack.c.l.b16 %v2187_v52 }
 0x73a   : > { %5301 = vrot.lane.b32.xlu2 %v8378_v24, %s5814_s0 }
 0x73b   : > { %v5522_v17 = vpop.eup %5521 }
 0x73c   : > { %v2485_v54 = vpop.xlane.xlu0 %2484  ;;  %v2177_v21 = vmul.f32 %v5522_v17, %v7072_v35  ;;  %v5524_v45 = vpop.eup %5523 }
 0x73d   : > { %v2508_v30 = vmul.f32 %v5524_v45, %v7010_v46 }
 0x73e   : > { %v2188_v23 = vpack.c.bf16 %v2177_v21, %v2177_v21 }
 0x740   : > { %v2210_v33 = vunpack.c.l.b16 %v2188_v23 }
 0x742   : > { %5316 = vrot.lane.b32.xlu2 %v8379_v60, %s5814_s0  ;;  %v2218_v42 = vpack.c.b16 %v2210_v33, %v2209_v14 }
 0x744   : > { %5027 = vmatmul.msk.bf16.gmra.mxu1 %vm1392_vm9, %v2218_v42  ;;  %v2151_v61 = vpop.xlane.xlu0 %2150 }
 0x74a   : > { %5331 = vrot.lane.b32.xlu2 %v5330_v36, %s5814_s0 }
 0x74c   : > { %v2428_v59 = vpop.xlane.xlu0 %2427 }
 0x74d   : > { %v2422_v44 = vpop.xlane.xlu2 %2421  ;;  %v2439_v0 = vsub.f32 %v7089_v3, %v2428_v59  ;;  %v2519_v3 = vpack.c.bf16 %v2508_v30, %v2508_v30 }
 0x74e   : > { %v2437_v35 = vsub.f32 %v7093_v9, %v2422_v44 }
 0x74f   : > { %v2460_v62 = vmul.f32 1.442695, %v2439_v0  ;;  %v2541_v10 = vunpack.c.l.b16 %v2519_v3 }
 0x750   : > { %v2456_v22 = vmul.f32 1.442695, %v2437_v35 }
 0x752   : > { %5525 = vpow2.f32 %v2456_v22  ;;  %2663 = vrot.lane.b32.xlu2 %v7121_v49, %s5814_s0 }
 0x754   : > { %v2157_v33 = vpop.xlane.xlu1 %2156 }
 0x755   : > { %v2473_v50 = vpop.xlane.xlu2 %2472 }
 0x756   : > { %5527 = vrcp.f32 %v2473_v50 }
 0x757   : > { %5529 = vpow2.f32 %v2460_v62 }
 0x758   : > { %v7180_v19 = vpop.eup %5525 }
 0x759   : > { %v2486_v18 = vsel %vm1392_vm9, %v7180_v19, 0.0 }
 0x75a   : > { %2487 = vadd.xlane.f32.xlu0 %v2486_v18 }
 0x75c   : > { %v5528_v36 = vpop.eup %5527 }
 0x75d   : > { %v2509_v9 = vmul.f32 %v5528_v36, %v7104_v11  ;;  %v2476_v38 = vpop.xlane.xlu2 %2475  ;;  %v7186_v8 = vpop.eup %5529 }
 0x75e   : > { %5531 = vrcp.f32 %v2476_v38  ;;  %v2492_v56 = vsel %vm1392_vm9, %v7186_v8, 0.0 }
 0x75f   : > { %v2520_v49 = vpack.c.bf16 %v2509_v9, %v2509_v9  ;;  %5533 = vrcp.f32 %v2479_v34 }
 0x760   : > { %5535 = vrcp.f32 %v2151_v61 }
 0x761   : > { %v2542_v53 = vunpack.c.l.b16 %v2520_v49 }
 0x762   : > { %2493 = vadd.xlane.f32.xlu0 %v2492_v56 }
 0x763   : > { %v2551_v46 = vpack.c.b16 %v2542_v53, %v2541_v10 }
 0x764   : > { %v5532_v6 = vpop.eup %5531 }
 0x765   : > { %v2482_v27 = vpop.xlane.xlu2 %2481  ;;  %5038 = vmatmul.msk.bf16.gmra.mxu0 %vm1392_vm9, %v2551_v46  ;;  %v5534_v63 = vpop.eup %5533  ;;  %v2510_v11 = vmul.f32 %v5532_v6, %v7116_v26 }
 0x766   : > { %v2511_v37 = vmul.f32 %v5534_v63, %v7061_v7  ;;  %5537 = vrcp.f32 %v2482_v27  ;;  %v5536_v2 = vpop.eup %5535 }
 0x767   : > { %v2521_v20 = vpack.c.bf16 %v2510_v11, %v2510_v11  ;;  %v2179_v21 = vmul.f32 %v5536_v2, %v7081_v28 }
 0x768   : > { %v2522_v13 = vpack.c.bf16 %v2511_v37, %v2511_v37 }
 0x769   : > { %v2543_v24 = vunpack.c.l.b16 %v2521_v20  ;;  %v2190_v42 = vpack.c.bf16 %v2179_v21, %v2179_v21  ;;  %v5128_v21 = vld [vmem:[%s6015_s21 + $0x8] sm:$0xff] }
 0x76a   : > { %v2544_v17 = vunpack.c.l.b16 %v2522_v13  ;;  %2849 = vmatpush.bf16.msra.mxu2 %v5128_v21 }
 0x76b   : > { %v2212_v62 = vunpack.c.l.b16 %v2190_v42 }
 0x76c   : > { %v5538_v52 = vpop.eup %5537  ;;  %v2552_v23 = vpack.c.b16 %v2544_v17, %v2543_v24 }
 0x76d   : > { %v2148_v34 = vpop.xlane.xlu2 %2147  ;;  %v2603_v25 = vpop.f32.mrf.mxu0 }
 0x76e   : > { %5539 = vrcp.f32 %v2148_v34 }
 0x76f   : > { %5541 = vrcp.f32 %v2485_v54  ;;  %v2512_v54 = vmul.f32 %v5538_v52, %v7123_v43 }
 0x770   : > { %5543 = vrcp.f32 %v2157_v33 }
 0x771   : > { %v2523_v50 = vpack.c.bf16 %v2512_v54, %v2512_v54 }
 0x773   : > { %v2545_v43 = vunpack.c.l.b16 %v2523_v50 }
 0x774   : > { %v5540_v14 = vpop.eup %5539 }
 0x775   : > { %v2094_v26 = vpop.xlane.xlu2 %2093  ;;  %v2605_v60 = vpop.f32.mrf.mxu0  ;;  %5039 = vmatmul.msk.bf16.gmra.mxu0 %vm1392_vm9, %v2552_v23  ;;  %v2178_v7 = vmul.f32 %v5540_v14, %v7128_v55 }
 0x776   : > { %v5542_v61 = vpop.eup %5541  ;;  %v2105_v59 = vsub.f32 %v7135_v32, %v2094_v26  ;;  %v5280_v44 = vpack.i.bf16 %v2605_v60, %v2603_v25 }
 0x777   : > { %v2189_v35 = vpack.c.bf16 %v2178_v7, %v2178_v7  ;;  %v2513_v0 = vmul.f32 %v5542_v61, %v7076_v5  ;;  %v5544_v32 = vpop.eup %5543 }
 0x778   : > { %v2126_v28 = vmul.f32 1.442695, %v2105_v59  ;;  %5281 = vrot.lane.b32.xlu0 %v5280_v44, %s5815_s20  ;;  %v2181_v5 = vmul.f32 %v5544_v32, %v7106_v51 }
 0x779   : > { %v2211_v22 = vunpack.c.l.b16 %v2189_v35  ;;  %v2524_v45 = vpack.c.bf16 %v2513_v0, %v2513_v0 }
 0x77a   : > { %5545 = vpow2.f32 %v2126_v28  ;;  %v2192_v10 = vpack.c.bf16 %v2181_v5, %v2181_v5 }
 0x77b   : > { %v2219_v55 = vpack.c.b16 %v2212_v62, %v2211_v22  ;;  %v2546_v36 = vunpack.c.l.b16 %v2524_v45 }
 0x77c   : > { %v2214_v46 = vunpack.c.l.b16 %v2192_v10 }
 0x77d   : > { %v2154_v30 = vpop.xlane.xlu2 %2153  ;;  %5028 = vmatmul.msk.bf16.gmra.mxu1 %vm1392_vm9, %v2219_v55  ;;  %v2553_v9 = vpack.c.b16 %v2546_v36, %v2545_v43  ;;  %v5127_v43 = vld [vmem:[%s6015_s21] sm:$0xff]  ;;  %s8390_s21 = scalar_lea.vmem %s8304_s8, %s5995_s23  ;;  %s8391_s23 = sld [smem:[#allocation9_spill]] }
 0x77e   : > { %5547 = vrcp.f32 %v2154_v30  ;;  %2850 = vmatpush.bf16.msra.mxu2 %v5127_v43 }
 0x780   : > { %v7201_v18 = vpop.eup %5545 }
 0x781   : > { %v2158_v3 = vsel %vm1392_vm9, %v7201_v18, 0.0 }
 0x782   : > { %2159 = vadd.xlane.f32.xlu1 %v2158_v3 }
 0x783   : > { %p5103_p1 = scmp.ne.s32.totalorder %s8391_s23, 1 }
 0x784   : > { %v5548_v38 = vpop.eup %5547  ;;  %s8392_s22 = sld [smem:[#allocation29_spill]] (!%p5103_p1) }
 0x785   : > { %5040 = vmatmul.msk.bf16.gmra.mxu0 %vm1392_vm9, %v2553_v9  ;;  %v2180_v49 = vmul.f32 %v5548_v38, %v7140_v16  ;;  %v2491_v13 = vpop.xlane.xlu2 %2490 }
 0x786   : > { %5549 = vrcp.f32 %v2491_v13 }
 0x787   : > { %v2191_v53 = vpack.c.bf16 %v2180_v49, %v2180_v49 }
 0x789   : > { %v2213_v56 = vunpack.c.l.b16 %v2191_v53 }
 0x78a   : > { %s8393_s19 = smov (!%p5103_p1), %s8392_s22 }
 0x78b   : > { %v2220_v6 = vpack.c.b16 %v2214_v46, %v2213_v56 }
 0x78c   : > { %v5550_v24 = vpop.eup %5549 }
 0x78d   : > { %5029 = vmatmul.msk.bf16.gmra.mxu1 %vm1392_vm9, %v2220_v6  ;;  %v2515_v17 = vmul.f32 %v5550_v24, %v7144_v4 }
 0x78f   : > { %v2526_v23 = vpack.c.bf16 %v2515_v17, %v2515_v17 }
 0x791   : > { %v2548_v60 = vunpack.c.l.b16 %v2526_v23 }
 0x7a1   : > { %v2269_v27 = vpop.f32.mrf.mxu1 }
 0x7a9   : > { %v2271_v63 = vpop.f32.mrf.mxu1 }
 0x7aa   : > { %v5275_v11 = vpack.i.bf16 %v2271_v63, %v2269_v27 }
 0x7ac   : > { %5276 = vrot.lane.b32.xlu1 %v5275_v11, %s5816_s3 }
 0x7b1   : > { %v2274_v51 = vpop.f32.mrf.mxu1 }
 0x7b9   : > { %v2276_v37 = vpop.f32.mrf.mxu1 }
 0x7ba   : > { %v5290_v20 = vpack.i.bf16 %v2276_v37, %v2274_v51 }
 0x7bc   : > { %5291 = vrot.lane.b32.xlu0 %v5290_v20, %s5816_s3 }
 0x7c1   : > { %v2279_v16 = vpop.f32.mrf.mxu1 }
 0x7c9   : > { %v2281_v34 = vpop.f32.mrf.mxu1 }
 0x7ca   : > { %v5305_v25 = vpack.i.bf16 %v2281_v34, %v2279_v16 }
 0x7cc   : > { %5306 = vrot.lane.b32.xlu0 %v5305_v25, %s5816_s3 }
 0x7cd   : > { %v2488_v2 = vpop.xlane.xlu0 %2487 }
 0x7ce   : > { %5551 = vrcp.f32 %v2488_v2 }
 0x7d4   : > { %v5552_v52 = vpop.eup %5551 }
 0x7d5   : > { %v2514_v14 = vmul.f32 %v5552_v52, %v7180_v19  ;;  %v2494_v33 = vpop.xlane.xlu0 %2493 }
 0x7d6   : > { %5553 = vrcp.f32 %v2494_v33 }
 0x7d7   : > { %v2525_v26 = vpack.c.bf16 %v2514_v14, %v2514_v14 }
 0x7d9   : > { %v2547_v7 = vunpack.c.l.b16 %v2525_v26 }
 0x7db   : > { %v2554_v42 = vpack.c.b16 %v2548_v60, %v2547_v7 }
 0x7dc   : > { %v5554_v61 = vpop.eup %5553 }
 0x7dd   : > { %5041 = vmatmul.msk.bf16.gmra.mxu0 %vm1392_vm9, %v2554_v42  ;;  %v2516_v59 = vmul.f32 %v5554_v61, %v7186_v8 }
 0x7df   : > { %v2527_v54 = vpack.c.bf16 %v2516_v59, %v2516_v59 }
 0x7e1   : > { %v2549_v4 = vunpack.c.l.b16 %v2527_v54 }
 0x7e2   : > { %v2608_v44 = vpop.f32.mrf.mxu0 }
 0x7e3   : > { %v2555_v0 = vpack.c.b16 %v2549_v4, %v2549_v4 }
 0x7ea   : > { %v2610_v35 = vpop.f32.mrf.mxu0  ;;  %v5282_v27 = vpop.permute.xlu0 %5281 }
 0x7eb   : > { %v5295_v28 = vpack.i.bf16 %v2610_v35, %v2608_v44  ;;  %v5284_v16 = vunpack.i.h.bf16 %v5282_v27  ;;  %v5283_v13 = vunpack.i.l.bf16 %v5282_v27 }
 0x7ed   : > { %5296 = vrot.lane.b32.xlu1 %v5295_v28, %s5815_s20  ;;  %5042 = vmatmul.msk.bf16.gmra.mxu0 %vm1392_vm9, %v2555_v0 }
 0x7f2   : > { %v2613_v19 = vpop.f32.mrf.mxu0 }
 0x7f5   : > { %v2160_v22 = vpop.xlane.xlu1 %2159 }
 0x7f6   : > { %5555 = vrcp.f32 %v2160_v22 }
 0x7fa   : > { %v2284_v62 = vpop.f32.mrf.mxu1  ;;  %v2615_v50 = vpop.f32.mrf.mxu0 }
 0x7fb   : > { %v5310_v55 = vpack.i.bf16 %v2615_v50, %v2613_v19 }
 0x7fc   : > { %v5556_v45 = vpop.eup %5555 }
 0x7fd   : > { %5311 = vrot.lane.b32.xlu1 %v5310_v55, %s5815_s20  ;;  %v2182_v8 = vmul.f32 %v5556_v45, %v7201_v18  ;;  %v5272_v18 = vpop.permute.xlu2 %5271 }
 0x7fe   : > { %v5274_v46 = vunpack.i.h.bf16 %v5272_v18  ;;  %v5273_v6 = vunpack.i.l.bf16 %v5272_v18 }
 0x7ff   : > { %v2193_v30 = vpack.c.bf16 %v2182_v8, %v2182_v8 }
 0x800   : > { %v2765_v37 = vsel %vm1317_vm6, %v6859_v39, %v5274_v46  ;;  %v2764_v20 = vsel %vm1317_vm6, %v6853_v1, %v5273_v6 }
 0x801   : > { %v2215_v32 = vunpack.c.l.b16 %v2193_v30 }
 0x802   : > { %v2286_v36 = vpop.f32.mrf.mxu1  ;;  %v2618_v3 = vpop.f32.mrf.mxu0 }
 0x803   : > { %v5320_v5 = vpack.i.bf16 %v2286_v36, %v2284_v62  ;;  %v2221_v9 = vpack.c.b16 %v2215_v32, %v2215_v32 }
 0x805   : > { %5030 = vmatmul.msk.bf16.gmra.mxu1 %vm1392_vm9, %v2221_v9  ;;  %5321 = vrot.lane.b32.xlu0 %v5320_v5, %s5816_s3  ;;  %v5287_v21 = vpop.permute.xlu2 %5286 }
 0x806   : > { %v5289_v39 = vunpack.i.h.bf16 %v5287_v21  ;;  %v5288_v14 = vunpack.i.l.bf16 %v5287_v21 }
 0x808   : > { %v2767_v60 = vsel %vm1317_vm6, %v6878_v15, %v5289_v39  ;;  %v2766_v7 = vsel %vm1317_vm6, %v6871_v47, %v5288_v14 }
 0x80a   : > { %v2289_v38 = vpop.f32.mrf.mxu1  ;;  %v2620_v49 = vpop.f32.mrf.mxu0 }
 0x80b   : > { %v5325_v10 = vpack.i.bf16 %v2620_v49, %v2618_v3 }
 0x80d   : > { %5326 = vrot.lane.b32.xlu1 %v5325_v10, %s5815_s20  ;;  %v5302_v15 = vpop.permute.xlu2 %5301 }
 0x80e   : > { %v5304_v22 = vunpack.i.h.bf16 %v5302_v15  ;;  %v5303_v62 = vunpack.i.l.bf16 %v5302_v15 }
 0x810   : > { %v2769_v8 = vsel %vm1317_vm6, %v6895_v57, %v5304_v22  ;;  %v2768_v30 = vsel %vm1317_vm6, %v6890_v48, %v5303_v62 }
 0x812   : > { %v2291_v53 = vpop.f32.mrf.mxu1 }
 0x813   : > { %v5335_v56 = vpack.i.bf16 %v2291_v53, %v2289_v38 }
 0x815   : > { %5336 = vrot.lane.b32.xlu0 %v5335_v56, %s5816_s3  ;;  %v5317_v10 = vpop.permute.xlu2 %5316 }
 0x816   : > { %v5319_v57 = vunpack.i.h.bf16 %v5317_v10  ;;  %v5318_v56 = vunpack.i.l.bf16 %v5317_v10 }
 0x818   : > { %v2771_v6 = vsel %vm1317_vm6, %v6911_v58, %v5319_v57  ;;  %v2770_v27 = vsel %vm1317_vm6, %v6905_v40, %v5318_v56  ;;  %v7270_v40 = vld [vmem:[%s8380_s30] ss:$0 sm:$0xff] }
 0x81e   : > { %v5277_v63 = vpop.permute.xlu1 %5276 }
 0x81f   : > { %v5279_v11 = vunpack.i.h.bf16 %v5277_v63  ;;  %v5278_v51 = vunpack.i.l.bf16 %v5277_v63 }
 0x821   : > { %v2777_v34 = vsel %vm2775_vm10, %v2765_v37, %v5279_v11  ;;  %v2776_v25 = vsel %vm2775_vm10, %v2764_v20, %v5278_v51 }
 0x822   : > { %v2788_v2 = vsel %vm2787_vm11, %v2776_v25, %v5283_v13  ;;  %v2789_v24 = vsel %vm2787_vm11, %v2777_v34, %v5284_v16 }
 0x823   : > { %v2799_v17 = vpack.c.bf16 %v2789_v24, %v2788_v2 }
 0x825   : > { %5051 = vmatmul.msk.bf16.vlgmr.msra.gmra.mxu2 %vm906_vm1, %v2799_v17 }
 0x82e   : > { %v5292_v52 = vpop.permute.xlu0 %5291 }
 0x82f   : > { %v5294_v33 = vunpack.i.h.bf16 %v5292_v52  ;;  %v5293_v1 = vunpack.i.l.bf16 %v5292_v52 }
 0x831   : > { %v2779_v59 = vsel %vm2775_vm10, %v2767_v60, %v5294_v33  ;;  %v2778_v44 = vsel %vm2775_vm10, %v2766_v7, %v5293_v1 }
 0x83e   : > { %v5307_v19 = vpop.permute.xlu0 %5306 }
 0x83f   : > { %v5309_v50 = vunpack.i.h.bf16 %v5307_v19  ;;  %v5308_v55 = vunpack.i.l.bf16 %v5307_v19 }
 0x841   : > { %v2781_v36 = vsel %vm2775_vm10, %v2769_v8, %v5309_v50  ;;  %v2780_v3 = vsel %vm2775_vm10, %v2768_v30, %v5308_v55 }
 0x85a   : > { %v2623_v23 = vpop.f32.mrf.mxu0 }
 0x85f   : > { %v5297_v26 = vpop.permute.xlu1 %5296 }
 0x860   : > { %v5299_v42 = vunpack.i.h.bf16 %v5297_v26  ;;  %v5298_v61 = vunpack.i.l.bf16 %v5297_v26 }
 0x862   : > { %v2790_v54 = vsel %vm2787_vm11, %v2778_v44, %v5298_v61  ;;  %v2791_v4 = vsel %vm2787_vm11, %v2779_v59, %v5299_v42  ;;  %v2625_v35 = vpop.f32.mrf.mxu0 }
 0x863   : > { %v2800_v28 = vpack.c.bf16 %v2791_v4, %v2790_v54  ;;  %v5340_v0 = vpack.i.bf16 %v2625_v35, %v2623_v23  ;;  %v5332_v23 = vpop.permute.xlu2 %5331 }
 0x864   : > { %v5334_v14 = vunpack.i.h.bf16 %v5332_v23  ;;  %v5333_v33 = vunpack.i.l.bf16 %v5332_v23 }
 0x865   : > { %5341 = vrot.lane.b32.xlu1 %v5340_v0, %s5815_s20  ;;  %5052 = vmatmul.msk.bf16.gmra.mxu2 %vm906_vm1, %v2800_v28 }
 0x866   : > { %v2773_v7 = vsel %vm1317_vm6, %v6920_v41, %v5334_v14  ;;  %v2772_v42 = vsel %vm1317_vm6, %v6918_v29, %v5333_v33 }
 0x86a   : > { %v2628_v47 = vpop.f32.mrf.mxu0 }
 0x86d   : > { %2751 = vrot.lane.b32.xlu1 %v2628_v47, %s5815_s20  ;;  %v2664_v47 = vpop.permute.xlu2 %2663 }
 0x86e   : > { %v2774_v62 = vsel %vm1317_vm6, %v6922_v12, %v2664_v47 }
 0x86f   : > { %v5312_v45 = vpop.permute.xlu1 %5311 }
 0x870   : > { %v5314_v32 = vunpack.i.h.bf16 %v5312_v45  ;;  %v5313_v43 = vunpack.i.l.bf16 %v5312_v45 }
 0x872   : > { %v2792_v5 = vsel %vm2787_vm11, %v2780_v3, %v5313_v43  ;;  %v2793_v9 = vsel %vm2787_vm11, %v2781_v36, %v5314_v32  ;;  %v2630_v38 = vpop.f32.mrf.mxu0 }
 0x873   : > { %v2801_v49 = vpack.c.bf16 %v2793_v9, %v2792_v5 }
 0x875   : > { %5053 = vmatmul.msk.bf16.gmra.mxu2 %vm906_vm1, %v2801_v49 }
 0x877   : > { %v5322_v53 = vpop.permute.xlu0 %5321 }
 0x878   : > { %v5324_v18 = vunpack.i.h.bf16 %v5322_v53  ;;  %v5323_v48 = vunpack.i.l.bf16 %v5322_v53 }
 0x87a   : > { %v2783_v51 = vsel %vm2775_vm10, %v2771_v6, %v5324_v18  ;;  %v2782_v37 = vsel %vm2775_vm10, %v2770_v27, %v5323_v48 }
 0x87f   : > { %v5327_v46 = vpop.permute.xlu1 %5326 }
 0x880   : > { %v5329_v63 = vunpack.i.h.bf16 %v5327_v46  ;;  %v5328_v11 = vunpack.i.l.bf16 %v5327_v46 }
 0x882   : > { %v2794_v20 = vsel %vm2787_vm11, %v2782_v37, %v5328_v11  ;;  %v2795_v16 = vsel %vm2787_vm11, %v2783_v51, %v5329_v63  ;;  %v2294_v13 = vpop.f32.mrf.mxu1 }
 0x883   : > { %v2802_v34 = vpack.c.bf16 %v2795_v16, %v2794_v20  ;;  %2707 = vrot.lane.b32.xlu0 %v2294_v13, %s5816_s3 }
 0x885   : > { %5054 = vmatmul.msk.bf16.gmra.mxu2 %vm906_vm1, %v2802_v34 }
 0x887   : > { %v5337_v39 = vpop.permute.xlu0 %5336 }
 0x888   : > { %v5339_v1 = vunpack.i.h.bf16 %v5337_v39  ;;  %v5338_v26 = vunpack.i.l.bf16 %v5337_v39 }
 0x88a   : > { %v2296_v58 = vpop.f32.mrf.mxu1  ;;  %v2785_v44 = vsel %vm2775_vm10, %v2773_v7, %v5339_v1  ;;  %v2784_v54 = vsel %vm2775_vm10, %v2772_v42, %v5338_v26 }
 0x8a8   : > { %v2852_v25 = vpop.f32.mrf.mxu2 }
 0x8a9   : > { %v2853_v2 = vadd.f32 %v7270_v40, %v2852_v25 }
 0x8ab   : > { %v2883_v24 = vsel %vm906_vm1, %v2853_v2, 0.0 }
 0x8ac   : > { %2884 = vadd.xlane.f32.xlu2 %v2883_v24 }
 0x8b0   : > { %v2854_v17 = vpop.f32.mrf.mxu2 }
 0x8b1   : > { %v2855_v21 = vadd.f32 %v7270_v40, %v2854_v17 }
 0x8b3   : > { %v2886_v52 = vsel %vm906_vm1, %v2855_v21, 0.0 }
 0x8b4   : > { %2887 = vadd.xlane.f32.xlu0 %v2886_v52 }
 0x8d7   : > { %v5342_v60 = vpop.permute.xlu1 %5341 }
 0x8d8   : > { %v5344_v61 = vunpack.i.h.bf16 %v5342_v60  ;;  %v5343_v59 = vunpack.i.l.bf16 %v5342_v60 }
 0x8da   : > { %v2796_v4 = vsel %vm2787_vm11, %v2784_v54, %v5343_v59  ;;  %v2797_v35 = vsel %vm2787_vm11, %v2785_v44, %v5344_v61 }
 0x8db   : > { %v2803_v28 = vpack.c.bf16 %v2797_v35, %v2796_v4 }
 0x8dd   : > { %5055 = vmatmul.msk.bf16.gmra.mxu2 %vm906_vm1, %v2803_v28 }
 0x8df   : > { %v2752_v55 = vpop.permute.xlu1 %2751 }
 0x8e8   : > { %v2857_v0 = vpop.f32.mrf.mxu2 }
 0x8e9   : > { %v2858_v15 = vadd.f32 %v7270_v40, %v2857_v0 }
 0x8eb   : > { %v2889_v41 = vsel %vm906_vm1, %v2858_v15, 0.0 }
 0x8ec   : > { %2890 = vadd.xlane.f32.xlu1 %v2889_v41 }
 0x8f0   : > { %v2859_v29 = vpop.f32.mrf.mxu2 }
 0x8f1   : > { %v2860_v19 = vadd.f32 %v7270_v40, %v2859_v29 }
 0x8f3   : > { %v2892_v22 = vsel %vm906_vm1, %v2860_v19, 0.0 }
 0x8f4   : > { %2893 = vadd.xlane.f32.xlu2 %v2892_v22 }
 0x8f5   : > { %v2708_v50 = vpop.permute.xlu0 %2707 }
 0x8f6   : > { %v2786_v45 = vsel %vm2775_vm10, %v2774_v62, %v2708_v50 }
 0x8f7   : > { %v2798_v8 = vsel %vm2787_vm11, %v2786_v45, %v2752_v55 }
 0x8f8   : > { %v2804_v30 = vpack.c.bf16 %v2798_v8, %v2798_v8  ;;  %v2862_v32 = vpop.f32.mrf.mxu2 }
 0x8f9   : > { %v2863_v43 = vadd.f32 %v7270_v40, %v2862_v32 }
 0x8fa   : > { %5056 = vmatmul.msk.bf16.gmra.mxu2 %vm906_vm1, %v2804_v30 }
 0x8fb   : > { %v2895_v36 = vsel %vm906_vm1, %v2863_v43, 0.0 }
 0x8fc   : > { %2896 = vadd.xlane.f32.xlu0 %v2895_v36 }
 0x900   : > { %v2864_v3 = vpop.f32.mrf.mxu2 }
 0x901   : > { %v2865_v5 = vadd.f32 %v7270_v40, %v2864_v3 }
 0x903   : > { %v2898_v12 = vsel %vm906_vm1, %v2865_v5, 0.0 }
 0x904   : > { %2899 = vadd.xlane.f32.xlu1 %v2898_v12 }
 0x908   : > { %v2867_v9 = vpop.f32.mrf.mxu2 }
 0x909   : > { %v2868_v38 = vadd.f32 %v7270_v40, %v2867_v9 }
 0x90b   : > { %v2901_v49 = vsel %vm906_vm1, %v2868_v38, 0.0 }
 0x90c   : > { %2902 = vadd.xlane.f32.xlu1 %v2901_v49 }
 0x910   : > { %v2869_v48 = vpop.f32.mrf.mxu2 }
 0x911   : > { %v2870_v27 = vadd.f32 %v7270_v40, %v2869_v48  ;;  %v7380_v48 = vld [vmem:[%s848_s27] ss:$0 sm:$0xff]  ;;  %s8394_s27 = sld [smem:[#allocation30_spill]] (!%p5103_p1) }
 0x913   : > { %v2904_v37 = vsel %vm906_vm1, %v2870_v27, 0.0 }
 0x91f   : > { %v2885_v10 = vpop.xlane.xlu2 %2884 }
 0x920   : > { %v2916_v53 = vmul.f32 %v2885_v10, %v6108_v31 }
 0x922   : > { %v7301_v57 = vsub.f32 %v2853_v2, %v2916_v53  ;;  %v7372_v53 = vld [vmem:[%s8381_s28] ss:$0 sm:$0xff] }
 0x924   : > { %v2938_v56 = vmul.f32 %v7301_v57, %v7301_v57 }
 0x926   : > { %v2949_v18 = vsel %vm906_vm1, %v2938_v56, 0.0 }
 0x927   : > { %v2888_v46 = vpop.xlane.xlu0 %2887  ;;  %2950 = vadd.xlane.f32.xlu2 %v2949_v18 }
 0x928   : > { %v2917_v6 = vmul.f32 %v2888_v46, %v6108_v31 }
 0x92a   : > { %v7308_v63 = vsub.f32 %v2855_v21, %v2917_v6 }
 0x92c   : > { %v2939_v11 = vmul.f32 %v7308_v63, %v7308_v63 }
 0x92e   : > { %v2952_v51 = vsel %vm906_vm1, %v2939_v11, 0.0  ;;  %v5691_v11 = vld [vmem:[#allocation2] sm:$0xff] }
 0x92f   : > { %2953 = vadd.xlane.f32.xlu0 %v2952_v51  ;;  %2905 = vadd.xlane.f32.xlu2 %v2904_v37 }
 0x95f   : > { %v2891_v20 = vpop.xlane.xlu1 %2890 }
 0x960   : > { %v2918_v16 = vmul.f32 %v2891_v20, %v6108_v31  ;;  %v2872_v13 = vpop.f32.mrf.mxu2 }
 0x961   : > { %v7316_v34 = vadd.f32 %v7270_v40, %v2872_v13 }
 0x962   : > { %v7318_v58 = vsub.f32 %v2858_v15, %v2918_v16 }
 0x963   : > { %v2907_v25 = vsel %vm906_vm1, %v7316_v34, 0.0 }
 0x964   : > { %2908 = vadd.xlane.f32.xlu2 %v2907_v25  ;;  %v2940_v2 = vmul.f32 %v7318_v58, %v7318_v58 }
 0x966   : > { %v2955_v24 = vsel %vm906_vm1, %v2940_v2, 0.0 }
 0x967   : > { %2956 = vadd.xlane.f32.xlu0 %v2955_v24  ;;  %v2894_v17 = vpop.xlane.xlu2 %2893 }
 0x968   : > { %v2919_v21 = vmul.f32 %v2894_v17, %v6108_v31  ;;  %v2874_v52 = vpop.f32.mrf.mxu2 }
 0x969   : > { %v7329_v39 = vadd.f32 %v7270_v40, %v2874_v52 }
 0x96a   : > { %v7326_v23 = vsub.f32 %v2860_v19, %v2919_v21 }
 0x96b   : > { %v2910_v33 = vsel %vm906_vm1, %v7329_v39, 0.0 }
 0x96c   : > { %v2941_v14 = vmul.f32 %v7326_v23, %v7326_v23 }
 0x96e   : > { %v2958_v1 = vsel %vm906_vm1, %v2941_v14, 0.0 }
 0x96f   : > { %2911 = vadd.xlane.f32.xlu0 %v2910_v33  ;;  %v2897_v26 = vpop.xlane.xlu0 %2896  ;;  %2959 = vadd.xlane.f32.xlu1 %v2958_v1 }
 0x970   : > { %v2920_v60 = vmul.f32 %v2897_v26, %v6108_v31 }
 0x972   : > { %v7337_v7 = vsub.f32 %v2863_v43, %v2920_v60 }
 0x974   : > { %v2942_v42 = vmul.f32 %v7337_v7, %v7337_v7 }
 0x976   : > { %v2961_v61 = vsel %vm906_vm1, %v2942_v42, 0.0 }
 0x977   : > { %v2900_v59 = vpop.xlane.xlu1 %2899  ;;  %2962 = vadd.xlane.f32.xlu1 %v2961_v61 }
 0x978   : > { %v2921_v44 = vmul.f32 %v2900_v59, %v6108_v31 }
 0x97a   : > { %v7343_v54 = vsub.f32 %v2865_v5, %v2921_v44 }
 0x97c   : > { %v2943_v4 = vmul.f32 %v7343_v54, %v7343_v54 }
 0x97d   : > { %v2877_v35 = vpop.f32.mrf.mxu2 }
 0x97e   : > { %v7348_v28 = vadd.f32 %v7270_v40, %v2877_v35  ;;  %v2964_v0 = vsel %vm906_vm1, %v2943_v4, 0.0  ;;  %v5692_v4 = vld [vmem:[#allocation2 + $0x8] sm:$0xff] }
 0x97f   : > { %v2903_v15 = vpop.xlane.xlu1 %2902  ;;  %2965 = vadd.xlane.f32.xlu2 %v2964_v0 }
 0x980   : > { %v2922_v41 = vmul.f32 %v2903_v15, %v6108_v31  ;;  %v2913_v29 = vsel %vm906_vm1, %v7348_v28, 0.0 }
 0x981   : > { %2914 = vadd.xlane.f32.xlu0 %v2913_v29 }
 0x982   : > { %v7354_v19 = vsub.f32 %v2868_v38, %v2922_v41 }
 0x984   : > { %v2944_v47 = vmul.f32 %v7354_v19, %v7354_v19 }
 0x985   : > { %v2879_v22 = vpop.f32.mrf.mxu2 }
 0x986   : > { %v2967_v62 = vsel %vm906_vm1, %v2944_v47, 0.0 }
 0x987   : > { %2968 = vadd.xlane.f32.xlu1 %v2967_v62 }
 0x99a   : > { %v2951_v40 = vpop.xlane.xlu2 %2950 }
 0x99b   : > { %v2982_v50 = vmul.f32 %v2951_v40, %v6108_v31 }
 0x99d   : > { %v2993_v55 = vadd.f32 1e-05, %v2982_v50 }
 0x99f   : > { %5557 = vrsqrt.f32 %v2993_v55  ;;  %vm3010_vm13 = vweird.f32 %v2993_v55 }
 0x9a2   : > { %v2906_v45 = vpop.xlane.xlu2 %2905  ;;  %v2954_v9 = vpop.xlane.xlu0 %2953 }
 0x9a3   : > { %v2923_v8 = vmul.f32 %v2906_v45, %v6108_v31  ;;  %v2983_v10 = vmul.f32 %v2954_v9, %v6108_v31 }
 0x9a5   : > { %v5558_v30 = vpop.eup %5557  ;;  %v7361_v32 = vsub.f32 %v2870_v27, %v2923_v8  ;;  %v2994_v46 = vadd.f32 1e-05, %v2983_v10 }
 0x9a6   : > { %v3005_v43 = vmul.f32 %v5558_v30, %v2993_v55  ;;  %vm3011_vm12 = vweird.f32 %v5558_v30 }
 0x9a7   : > { %v2945_v36 = vmul.f32 %v7361_v32, %v7361_v32  ;;  %vm3012_vm14 = vmor %vm3010_vm13, %vm3011_vm12  ;;  %5559 = vrsqrt.f32 %v2994_v46  ;;  %vm3020_vm0 = vweird.f32 %v2994_v46 }
 0x9a8   : > { %v3006_v3 = vmul.f32 %v5558_v30, %v3005_v43 }
 0x9a9   : > { %v2970_v5 = vsel %vm906_vm1, %v2945_v36, 0.0 }
 0x9aa   : > { %v3007_v12 = vmul.f32 0.5, %v3006_v3  ;;  %2971 = vadd.xlane.f32.xlu2 %v2970_v5 }
 0x9ac   : > { %v3008_v38 = vsub.f32 1.5, %v3007_v12 }
 0x9ae   : > { %v3009_v49 = vmul.f32 %v5558_v30, %v3008_v38 }
 0x9b0   : > { %v3013_v56 = vsel %vm3012_vm14, %v5558_v30, %v3009_v49 }
 0x9b1   : > { %v3114_v18 = vmul.f32 %v3013_v56, %v7301_v57  ;;  %v5560_v57 = vpop.eup %5559 }
 0x9b2   : > { %v3015_v20 = vmul.f32 %v5560_v57, %v2994_v46  ;;  %vm3021_vm15 = vweird.f32 %v5560_v57 }
 0x9b3   : > { %v3128_v6 = vmul.f32 %v7372_v53, %v3114_v18  ;;  %vm3022_vm2 = vmor %vm3020_vm0, %vm3021_vm15 }
 0x9b4   : > { %v3016_v16 = vmul.f32 %v5560_v57, %v3015_v20 }
 0x9b5   : > { %v3142_v27 = vadd.f32 %v7380_v48, %v3128_v6 }
 0x9b6   : > { %v3017_v13 = vmul.f32 0.5, %v3016_v16  ;;  %v5693_v16 = vld [vmem:[#allocation2 + $0x10] sm:$0xff] }
 0x9b7   : > { %v7384_v51 = vadd.f32 %v5691_v11, %v3142_v27 }
 0x9b8   : > { %v3018_v25 = vsub.f32 1.5, %v3017_v13 }
 0x9b9   : > { %v3166_v37 = vsel %vm906_vm1, %v7384_v51, 0.0 }
 0x9ba   : > { %3167 = vadd.xlane.f32.xlu2 %v3166_v37  ;;  %v3019_v2 = vmul.f32 %v5560_v57, %v3018_v25 }
 0x9bc   : > { %v3023_v24 = vsel %vm3022_vm2, %v5560_v57, %v3019_v2 }
 0x9bd   : > { %v3115_v17 = vmul.f32 %v3023_v24, %v7308_v63 }
 0x9bf   : > { %v3129_v1 = vmul.f32 %v7372_v53, %v3115_v17 }
 0x9c1   : > { %v3143_v59 = vadd.f32 %v7380_v48, %v3129_v1 }
 0x9d7   : > { %v2909_v21 = vpop.xlane.xlu2 %2908 }
 0x9d8   : > { %v2924_v52 = vmul.f32 %v2909_v21, %v6108_v31 }
 0x9da   : > { %v7391_v14 = vsub.f32 %v7316_v34, %v2924_v52  ;;  %v2957_v33 = vpop.xlane.xlu0 %2956  ;;  %v7399_v34 = vadd.f32 %v5692_v4, %v3143_v59 }
 0x9db   : > { %v2984_v26 = vmul.f32 %v2957_v33, %v6108_v31 }
 0x9dc   : > { %v2946_v60 = vmul.f32 %v7391_v14, %v7391_v14  ;;  %v3169_v22 = vsel %vm906_vm1, %v7399_v34, 0.0 }
 0x9dd   : > { %v2995_v42 = vadd.f32 1e-05, %v2984_v26 }
 0x9de   : > { %v2973_v61 = vsel %vm906_vm1, %v2946_v60, 0.0 }
 0x9df   : > { %5561 = vrsqrt.f32 %v2995_v42  ;;  %2974 = vadd.xlane.f32.xlu0 %v2973_v61  ;;  %vm3030_vm4 = vweird.f32 %v2995_v42 }
 0x9e2   : > { %v2912_v63 = vpop.xlane.xlu0 %2911  ;;  %v2960_v44 = vpop.xlane.xlu1 %2959 }
 0x9e3   : > { %v2925_v35 = vmul.f32 %v2912_v63, %v6108_v31  ;;  %v2985_v0 = vmul.f32 %v2960_v44, %v6108_v31  ;;  %v5694_v44 = vld [vmem:[#allocation2 + $0x18] sm:$0xff] }
 0x9e5   : > { %v5562_v15 = vpop.eup %5561  ;;  %v7404_v41 = vsub.f32 %v7329_v39, %v2925_v35  ;;  %v2996_v29 = vadd.f32 1e-05, %v2985_v0 }
 0x9e6   : > { %v3025_v47 = vmul.f32 %v5562_v15, %v2995_v42  ;;  %vm3031_vm3 = vweird.f32 %v5562_v15 }
 0x9e7   : > { %5563 = vrsqrt.f32 %v2996_v29  ;;  %3170 = vadd.xlane.f32.xlu0 %v3169_v22  ;;  %v2947_v62 = vmul.f32 %v7404_v41, %v7404_v41  ;;  %vm3032_vm5 = vmor %vm3030_vm4, %vm3031_vm3  ;;  %vm3040_vm7 = vweird.f32 %v2996_v29 }
 0x9e8   : > { %v3026_v40 = vmul.f32 %v5562_v15, %v3025_v47 }
 0x9e9   : > { %v2976_v50 = vsel %vm906_vm1, %v2947_v62, 0.0 }
 0x9ea   : > { %v3027_v55 = vmul.f32 0.5, %v3026_v40  ;;  %2977 = vadd.xlane.f32.xlu1 %v2976_v50  ;;  %v2963_v45 = vpop.xlane.xlu1 %2962 }
 0x9eb   : > { %v2986_v8 = vmul.f32 %v2963_v45, %v6108_v31 }
 0x9ec   : > { %v3028_v39 = vsub.f32 1.5, %v3027_v55 }
 0x9ed   : > { %v5564_v30 = vpop.eup %5563  ;;  %v2997_v43 = vadd.f32 1e-05, %v2986_v8  ;;  %v5695_v8 = vld [vmem:[#allocation2 + $0x20] sm:$0xff] }
 0x9ee   : > { %v3029_v36 = vmul.f32 %v5562_v15, %v3028_v39  ;;  %v3035_v3 = vmul.f32 %v5564_v30, %v2996_v29  ;;  %vm3041_vm6 = vweird.f32 %v5564_v30 }
 0x9ef   : > { %5565 = vrsqrt.f32 %v2997_v43  ;;  %vm3042_vm8 = vmor %vm3040_vm7, %vm3041_vm6  ;;  %vm3050_vm10 = vweird.f32 %v2997_v43 }
 0x9f0   : > { %v3033_v5 = vsel %vm3032_vm5, %v5562_v15, %v3029_v36  ;;  %v3036_v12 = vmul.f32 %v5564_v30, %v3035_v3 }
 0x9f1   : > { %v3116_v9 = vmul.f32 %v3033_v5, %v7318_v58 }
 0x9f2   : > { %v3037_v38 = vmul.f32 0.5, %v3036_v12  ;;  %v2966_v49 = vpop.xlane.xlu2 %2965 }
 0x9f3   : > { %v2987_v10 = vmul.f32 %v2966_v49, %v6108_v31  ;;  %v3130_v56 = vmul.f32 %v7372_v53, %v3116_v9  ;;  %v5696_v49 = vld [vmem:[#allocation2 + $0x28] sm:$0xff] }
 0x9f4   : > { %v3038_v18 = vsub.f32 1.5, %v3037_v38  ;;  %v2915_v46 = vpop.xlane.xlu0 %2914 }
 0x9f5   : > { %v5566_v6 = vpop.eup %5565  ;;  %v2998_v27 = vadd.f32 1e-05, %v2987_v10  ;;  %v2926_v11 = vmul.f32 %v2915_v46, %v6108_v31  ;;  %v3144_v37 = vadd.f32 %v7380_v48, %v3130_v56 }
 0x9f6   : > { %v3039_v57 = vmul.f32 %v5564_v30, %v3038_v18  ;;  %v3045_v20 = vmul.f32 %v5566_v6, %v2997_v43  ;;  %vm3051_vm9 = vweird.f32 %v5566_v6 }
 0x9f7   : > { %5567 = vrsqrt.f32 %v2998_v27  ;;  %v7418_v58 = vsub.f32 %v7348_v28, %v2926_v11  ;;  %v7420_v13 = vadd.f32 %v5693_v16, %v3144_v37  ;;  %vm3052_vm11 = vmor %vm3050_vm10, %vm3051_vm9  ;;  %vm3060_vm13 = vweird.f32 %v2998_v27 }
 0x9f8   : > { %v3043_v25 = vsel %vm3042_vm8, %v5564_v30, %v3039_v57  ;;  %v3046_v2 = vmul.f32 %v5566_v6, %v3045_v20 }
 0x9f9   : > { %v3117_v24 = vmul.f32 %v3043_v25, %v7326_v23  ;;  %v3172_v17 = vsel %vm906_vm1, %v7420_v13, 0.0  ;;  %v2948_v21 = vmul.f32 %v7418_v58, %v7418_v58 }
 0x9fa   : > { %v3047_v52 = vmul.f32 0.5, %v3046_v2  ;;  %3173 = vadd.xlane.f32.xlu1 %v3172_v17  ;;  %v2969_v33 = vpop.xlane.xlu1 %2968 }
 0x9fb   : > { %v2988_v1 = vmul.f32 %v2969_v33, %v6108_v31  ;;  %v2979_v28 = vsel %vm906_vm1, %v2948_v21, 0.0  ;;  %v3131_v26 = vmul.f32 %v7372_v53, %v3117_v24 }
 0x9fc   : > { %v3048_v60 = vsub.f32 1.5, %v3047_v52  ;;  %2980 = vadd.xlane.f32.xlu0 %v2979_v28 }
 0x9fd   : > { %v5568_v42 = vpop.eup %5567  ;;  %v2999_v23 = vadd.f32 1e-05, %v2988_v1  ;;  %v3145_v61 = vadd.f32 %v7380_v48, %v3131_v26 }
 0x9fe   : > { %v3049_v59 = vmul.f32 %v5566_v6, %v3048_v60  ;;  %v3055_v63 = vmul.f32 %v5568_v42, %v2998_v27  ;;  %vm3061_vm12 = vweird.f32 %v5568_v42  ;;  %v5697_v27 = vld [vmem:[#allocation2 + $0x30] sm:$0xff] }
 0x9ff   : > { %5569 = vrsqrt.f32 %v2999_v23  ;;  %v7431_v4 = vadd.f32 %v5694_v44, %v3145_v61  ;;  %vm3062_vm14 = vmor %vm3060_vm13, %vm3061_vm12  ;;  %vm3070_vm0 = vweird.f32 %v2999_v23 }
 0xa00   : > { %v3053_v35 = vsel %vm3052_vm11, %v5566_v6, %v3049_v59  ;;  %v3056_v0 = vmul.f32 %v5568_v42, %v3055_v63  ;;  %v5698_v59 = vld [vmem:[#allocation2 + $0x38] sm:$0xff] }
 0xa01   : > { %v3118_v15 = vmul.f32 %v3053_v35, %v7337_v7  ;;  %v3175_v29 = vsel %vm906_vm1, %v7431_v4, 0.0 }
 0xa02   : > { %v3057_v47 = vmul.f32 0.5, %v3056_v0  ;;  %3176 = vadd.xlane.f32.xlu2 %v3175_v29 }
 0xa03   : > { %v3132_v22 = vmul.f32 %v7372_v53, %v3118_v15 }
 0xa04   : > { %v3058_v62 = vsub.f32 1.5, %v3057_v47 }
 0xa05   : > { %v5570_v40 = vpop.eup %5569  ;;  %v3146_v50 = vadd.f32 %v7380_v48, %v3132_v22 }
 0xa06   : > { %v3059_v55 = vmul.f32 %v5568_v42, %v3058_v62  ;;  %v3065_v45 = vmul.f32 %v5570_v40, %v2999_v23  ;;  %vm3071_vm15 = vweird.f32 %v5570_v40 }
 0xa07   : > { %v7438_v39 = vadd.f32 %v5695_v8, %v3146_v50  ;;  %vm3072_vm2 = vmor %vm3070_vm0, %vm3071_vm15 }
 0xa08   : > { %v3063_v7 = vsel %vm3062_vm14, %v5568_v42, %v3059_v55  ;;  %v3066_v30 = vmul.f32 %v5570_v40, %v3065_v45 }
 0xa09   : > { %v3119_v43 = vmul.f32 %v3063_v7, %v7343_v54  ;;  %v3178_v36 = vsel %vm906_vm1, %v7438_v39, 0.0 }
 0xa0a   : > { %v3067_v3 = vmul.f32 0.5, %v3066_v30  ;;  %3179 = vadd.xlane.f32.xlu1 %v3178_v36 }
 0xa0b   : > { %v3133_v5 = vmul.f32 %v7372_v53, %v3119_v43 }
 0xa0c   : > { %v3068_v12 = vsub.f32 1.5, %v3067_v3 }
 0xa0d   : > { %v3147_v9 = vadd.f32 %v7380_v48, %v3133_v5 }
 0xa0e   : > { %v3069_v38 = vmul.f32 %v5570_v40, %v3068_v12 }
 0xa0f   : > { %v7445_v10 = vadd.f32 %v5696_v49, %v3147_v9 }
 0xa10   : > { %v3073_v56 = vsel %vm3072_vm2, %v5570_v40, %v3069_v38 }
 0xa11   : > { %v3120_v54 = vmul.f32 %v3073_v56, %v7354_v19  ;;  %v3181_v18 = vsel %vm906_vm1, %v7445_v10, 0.0 }
 0xa12   : > { %3182 = vadd.xlane.f32.xlu2 %v3181_v18 }
 0xa13   : > { %v3134_v46 = vmul.f32 %v7372_v53, %v3120_v54 }
 0xa15   : > { %v3148_v6 = vadd.f32 %v7380_v48, %v3134_v46 }
 0xa17   : > { %v7452_v11 = vadd.f32 %v5697_v27, %v3148_v6 }
 0xa19   : > { %v3184_v37 = vsel %vm906_vm1, %v7452_v11, 0.0 }
 0xa1a   : > { %3185 = vadd.xlane.f32.xlu2 %v3184_v37  ;;  %v5699_v37 = vld [vmem:[#allocation2 + $0x40] sm:$0xff] }
 0xa1d   : > { %v2972_v57 = vpop.xlane.xlu2 %2971 }
 0xa1e   : > { %v2989_v20 = vmul.f32 %v2972_v57, %v6108_v31 }
 0xa20   : > { %v3000_v16 = vadd.f32 1e-05, %v2989_v20 }
 0xa22   : > { %5571 = vrsqrt.f32 %v3000_v16  ;;  %vm3080_vm4 = vweird.f32 %v3000_v16 }
 0xa28   : > { %v5572_v19 = vpop.eup %5571 }
 0xa29   : > { %v3075_v25 = vmul.f32 %v5572_v19, %v3000_v16  ;;  %vm3081_vm3 = vweird.f32 %v5572_v19 }
 0xa2a   : > { %vm3082_vm5 = vmor %vm3080_vm4, %vm3081_vm3 }
 0xa2b   : > { %v3076_v2 = vmul.f32 %v5572_v19, %v3075_v25 }
 0xa2d   : > { %v3077_v24 = vmul.f32 0.5, %v3076_v2  ;;  %v3168_v17 = vpop.xlane.xlu2 %3167 }
 0xa2e   : > { %v3199_v21 = vmul.f32 %v3168_v17, %v6108_v31 }
 0xa2f   : > { %v3078_v52 = vsub.f32 1.5, %v3077_v24 }
 0xa30   : > { %v7459_v33 = vsub.f32 %v7384_v51, %v3199_v21 }
 0xa31   : > { %v3079_v1 = vmul.f32 %v5572_v19, %v3078_v52 }
 0xa32   : > { %v3221_v28 = vmul.f32 %v7459_v33, %v7459_v33 }
 0xa33   : > { %v3083_v26 = vsel %vm3082_vm5, %v5572_v19, %v3079_v1 }
 0xa34   : > { %v3121_v60 = vmul.f32 %v3083_v26, %v7361_v32  ;;  %v3232_v42 = vsel %vm906_vm1, %v3221_v28, 0.0 }
 0xa35   : > { %3233 = vadd.xlane.f32.xlu0 %v3232_v42 }
 0xa36   : > { %v3135_v23 = vmul.f32 %v7372_v53, %v3121_v60 }
 0xa38   : > { %v3149_v61 = vadd.f32 %v7380_v48, %v3135_v23  ;;  %v5700_v23 = vld [vmem:[#allocation2 + $0x48] sm:$0xff] }
 0xa3a   : > { %v7467_v63 = vadd.f32 %v5698_v59, %v3149_v61 }
 0xa3c   : > { %v3187_v44 = vsel %vm906_vm1, %v7467_v63, 0.0 }
 0xa3d   : > { %3188 = vadd.xlane.f32.xlu0 %v3187_v44 }
 0xa52   : > { %v2975_v35 = vpop.xlane.xlu0 %2974 }
 0xa53   : > { %v2990_v0 = vmul.f32 %v2975_v35, %v6108_v31 }
 0xa55   : > { %v3001_v15 = vadd.f32 1e-05, %v2990_v0 }
 0xa57   : > { %5573 = vrsqrt.f32 %v3001_v15  ;;  %vm3090_vm7 = vweird.f32 %v3001_v15 }
 0xa5a   : > { %v3171_v32 = vpop.xlane.xlu0 %3170 }
 0xa5b   : > { %v3200_v29 = vmul.f32 %v3171_v32, %v6108_v31 }
 0xa5d   : > { %v5574_v47 = vpop.eup %5573  ;;  %v7474_v22 = vsub.f32 %v7399_v34, %v3200_v29  ;;  %v2978_v62 = vpop.xlane.xlu1 %2977 }
 0xa5e   : > { %v3085_v40 = vmul.f32 %v5574_v47, %v3001_v15  ;;  %v2991_v50 = vmul.f32 %v2978_v62, %v6108_v31  ;;  %vm3091_vm6 = vweird.f32 %v5574_v47 }
 0xa5f   : > { %v3222_v55 = vmul.f32 %v7474_v22, %v7474_v22  ;;  %vm3092_vm8 = vmor %vm3090_vm7, %vm3091_vm6 }
 0xa60   : > { %v3086_v45 = vmul.f32 %v5574_v47, %v3085_v40  ;;  %v3002_v8 = vadd.f32 1e-05, %v2991_v50 }
 0xa61   : > { %v3235_v7 = vsel %vm906_vm1, %v3222_v55, 0.0 }
 0xa62   : > { %v3087_v30 = vmul.f32 0.5, %v3086_v45  ;;  %5575 = vrsqrt.f32 %v3002_v8  ;;  %3236 = vadd.xlane.f32.xlu1 %v3235_v7  ;;  %vm3100_vm10 = vweird.f32 %v3002_v8 }
 0xa64   : > { %v3088_v43 = vsub.f32 1.5, %v3087_v30 }
 0xa66   : > { %v3089_v36 = vmul.f32 %v5574_v47, %v3088_v43 }
 0xa68   : > { %v5576_v3 = vpop.eup %5575  ;;  %v3093_v5 = vsel %vm3092_vm8, %v5574_v47, %v3089_v36 }
 0xa69   : > { %v3122_v12 = vmul.f32 %v3093_v5, %v7391_v14  ;;  %v3095_v9 = vmul.f32 %v5576_v3, %v3002_v8  ;;  %vm3101_vm9 = vweird.f32 %v5576_v3 }
 0xa6a   : > { %vm3102_vm11 = vmor %vm3100_vm10, %vm3101_vm9 }
 0xa6b   : > { %v3096_v38 = vmul.f32 %v5576_v3, %v3095_v9  ;;  %v3136_v49 = vmul.f32 %v7372_v53, %v3122_v12  ;;  %v5701_v9 = vld [vmem:[#allocation2 + $0x50] sm:$0xff] }
 0xa6d   : > { %v3097_v56 = vmul.f32 0.5, %v3096_v38  ;;  %v3174_v54 = vpop.xlane.xlu1 %3173  ;;  %v3150_v18 = vadd.f32 %v7380_v48, %v3136_v49 }
 0xa6e   : > { %v3201_v46 = vmul.f32 %v3174_v54, %v6108_v31 }
 0xa6f   : > { %v3098_v6 = vsub.f32 1.5, %v3097_v56  ;;  %v2981_v27 = vpop.xlane.xlu0 %2980  ;;  %v7484_v57 = vadd.f32 %v5699_v37, %v3150_v18 }
 0xa70   : > { %v7487_v20 = vsub.f32 %v7420_v13, %v3201_v46  ;;  %v2992_v14 = vmul.f32 %v2981_v27, %v6108_v31 }
 0xa71   : > { %v3099_v16 = vmul.f32 %v5576_v3, %v3098_v6  ;;  %v3190_v19 = vsel %vm906_vm1, %v7484_v57, 0.0 }
 0xa72   : > { %v3003_v25 = vadd.f32 1e-05, %v2992_v14  ;;  %3191 = vadd.xlane.f32.xlu0 %v3190_v19  ;;  %v3223_v2 = vmul.f32 %v7487_v20, %v7487_v20 }
 0xa73   : > { %v3103_v24 = vsel %vm3102_vm11, %v5576_v3, %v3099_v16 }
 0xa74   : > { %v3123_v17 = vmul.f32 %v3103_v24, %v7404_v41  ;;  %5577 = vrsqrt.f32 %v3003_v25  ;;  %v3238_v21 = vsel %vm906_vm1, %v3223_v2, 0.0  ;;  %vm3110_vm13 = vweird.f32 %v3003_v25 }
 0xa75   : > { %3239 = vadd.xlane.f32.xlu1 %v3238_v21  ;;  %v3177_v52 = vpop.xlane.xlu2 %3176 }
 0xa76   : > { %v3202_v1 = vmul.f32 %v3177_v52, %v6108_v31  ;;  %v3137_v28 = vmul.f32 %v7372_v53, %v3123_v17 }
 0xa78   : > { %v7499_v26 = vsub.f32 %v7431_v4, %v3202_v1  ;;  %v3151_v60 = vadd.f32 %v7380_v48, %v3137_v28  ;;  %v7546_v1 = vld [vmem:[%s6060_s17] ss:$0 sm:$0xff] }
 0xa7a   : > { %v5578_v42 = vpop.eup %5577  ;;  %v7502_v61 = vadd.f32 %v5700_v23, %v3151_v60  ;;  %v3224_v41 = vmul.f32 %v7499_v26, %v7499_v26 }
 0xa7b   : > { %v3105_v59 = vmul.f32 %v5578_v42, %v3003_v25  ;;  %vm3111_vm12 = vweird.f32 %v5578_v42 }
 0xa7c   : > { %v3193_v44 = vsel %vm906_vm1, %v7502_v61, 0.0  ;;  %v3241_v35 = vsel %vm906_vm1, %v3224_v41, 0.0  ;;  %vm3112_vm14 = vmor %vm3110_vm13, %vm3111_vm12 }
 0xa7d   : > { %v3106_v0 = vmul.f32 %v5578_v42, %v3105_v59  ;;  %v3180_v15 = vpop.xlane.xlu1 %3179  ;;  %3194 = vadd.xlane.f32.xlu1 %v3193_v44  ;;  %3242 = vadd.xlane.f32.xlu2 %v3241_v35 }
 0xa7e   : > { %v3203_v32 = vmul.f32 %v3180_v15, %v6108_v31 }
 0xa7f   : > { %v3107_v29 = vmul.f32 0.5, %v3106_v0 }
 0xa80   : > { %v7511_v47 = vsub.f32 %v7438_v39, %v3203_v32 }
 0xa81   : > { %v3108_v62 = vsub.f32 1.5, %v3107_v29 }
 0xa82   : > { %v3225_v40 = vmul.f32 %v7511_v47, %v7511_v47 }
 0xa83   : > { %v3109_v50 = vmul.f32 %v5578_v42, %v3108_v62 }
 0xa84   : > { %v3244_v55 = vsel %vm906_vm1, %v3225_v40, 0.0 }
 0xa85   : > { %v3113_v45 = vsel %vm3112_vm14, %v5578_v42, %v3109_v50  ;;  %3245 = vadd.xlane.f32.xlu2 %v3244_v55  ;;  %v3183_v8 = vpop.xlane.xlu2 %3182  ;;  %v7550_v42 = vld [vmem:[%s6066_s24] ss:$0 sm:$0xff] }
 0xa86   : > { %v3124_v7 = vmul.f32 %v3113_v45, %v7418_v58  ;;  %v3204_v30 = vmul.f32 %v3183_v8, %v6108_v31 }
 0xa88   : > { %v7519_v43 = vsub.f32 %v7445_v10, %v3204_v30  ;;  %v3138_v36 = vmul.f32 %v7372_v53, %v3124_v7 }
 0xa8a   : > { %v3226_v3 = vmul.f32 %v7519_v43, %v7519_v43  ;;  %v3152_v5 = vadd.f32 %v7380_v48, %v3138_v36 }
 0xa8c   : > { %v3247_v12 = vsel %vm906_vm1, %v3226_v3, 0.0  ;;  %v7526_v38 = vadd.f32 %v5701_v9, %v3152_v5 }
 0xa8d   : > { %3248 = vadd.xlane.f32.xlu0 %v3247_v12  ;;  %v3186_v49 = vpop.xlane.xlu2 %3185 }
 0xa8e   : > { %v3205_v58 = vmul.f32 %v3186_v49, %v6108_v31  ;;  %v3196_v56 = vsel %vm906_vm1, %v7526_v38, 0.0 }
 0xa8f   : > { %3197 = vadd.xlane.f32.xlu1 %v3196_v56 }
 0xa90   : > { %v7532_v53 = vsub.f32 %v7452_v11, %v3205_v58 }
 0xa92   : > { %v3227_v54 = vmul.f32 %v7532_v53, %v7532_v53 }
 0xa94   : > { %v3250_v48 = vsel %vm906_vm1, %v3227_v54, 0.0 }
 0xa95   : > { %3251 = vadd.xlane.f32.xlu2 %v3250_v48 }
 0xaa8   : > { %v3234_v18 = vpop.xlane.xlu0 %3233 }
 0xaa9   : > { %v3265_v46 = vmul.f32 %v3234_v18, %v6108_v31 }
 0xaab   : > { %v3276_v6 = vadd.f32 1e-05, %v3265_v46 }
 0xaad   : > { %5579 = vrsqrt.f32 %v3276_v6  ;;  %vm3293_vm0 = vweird.f32 %v3276_v6 }
 0xab0   : > { %v3189_v27 = vpop.xlane.xlu0 %3188 }
 0xab1   : > { %v3206_v37 = vmul.f32 %v3189_v27, %v6108_v31 }
 0xab3   : > { %v5580_v14 = vpop.eup %5579  ;;  %v7540_v16 = vsub.f32 %v7467_v63, %v3206_v37 }
 0xab4   : > { %v3288_v19 = vmul.f32 %v5580_v14, %v3276_v6  ;;  %vm3294_vm15 = vweird.f32 %v5580_v14 }
 0xab5   : > { %v3228_v25 = vmul.f32 %v7540_v16, %v7540_v16  ;;  %vm3295_vm2 = vmor %vm3293_vm0, %vm3294_vm15 }
 0xab6   : > { %v3289_v2 = vmul.f32 %v5580_v14, %v3288_v19 }
 0xab7   : > { %v3253_v24 = vsel %vm906_vm1, %v3228_v25, 0.0 }
 0xab8   : > { %v3290_v17 = vmul.f32 0.5, %v3289_v2  ;;  %3254 = vadd.xlane.f32.xlu0 %v3253_v24 }
 0xaba   : > { %v3291_v21 = vsub.f32 1.5, %v3290_v17 }
 0xabc   : > { %v3292_v52 = vmul.f32 %v5580_v14, %v3291_v21 }
 0xabe   : > { %v3296_v28 = vsel %vm3295_vm2, %v5580_v14, %v3292_v52 }
 0xabf   : > { %v3397_v60 = vmul.f32 %v3296_v28, %v7459_v33 }
 0xac1   : > { %v3411_v23 = vmul.f32 %v7546_v1, %v3397_v60 }
 0xac3   : > { %v7554_v41 = vadd.f32 %v7550_v42, %v3411_v23 }
 0xac5   : > { %v3436_v59 = vsel %vm906_vm1, %v7554_v41, 0.0 }
 0xac6   : > { %3437 = vadd.xlane.f32.xlu0 %v3436_v59 }
 0xad5   : > { %v3237_v44 = vpop.xlane.xlu1 %3236 }
 0xad6   : > { %v3266_v35 = vmul.f32 %v3237_v44, %v6108_v31 }
 0xad8   : > { %v3277_v0 = vadd.f32 1e-05, %v3266_v35 }
 0xada   : > { %5581 = vrsqrt.f32 %v3277_v0  ;;  %vm3303_vm4 = vweird.f32 %v3277_v0 }
 0xae0   : > { %v5582_v15 = vpop.eup %5581 }
 0xae1   : > { %v3298_v32 = vmul.f32 %v5582_v15, %v3277_v0  ;;  %vm3304_vm3 = vweird.f32 %v5582_v15 }
 0xae2   : > { %vm3305_vm5 = vmor %vm3303_vm4, %vm3304_vm3 }
 0xae3   : > { %v3299_v29 = vmul.f32 %v5582_v15, %v3298_v32 }
 0xae5   : > { %v3300_v33 = vmul.f32 0.5, %v3299_v29  ;;  %v3192_v62 = vpop.xlane.xlu0 %3191 }
 0xae6   : > { %v3207_v40 = vmul.f32 %v3192_v62, %v6108_v31 }
 0xae7   : > { %v3301_v50 = vsub.f32 1.5, %v3300_v33 }
 0xae8   : > { %v7561_v55 = vsub.f32 %v7484_v57, %v3207_v40  ;;  %v3240_v45 = vpop.xlane.xlu1 %3239 }
 0xae9   : > { %v3302_v8 = vmul.f32 %v5582_v15, %v3301_v50  ;;  %v3267_v7 = vmul.f32 %v3240_v45, %v6108_v31 }
 0xaea   : > { %v3229_v30 = vmul.f32 %v7561_v55, %v7561_v55 }
 0xaeb   : > { %v3278_v36 = vadd.f32 1e-05, %v3267_v7  ;;  %v3306_v3 = vsel %vm3305_vm5, %v5582_v15, %v3302_v8 }
 0xaec   : > { %v3256_v5 = vsel %vm906_vm1, %v3229_v30, 0.0  ;;  %v3398_v12 = vmul.f32 %v3306_v3, %v7474_v22 }
 0xaed   : > { %5583 = vrsqrt.f32 %v3278_v36  ;;  %3257 = vadd.xlane.f32.xlu1 %v3256_v5  ;;  %vm3313_vm7 = vweird.f32 %v3278_v36 }
 0xaee   : > { %v3412_v9 = vmul.f32 %v7546_v1, %v3398_v12 }
 0xaf0   : > { %v3195_v49 = vpop.xlane.xlu1 %3194  ;;  %v3243_v58 = vpop.xlane.xlu2 %3242  ;;  %v7570_v56 = vadd.f32 %v7550_v42, %v3412_v9 }
 0xaf1   : > { %v3208_v54 = vmul.f32 %v3195_v49, %v6108_v31  ;;  %v3268_v48 = vmul.f32 %v3243_v58, %v6108_v31 }
 0xaf2   : > { %v3439_v22 = vsel %vm906_vm1, %v7570_v56, 0.0 }
 0xaf3   : > { %v5584_v18 = vpop.eup %5583  ;;  %v7575_v46 = vsub.f32 %v7502_v61, %v3208_v54  ;;  %v3279_v6 = vadd.f32 1e-05, %v3268_v48 }
 0xaf4   : > { %v3308_v27 = vmul.f32 %v5584_v18, %v3278_v36  ;;  %vm3314_vm6 = vweird.f32 %v5584_v18 }
 0xaf5   : > { %5585 = vrsqrt.f32 %v3279_v6  ;;  %3440 = vadd.xlane.f32.xlu1 %v3439_v22  ;;  %v3230_v37 = vmul.f32 %v7575_v46, %v7575_v46  ;;  %vm3315_vm8 = vmor %vm3313_vm7, %vm3314_vm6  ;;  %vm3323_vm10 = vweird.f32 %v3279_v6 }
 0xaf6   : > { %v3309_v14 = vmul.f32 %v5584_v18, %v3308_v27 }
 0xaf7   : > { %v3259_v19 = vsel %vm906_vm1, %v3230_v37, 0.0 }
 0xaf8   : > { %v3310_v25 = vmul.f32 0.5, %v3309_v14  ;;  %3260 = vadd.xlane.f32.xlu2 %v3259_v19  ;;  %v3246_v2 = vpop.xlane.xlu2 %3245 }
 0xaf9   : > { %v3269_v24 = vmul.f32 %v3246_v2, %v6108_v31 }
 0xafa   : > { %v3311_v17 = vsub.f32 1.5, %v3310_v25 }
 0xafb   : > { %v5586_v21 = vpop.eup %5585  ;;  %v3280_v52 = vadd.f32 1e-05, %v3269_v24 }
 0xafc   : > { %v3312_v28 = vmul.f32 %v5584_v18, %v3311_v17  ;;  %v3318_v60 = vmul.f32 %v5586_v21, %v3279_v6  ;;  %vm3324_vm9 = vweird.f32 %v5586_v21 }
 0xafd   : > { %5587 = vrsqrt.f32 %v3280_v52  ;;  %vm3325_vm11 = vmor %vm3323_vm10, %vm3324_vm9  ;;  %vm3333_vm13 = vweird.f32 %v3280_v52 }
 0xafe   : > { %v3319_v23 = vmul.f32 %v5586_v21, %v3318_v60  ;;  %v3316_v59 = vsel %vm3315_vm8, %v5584_v18, %v3312_v28 }
 0xaff   : > { %v3399_v44 = vmul.f32 %v3316_v59, %v7487_v20 }
 0xb00   : > { %v3320_v35 = vmul.f32 0.5, %v3319_v23  ;;  %v3249_v0 = vpop.xlane.xlu0 %3248 }
 0xb01   : > { %v3270_v15 = vmul.f32 %v3249_v0, %v6108_v31  ;;  %v3413_v32 = vmul.f32 %v7546_v1, %v3399_v44 }
 0xb02   : > { %v3321_v29 = vsub.f32 1.5, %v3320_v35  ;;  %v3198_v33 = vpop.xlane.xlu1 %3197 }
 0xb03   : > { %v5588_v62 = vpop.eup %5587  ;;  %v3281_v40 = vadd.f32 1e-05, %v3270_v15  ;;  %v3209_v50 = vmul.f32 %v3198_v33, %v6108_v31  ;;  %v7588_v45 = vadd.f32 %v7550_v42, %v3413_v32 }
 0xb04   : > { %v3322_v8 = vmul.f32 %v5586_v21, %v3321_v29  ;;  %v3328_v7 = vmul.f32 %v5588_v62, %v3280_v52  ;;  %vm3334_vm12 = vweird.f32 %v5588_v62 }
 0xb05   : > { %5589 = vrsqrt.f32 %v3281_v40  ;;  %v7591_v20 = vsub.f32 %v7526_v38, %v3209_v50  ;;  %v3442_v30 = vsel %vm906_vm1, %v7588_v45, 0.0  ;;  %vm3335_vm14 = vmor %vm3333_vm13, %vm3334_vm12  ;;  %vm3343_vm0 = vweird.f32 %v3281_v40 }
 0xb06   : > { %v3329_v36 = vmul.f32 %v5588_v62, %v3328_v7  ;;  %3443 = vadd.xlane.f32.xlu2 %v3442_v30  ;;  %v3326_v3 = vsel %vm3325_vm11, %v5586_v21, %v3322_v8 }
 0xb07   : > { %v3231_v5 = vmul.f32 %v7591_v20, %v7591_v20  ;;  %v3400_v12 = vmul.f32 %v3326_v3, %v7499_v26 }
 0xb08   : > { %v3330_v9 = vmul.f32 0.5, %v3329_v36  ;;  %v3252_v49 = vpop.xlane.xlu2 %3251 }
 0xb09   : > { %v3271_v58 = vmul.f32 %v3252_v49, %v6108_v31  ;;  %v3262_v54 = vsel %vm906_vm1, %v3231_v5, 0.0  ;;  %v3414_v48 = vmul.f32 %v7546_v1, %v3400_v12 }
 0xb0a   : > { %v3331_v18 = vsub.f32 1.5, %v3330_v9  ;;  %3263 = vadd.xlane.f32.xlu1 %v3262_v54 }
 0xb0b   : > { %v5590_v6 = vpop.eup %5589  ;;  %v3282_v27 = vadd.f32 1e-05, %v3271_v58  ;;  %v7602_v22 = vadd.f32 %v7550_v42, %v3414_v48 }
 0xb0c   : > { %v3332_v37 = vmul.f32 %v5588_v62, %v3331_v18  ;;  %v3338_v14 = vmul.f32 %v5590_v6, %v3281_v40  ;;  %vm3344_vm15 = vweird.f32 %v5590_v6 }
 0xb0d   : > { %5591 = vrsqrt.f32 %v3282_v27  ;;  %v3445_v26 = vsel %vm906_vm1, %v7602_v22, 0.0  ;;  %vm3345_vm2 = vmor %vm3343_vm0, %vm3344_vm15  ;;  %vm3353_vm4 = vweird.f32 %v3282_v27 }
 0xb0e   : > { %v3339_v19 = vmul.f32 %v5590_v6, %v3338_v14  ;;  %3446 = vadd.xlane.f32.xlu0 %v3445_v26  ;;  %v3336_v25 = vsel %vm3335_vm14, %v5588_v62, %v3332_v37 }
 0xb0f   : > { %v3401_v2 = vmul.f32 %v3336_v25, %v7511_v47 }
 0xb10   : > { %v3340_v24 = vmul.f32 0.5, %v3339_v19 }
 0xb11   : > { %v3415_v17 = vmul.f32 %v7546_v1, %v3401_v2 }
 0xb12   : > { %v3341_v21 = vsub.f32 1.5, %v3340_v24 }
 0xb13   : > { %v5592_v28 = vpop.eup %5591  ;;  %v7609_v60 = vadd.f32 %v7550_v42, %v3415_v17 }
 0xb14   : > { %v3342_v52 = vmul.f32 %v5590_v6, %v3341_v21  ;;  %v3348_v23 = vmul.f32 %v5592_v28, %v3282_v27  ;;  %vm3354_vm3 = vweird.f32 %v5592_v28 }
 0xb15   : > { %v3448_v59 = vsel %vm906_vm1, %v7609_v60, 0.0  ;;  %vm3355_vm5 = vmor %vm3353_vm4, %vm3354_vm3 }
 0xb16   : > { %v3349_v44 = vmul.f32 %v5592_v28, %v3348_v23  ;;  %3449 = vadd.xlane.f32.xlu2 %v3448_v59  ;;  %v3346_v35 = vsel %vm3345_vm2, %v5590_v6, %v3342_v52 }
 0xb17   : > { %v3402_v47 = vmul.f32 %v3346_v35, %v7519_v43 }
 0xb18   : > { %v3350_v0 = vmul.f32 0.5, %v3349_v44 }
 0xb19   : > { %v3416_v15 = vmul.f32 %v7546_v1, %v3402_v47 }
 0xb1a   : > { %v3351_v32 = vsub.f32 1.5, %v3350_v0 }
 0xb1b   : > { %v7616_v29 = vadd.f32 %v7550_v42, %v3416_v15 }
 0xb1c   : > { %v3352_v33 = vmul.f32 %v5592_v28, %v3351_v32 }
 0xb1d   : > { %v3451_v62 = vsel %vm906_vm1, %v7616_v29, 0.0 }
 0xb1e   : > { %3452 = vadd.xlane.f32.xlu0 %v3451_v62  ;;  %v3356_v40 = vsel %vm3355_vm5, %v5592_v28, %v3352_v33 }
 0xb1f   : > { %v3403_v50 = vmul.f32 %v3356_v40, %v7532_v53 }
 0xb21   : > { %v3417_v43 = vmul.f32 %v7546_v1, %v3403_v50 }
 0xb23   : > { %v7623_v8 = vadd.f32 %v7550_v42, %v3417_v43 }
 0xb25   : > { %v3454_v7 = vsel %vm906_vm1, %v7623_v8, 0.0 }
 0xb26   : > { %3455 = vadd.xlane.f32.xlu0 %v3454_v7 }
 0xb2b   : > { %v3255_v30 = vpop.xlane.xlu0 %3254 }
 0xb2c   : > { %v3272_v36 = vmul.f32 %v3255_v30, %v6108_v31 }
 0xb2e   : > { %v3283_v3 = vadd.f32 1e-05, %v3272_v36 }
 0xb30   : > { %5593 = vrsqrt.f32 %v3283_v3  ;;  %vm3363_vm7 = vweird.f32 %v3283_v3 }
 0xb36   : > { %v5594_v5 = vpop.eup %5593 }
 0xb37   : > { %v3358_v12 = vmul.f32 %v5594_v5, %v3283_v3  ;;  %vm3364_vm6 = vweird.f32 %v5594_v5 }
 0xb38   : > { %vm3365_vm8 = vmor %vm3363_vm7, %vm3364_vm6 }
 0xb39   : > { %v3359_v9 = vmul.f32 %v5594_v5, %v3358_v12  ;;  %v3438_v49 = vpop.xlane.xlu0 %3437 }
 0xb3a   : > { %v3469_v53 = vmul.f32 %v3438_v49, %v6108_v31 }
 0xb3b   : > { %v3360_v58 = vmul.f32 0.5, %v3359_v9 }
 0xb3c   : > { %v7630_v54 = vsub.f32 %v7554_v41, %v3469_v53 }
 0xb3d   : > { %v3361_v48 = vsub.f32 1.5, %v3360_v58 }
 0xb3e   : > { %v3491_v18 = vmul.f32 %v7630_v54, %v7630_v54 }
 0xb3f   : > { %v3362_v6 = vmul.f32 %v5594_v5, %v3361_v48 }
 0xb40   : > { %v3502_v27 = vsel %vm906_vm1, %v3491_v18, 0.0 }
 0xb41   : > { %3503 = vadd.xlane.f32.xlu1 %v3502_v27  ;;  %v3366_v37 = vsel %vm3365_vm8, %v5594_v5, %v3362_v6 }
 0xb42   : > { %v3404_v14 = vmul.f32 %v3366_v37, %v7540_v16  ;;  %v5130_v37 = vld [vmem:[%s6024_s2 + $0x8] sm:$0xff] }
 0xb43   : > { %3750 = vmatpush.bf16.msrb.mxu0 %v5130_v37  ;;  %5170 = vmatpush.bf16.msra.mxu1 %v5130_v37 }
 0xb44   : > { %v3418_v26 = vmul.f32 %v7546_v1, %v3404_v14 }
 0xb46   : > { %v7638_v19 = vadd.f32 %v7550_v42, %v3418_v26 }
 0xb48   : > { %v3457_v41 = vsel %vm906_vm1, %v7638_v19, 0.0 }
 0xb49   : > { %3458 = vadd.xlane.f32.xlu1 %v3457_v41 }
 0xb60   : > { %v3258_v25 = vpop.xlane.xlu1 %3257 }
 0xb61   : > { %v3273_v2 = vmul.f32 %v3258_v25, %v6108_v31 }
 0xb63   : > { %v3284_v24 = vadd.f32 1e-05, %v3273_v2 }
 0xb65   : > { %5595 = vrsqrt.f32 %v3284_v24  ;;  %vm3373_vm10 = vweird.f32 %v3284_v24 }
 0xb68   : > { %v3441_v17 = vpop.xlane.xlu1 %3440 }
 0xb69   : > { %v3470_v21 = vmul.f32 %v3441_v17, %v6108_v31 }
 0xb6b   : > { %v5596_v28 = vpop.eup %5595  ;;  %v7645_v16 = vsub.f32 %v7570_v56, %v3470_v21  ;;  %v3261_v52 = vpop.xlane.xlu2 %3260 }
 0xb6c   : > { %v3368_v23 = vmul.f32 %v5596_v28, %v3284_v24  ;;  %v3274_v59 = vmul.f32 %v3261_v52, %v6108_v31  ;;  %vm3374_vm9 = vweird.f32 %v5596_v28 }
 0xb6d   : > { %v3492_v44 = vmul.f32 %v7645_v16, %v7645_v16  ;;  %vm3375_vm11 = vmor %vm3373_vm10, %vm3374_vm9 }
 0xb6e   : > { %v3369_v35 = vmul.f32 %v5596_v28, %v3368_v23  ;;  %v3285_v47 = vadd.f32 1e-05, %v3274_v59 }
 0xb6f   : > { %v3505_v0 = vsel %vm906_vm1, %v3492_v44, 0.0 }
 0xb70   : > { %v3370_v15 = vmul.f32 0.5, %v3369_v35  ;;  %5597 = vrsqrt.f32 %v3285_v47  ;;  %3506 = vadd.xlane.f32.xlu2 %v3505_v0  ;;  %vm3383_vm13 = vweird.f32 %v3285_v47 }
 0xb72   : > { %v3371_v32 = vsub.f32 1.5, %v3370_v15 }
 0xb74   : > { %v3372_v33 = vmul.f32 %v5596_v28, %v3371_v32 }
 0xb76   : > { %v5598_v56 = vpop.eup %5597  ;;  %v3376_v62 = vsel %vm3375_vm11, %v5596_v28, %v3372_v33 }
 0xb77   : > { %v3378_v40 = vmul.f32 %v5598_v56, %v3285_v47  ;;  %v3405_v50 = vmul.f32 %v3376_v62, %v7561_v55  ;;  %vm3384_vm12 = vweird.f32 %v5598_v56 }
 0xb78   : > { %vm3385_vm14 = vmor %vm3383_vm13, %vm3384_vm12 }
 0xb79   : > { %v3379_v43 = vmul.f32 %v5598_v56, %v3378_v40  ;;  %v3444_v7 = vpop.xlane.xlu2 %3443  ;;  %v3419_v30 = vmul.f32 %v7546_v1, %v3405_v50 }
 0xb7a   : > { %v3471_v36 = vmul.f32 %v3444_v7, %v6108_v31 }
 0xb7b   : > { %v3380_v3 = vmul.f32 0.5, %v3379_v43  ;;  %v7655_v5 = vadd.f32 %v7550_v42, %v3419_v30 }
 0xb7c   : > { %v7658_v12 = vsub.f32 %v7588_v45, %v3471_v36 }
 0xb7d   : > { %v3381_v9 = vsub.f32 1.5, %v3380_v3  ;;  %v3264_v49 = vpop.xlane.xlu1 %3263  ;;  %v3460_v55 = vsel %vm906_vm1, %v7655_v5, 0.0 }
 0xb7e   : > { %v3275_v53 = vmul.f32 %v3264_v49, %v6108_v31  ;;  %3461 = vadd.xlane.f32.xlu1 %v3460_v55  ;;  %v3493_v58 = vmul.f32 %v7658_v12, %v7658_v12  ;;  %v5129_v49 = vld [vmem:[%s6024_s2] sm:$0xff] }
 0xb7f   : > { %v3382_v48 = vmul.f32 %v5598_v56, %v3381_v9  ;;  %3751 = vmatpush.bf16.msrb.mxu0 %v5129_v49  ;;  %5171 = vmatpush.bf16.msra.mxu1 %v5129_v49 }
 0xb80   : > { %v3286_v18 = vadd.f32 1e-05, %v3275_v53  ;;  %v3508_v45 = vsel %vm906_vm1, %v3493_v58, 0.0 }
 0xb81   : > { %v3447_v6 = vpop.xlane.xlu0 %3446  ;;  %3509 = vadd.xlane.f32.xlu2 %v3508_v45  ;;  %v3386_v27 = vsel %vm3385_vm14, %v5598_v56, %v3382_v48 }
 0xb82   : > { %5599 = vrsqrt.f32 %v3286_v18  ;;  %v3472_v14 = vmul.f32 %v3447_v6, %v6108_v31  ;;  %v3406_v26 = vmul.f32 %v3386_v27, %v7575_v46  ;;  %vm3393_vm0 = vweird.f32 %v3286_v18 }
 0xb84   : > { %v7670_v41 = vsub.f32 %v7602_v22, %v3472_v14  ;;  %v3420_v25 = vmul.f32 %v7546_v1, %v3406_v26 }
 0xb86   : > { %v3494_v2 = vmul.f32 %v7670_v41, %v7670_v41  ;;  %v7676_v24 = vadd.f32 %v7550_v42, %v3420_v25 }
 0xb88   : > { %v5600_v17 = vpop.eup %5599  ;;  %v3511_v21 = vsel %vm906_vm1, %v3494_v2, 0.0  ;;  %v3463_v28 = vsel %vm906_vm1, %v7676_v24, 0.0 }
 0xb89   : > { %v3388_v46 = vmul.f32 %v5600_v17, %v3286_v18  ;;  %3512 = vadd.xlane.f32.xlu0 %v3511_v21  ;;  %3464 = vadd.xlane.f32.xlu2 %v3463_v28  ;;  %v3450_v52 = vpop.xlane.xlu2 %3449  ;;  %vm3394_vm15 = vweird.f32 %v5600_v17 }
 0xb8a   : > { %v3473_v22 = vmul.f32 %v3450_v52, %v6108_v31  ;;  %vm3395_vm2 = vmor %vm3393_vm0, %vm3394_vm15 }
 0xb8b   : > { %v3389_v23 = vmul.f32 %v5600_v17, %v3388_v46 }
 0xb8c   : > { %v7683_v59 = vsub.f32 %v7609_v60, %v3473_v22 }
 0xb8d   : > { %v3390_v44 = vmul.f32 0.5, %v3389_v23 }
 0xb8e   : > { %v3495_v35 = vmul.f32 %v7683_v59, %v7683_v59 }
 0xb8f   : > { %v3391_v47 = vsub.f32 1.5, %v3390_v44 }
 0xb90   : > { %v3514_v0 = vsel %vm906_vm1, %v3495_v35, 0.0 }
 0xb91   : > { %v3392_v15 = vmul.f32 %v5600_v17, %v3391_v47  ;;  %v3453_v32 = vpop.xlane.xlu0 %3452  ;;  %3515 = vadd.xlane.f32.xlu0 %v3514_v0 }
 0xb92   : > { %v3474_v33 = vmul.f32 %v3453_v32, %v6108_v31 }
 0xb93   : > { %v3396_v56 = vsel %vm3395_vm2, %v5600_v17, %v3392_v15 }
 0xb94   : > { %v7690_v60 = vsub.f32 %v7616_v29, %v3474_v33  ;;  %v3407_v62 = vmul.f32 %v3396_v56, %v7591_v20 }
 0xb96   : > { %v3496_v40 = vmul.f32 %v7690_v60, %v7690_v60  ;;  %v3421_v50 = vmul.f32 %v7546_v1, %v3407_v62 }
 0xb98   : > { %v3517_v43 = vsel %vm906_vm1, %v3496_v40, 0.0  ;;  %v7698_v7 = vadd.f32 %v7550_v42, %v3421_v50 }
 0xb99   : > { %3518 = vadd.xlane.f32.xlu1 %v3517_v43  ;;  %v3456_v30 = vpop.xlane.xlu0 %3455 }
 0xb9a   : > { %v3475_v36 = vmul.f32 %v3456_v30, %v6108_v31  ;;  %v3466_v29 = vsel %vm906_vm1, %v7698_v7, 0.0 }
 0xb9b   : > { %3467 = vadd.xlane.f32.xlu2 %v3466_v29 }
 0xb9c   : > { %v7704_v20 = vsub.f32 %v7623_v8, %v3475_v36 }
 0xb9e   : > { %v3497_v3 = vmul.f32 %v7704_v20, %v7704_v20 }
 0xba0   : > { %v3520_v9 = vsel %vm906_vm1, %v3497_v3, 0.0 }
 0xba1   : > { %3521 = vadd.xlane.f32.xlu0 %v3520_v9 }
 0xbb4   : > { %v3504_v55 = vpop.xlane.xlu1 %3503 }
 0xbb5   : > { %v3535_v45 = vmul.f32 %v3504_v55, %v6108_v31 }
 0xbb7   : > { %v3546_v6 = vadd.f32 1e-05, %v3535_v45 }
 0xbb9   : > { %5601 = vrsqrt.f32 %v3546_v6  ;;  %vm3563_vm4 = vweird.f32 %v3546_v6 }
 0xbbc   : > { %v3459_v53 = vpop.xlane.xlu1 %3458 }
 0xbbd   : > { %v3476_v58 = vmul.f32 %v3459_v53, %v6108_v31 }
 0xbbf   : > { %v7712_v48 = vsub.f32 %v7638_v19, %v3476_v58  ;;  %v5602_v27 = vpop.eup %5601 }
 0xbc0   : > { %v3558_v37 = vmul.f32 %v5602_v27, %v3546_v6  ;;  %vm3564_vm3 = vweird.f32 %v5602_v27 }
 0xbc1   : > { %v3498_v8 = vmul.f32 %v7712_v48, %v7712_v48  ;;  %vm3565_vm5 = vmor %vm3563_vm4, %vm3564_vm3 }
 0xbc2   : > { %v3559_v14 = vmul.f32 %v5602_v27, %v3558_v37 }
 0xbc3   : > { %v3523_v18 = vsel %vm906_vm1, %v3498_v8, 0.0 }
 0xbc4   : > { %3524 = vadd.xlane.f32.xlu1 %v3523_v18  ;;  %v3560_v17 = vmul.f32 0.5, %v3559_v14 }
 0xbc6   : > { %v3561_v19 = vsub.f32 1.5, %v3560_v17 }
 0xbc8   : > { %v3562_v28 = vmul.f32 %v5602_v27, %v3561_v19 }
 0xbca   : > { %v3566_v44 = vsel %vm3565_vm5, %v5602_v27, %v3562_v28 }
 0xbcb   : > { %v3667_v33 = vmul.f32 %v3566_v44, %v7630_v54 }
 0xbe3   : > { %v3507_v26 = vpop.xlane.xlu2 %3506 }
 0xbe4   : > { %v3536_v25 = vmul.f32 %v3507_v26, %v6108_v31 }
 0xbe6   : > { %v3547_v2 = vadd.f32 1e-05, %v3536_v25 }
 0xbe8   : > { %5603 = vrsqrt.f32 %v3547_v2  ;;  %vm3573_vm7 = vweird.f32 %v3547_v2 }
 0xbee   : > { %v5604_v21 = vpop.eup %5603 }
 0xbef   : > { %v3568_v46 = vmul.f32 %v5604_v21, %v3547_v2  ;;  %vm3574_vm6 = vweird.f32 %v5604_v21 }
 0xbf0   : > { %vm3575_vm8 = vmor %vm3573_vm7, %vm3574_vm6 }
 0xbf1   : > { %v3569_v52 = vmul.f32 %v5604_v21, %v3568_v46  ;;  %v3462_v22 = vpop.xlane.xlu1 %3461 }
 0xbf2   : > { %v3477_v23 = vmul.f32 %v3462_v22, %v6108_v31 }
 0xbf3   : > { %v3570_v35 = vmul.f32 0.5, %v3569_v52 }
 0xbf4   : > { %v7721_v47 = vsub.f32 %v7655_v5, %v3477_v23  ;;  %v3510_v0 = vpop.xlane.xlu2 %3509  ;;  %v3678_v5 = vmul.f32 %v7546_v1, %v3667_v33 }
 0xbf5   : > { %v3571_v15 = vsub.f32 1.5, %v3570_v35  ;;  %v3537_v32 = vmul.f32 %v3510_v0, %v6108_v31 }
 0xbf6   : > { %v3499_v56 = vmul.f32 %v7721_v47, %v7721_v47  ;;  %v3689_v49 = vadd.f32 %v7550_v42, %v3678_v5 }
 0xbf7   : > { %v3572_v62 = vmul.f32 %v5604_v21, %v3571_v15  ;;  %v3548_v40 = vadd.f32 1e-05, %v3537_v32 }
 0xbf8   : > { %v3526_v50 = vsel %vm906_vm1, %v3499_v56, 0.0 }
 0xbf9   : > { %v3576_v43 = vsel %vm3575_vm8, %v5604_v21, %v3572_v62  ;;  %5605 = vrsqrt.f32 %v3548_v40  ;;  %3527 = vadd.xlane.f32.xlu2 %v3526_v50  ;;  %vm3583_vm10 = vweird.f32 %v3548_v40 }
 0xbfa   : > { %v3668_v30 = vmul.f32 %v3576_v43, %v7645_v16 }
 0xbfc   : > { %v3679_v36 = vmul.f32 %v7546_v1, %v3668_v30  ;;  %v3513_v29 = vpop.xlane.xlu0 %3512  ;;  %v3465_v54 = vpop.xlane.xlu2 %3464 }
 0xbfd   : > { %v3538_v3 = vmul.f32 %v3513_v29, %v6108_v31  ;;  %v3478_v9 = vmul.f32 %v3465_v54, %v6108_v31 }
 0xbfe   : > { %v3690_v55 = vadd.f32 %v7550_v42, %v3679_v36 }
 0xbff   : > { %v5606_v53 = vpop.eup %5605  ;;  %v3549_v58 = vadd.f32 1e-05, %v3538_v3  ;;  %v7736_v8 = vsub.f32 %v7676_v24, %v3478_v9 }
 0xc00   : > { %v3700_v18 = vpack.c.bf16 %v3690_v55, %v3689_v49  ;;  %v3578_v45 = vmul.f32 %v5606_v53, %v3548_v40  ;;  %vm3584_vm9 = vweird.f32 %v5606_v53 }
 0xc01   : > { %5607 = vrsqrt.f32 %v3549_v58  ;;  %v3500_v16 = vmul.f32 %v7736_v8, %v7736_v8  ;;  %vm3585_vm11 = vmor %vm3583_vm10, %vm3584_vm9  ;;  %vm3593_vm13 = vweird.f32 %v3549_v58 }
 0xc02   : > { %v3579_v6 = vmul.f32 %v5606_v53, %v3578_v45  ;;  %5065 = vmatmul.msk.bf16.vlgmr.msrb.gmra.mxu0 %vm906_vm1, %v3700_v18 }
 0xc03   : > { %v3529_v27 = vsel %vm906_vm1, %v3500_v16, 0.0 }
 0xc04   : > { %v3580_v37 = vmul.f32 0.5, %v3579_v6  ;;  %v3516_v14 = vpop.xlane.xlu0 %3515  ;;  %3530 = vadd.xlane.f32.xlu0 %v3529_v27 }
 0xc05   : > { %v3539_v26 = vmul.f32 %v3516_v14, %v6108_v31 }
 0xc06   : > { %v3581_v25 = vsub.f32 1.5, %v3580_v37 }
 0xc07   : > { %v5608_v2 = vpop.eup %5607  ;;  %v3550_v24 = vadd.f32 1e-05, %v3539_v26 }
 0xc08   : > { %v3582_v17 = vmul.f32 %v5606_v53, %v3581_v25  ;;  %v3588_v19 = vmul.f32 %v5608_v2, %v3549_v58  ;;  %vm3594_vm12 = vweird.f32 %v5608_v2 }
 0xc09   : > { %5609 = vrsqrt.f32 %v3550_v24  ;;  %vm3595_vm14 = vmor %vm3593_vm13, %vm3594_vm12  ;;  %vm3603_vm0 = vweird.f32 %v3550_v24 }
 0xc0a   : > { %v3589_v21 = vmul.f32 %v5608_v2, %v3588_v19  ;;  %v3586_v28 = vsel %vm3585_vm11, %v5606_v53, %v3582_v17 }
 0xc0b   : > { %v3669_v0 = vmul.f32 %v3586_v28, %v7658_v12 }
 0xc0c   : > { %v3590_v46 = vmul.f32 0.5, %v3589_v21  ;;  %v3519_v52 = vpop.xlane.xlu1 %3518 }
 0xc0d   : > { %v3540_v22 = vmul.f32 %v3519_v52, %v6108_v31  ;;  %v3680_v43 = vmul.f32 %v7546_v1, %v3669_v0 }
 0xc0e   : > { %v3591_v23 = vsub.f32 1.5, %v3590_v46  ;;  %v3468_v44 = vpop.xlane.xlu2 %3467 }
 0xc0f   : > { %v5610_v35 = vpop.eup %5609  ;;  %v3551_v15 = vadd.f32 1e-05, %v3540_v22  ;;  %v3479_v32 = vmul.f32 %v3468_v44, %v6108_v31 }
 0xc10   : > { %v3592_v33 = vmul.f32 %v5608_v2, %v3591_v23  ;;  %v3598_v56 = vmul.f32 %v5610_v35, %v3550_v24  ;;  %vm3604_vm15 = vweird.f32 %v5610_v35 }
 0xc11   : > { %5611 = vrsqrt.f32 %v3551_v15  ;;  %v7747_v62 = vsub.f32 %v7698_v7, %v3479_v32  ;;  %v3691_v7 = vadd.f32 %v7550_v42, %v3680_v43  ;;  %vm3605_vm2 = vmor %vm3603_vm0, %vm3604_vm15  ;;  %vm3613_vm4 = vweird.f32 %v3551_v15 }
 0xc12   : > { %v3596_v40 = vsel %vm3595_vm14, %v5608_v2, %v3592_v33  ;;  %v3599_v50 = vmul.f32 %v5610_v35, %v3598_v56 }
 0xc13   : > { %v3670_v5 = vmul.f32 %v3596_v40, %v7670_v41  ;;  %v3501_v12 = vmul.f32 %v7747_v62, %v7747_v62 }
 0xc14   : > { %v3600_v30 = vmul.f32 0.5, %v3599_v50  ;;  %v3522_v6 = vpop.xlane.xlu0 %3521 }
 0xc15   : > { %v3681_v36 = vmul.f32 %v7546_v1, %v3670_v5  ;;  %v3532_v29 = vsel %vm906_vm1, %v3501_v12, 0.0  ;;  %v3541_v14 = vmul.f32 %v3522_v6, %v6108_v31 }
 0xc16   : > { %v3601_v54 = vsub.f32 1.5, %v3600_v30  ;;  %3533 = vadd.xlane.f32.xlu1 %v3532_v29 }
 0xc17   : > { %v5612_v3 = vpop.eup %5611  ;;  %v3692_v9 = vadd.f32 %v7550_v42, %v3681_v36  ;;  %v3552_v24 = vadd.f32 1e-05, %v3541_v14 }
 0xc18   : > { %v3602_v49 = vmul.f32 %v5610_v35, %v3601_v54  ;;  %v3608_v55 = vmul.f32 %v5612_v3, %v3551_v15  ;;  %vm3614_vm3 = vweird.f32 %v5612_v3 }
 0xc19   : > { %v3701_v53 = vpack.c.bf16 %v3692_v9, %v3691_v7  ;;  %vm3615_vm5 = vmor %vm3613_vm4, %vm3614_vm3  ;;  %5613 = vrsqrt.f32 %v3552_v24  ;;  %vm3623_vm7 = vweird.f32 %v3552_v24 }
 0xc1a   : > { %v3609_v41 = vmul.f32 %v5612_v3, %v3608_v55  ;;  %v3606_v58 = vsel %vm3605_vm2, %v5610_v35, %v3602_v49 }
 0xc1b   : > { %5066 = vmatmul.msk.bf16.vlgmr.msra.gmra.mxu1 %vm906_vm1, %v3701_v53  ;;  %v3671_v16 = vmul.f32 %v3606_v58, %v7683_v59 }
 0xc1c   : > { %v3610_v18 = vmul.f32 0.5, %v3609_v41 }
 0xc1d   : > { %v3682_v25 = vmul.f32 %v7546_v1, %v3671_v16 }
 0xc1e   : > { %v3611_v45 = vsub.f32 1.5, %v3610_v18 }
 0xc1f   : > { %v3693_v17 = vadd.f32 %v7550_v42, %v3682_v25  ;;  %v5614_v59 = vpop.eup %5613 }
 0xc20   : > { %v3612_v27 = vmul.f32 %v5612_v3, %v3611_v45  ;;  %v3618_v28 = vmul.f32 %v5614_v59, %v3552_v24  ;;  %vm3624_vm6 = vweird.f32 %v5614_v59  ;;  %v7781_v45 = vld [vmem:[%s8383_s16] ss:$0 sm:$0xff] }
 0xc21   : > { %vm3625_vm8 = vmor %vm3623_vm7, %vm3624_vm6 }
 0xc22   : > { %v3616_v37 = vsel %vm3615_vm5, %v5612_v3, %v3612_v27  ;;  %v3619_v46 = vmul.f32 %v5614_v59, %v3618_v28 }
 0xc23   : > { %v3672_v26 = vmul.f32 %v3616_v37, %v7690_v60 }
 0xc24   : > { %v3620_v23 = vmul.f32 0.5, %v3619_v46 }
 0xc25   : > { %v3683_v2 = vmul.f32 %v7546_v1, %v3672_v26 }
 0xc26   : > { %v3621_v44 = vsub.f32 1.5, %v3620_v23 }
 0xc27   : > { %v3694_v19 = vadd.f32 %v7550_v42, %v3683_v2 }
 0xc28   : > { %v3622_v0 = vmul.f32 %v5614_v59, %v3621_v44 }
 0xc29   : > { %v3702_v21 = vpack.c.bf16 %v3694_v19, %v3693_v17 }
 0xc2a   : > { %v3626_v33 = vsel %vm3625_vm8, %v5614_v59, %v3622_v0 }
 0xc2b   : > { %5067 = vmatmul.msk.bf16.gmra.mxu1 %vm906_vm1, %v3702_v21  ;;  %v3673_v50 = vmul.f32 %v3626_v33, %v7704_v20 }
 0xc2d   : > { %v3684_v30 = vmul.f32 %v7546_v1, %v3673_v50 }
 0xc2f   : > { %v3695_v29 = vadd.f32 %v7550_v42, %v3684_v30 }
 0xc37   : > { %v3525_v52 = vpop.xlane.xlu1 %3524 }
 0xc38   : > { %v3542_v22 = vmul.f32 %v3525_v52, %v6108_v31 }
 0xc3a   : > { %v3553_v60 = vadd.f32 1e-05, %v3542_v22 }
 0xc3c   : > { %5615 = vrsqrt.f32 %v3553_v60  ;;  %vm3633_vm10 = vweird.f32 %v3553_v60 }
 0xc42   : > { %v5616_v35 = vpop.eup %5615 }
 0xc43   : > { %v3628_v15 = vmul.f32 %v5616_v35, %v3553_v60  ;;  %vm3634_vm9 = vweird.f32 %v5616_v35 }
 0xc44   : > { %vm3635_vm11 = vmor %vm3633_vm10, %vm3634_vm9 }
 0xc45   : > { %v3629_v32 = vmul.f32 %v5616_v35, %v3628_v15 }
 0xc47   : > { %v3630_v56 = vmul.f32 0.5, %v3629_v32 }
 0xc49   : > { %v3631_v40 = vsub.f32 1.5, %v3630_v56 }
 0xc4b   : > { %v3632_v43 = vmul.f32 %v5616_v35, %v3631_v40 }
 0xc4d   : > { %v3636_v5 = vsel %vm3635_vm11, %v5616_v35, %v3632_v43 }
 0xc4e   : > { %v3674_v12 = vmul.f32 %v3636_v5, %v7712_v48 }
 0xc50   : > { %v3685_v36 = vmul.f32 %v7546_v1, %v3674_v12 }
 0xc52   : > { %v3696_v54 = vadd.f32 %v7550_v42, %v3685_v36 }
 0xc54   : > { %v3703_v3 = vpack.c.bf16 %v3696_v54, %v3695_v29 }
 0xc56   : > { %5068 = vmatmul.msk.bf16.gmra.mxu1 %vm906_vm1, %v3703_v3 }
 0xc6c   : > { %v3528_v7 = vpop.xlane.xlu2 %3527 }
 0xc6d   : > { %v3543_v20 = vmul.f32 %v3528_v7, %v6108_v31 }
 0xc6f   : > { %v3554_v9 = vadd.f32 1e-05, %v3543_v20 }
 0xc71   : > { %5617 = vrsqrt.f32 %v3554_v9  ;;  %vm3643_vm13 = vweird.f32 %v3554_v9 }
 0xc77   : > { %v5618_v49 = vpop.eup %5617  ;;  %v3531_v55 = vpop.xlane.xlu0 %3530 }
 0xc78   : > { %v3638_v48 = vmul.f32 %v5618_v49, %v3554_v9  ;;  %v3544_v53 = vmul.f32 %v3531_v55, %v6108_v31  ;;  %vm3644_vm12 = vweird.f32 %v5618_v49 }
 0xc79   : > { %vm3645_vm14 = vmor %vm3643_vm13, %vm3644_vm12 }
 0xc7a   : > { %v3639_v41 = vmul.f32 %v5618_v49, %v3638_v48  ;;  %v3555_v58 = vadd.f32 1e-05, %v3544_v53 }
 0xc7c   : > { %v3640_v18 = vmul.f32 0.5, %v3639_v41  ;;  %5619 = vrsqrt.f32 %v3555_v58  ;;  %vm3653_vm0 = vweird.f32 %v3555_v58 }
 0xc7e   : > { %v3641_v16 = vsub.f32 1.5, %v3640_v18 }
 0xc7f   : > { %v3753_v6 = vpop.f32.mrf.mxu0 }
 0xc80   : > { %v7784_v27 = vadd.f32 %v7781_v45, %v3753_v6  ;;  %v3642_v26 = vmul.f32 %v5618_v49, %v3641_v16 }
 0xc82   : > { %v5620_v37 = vpop.eup %5619  ;;  %v7787_v14 = vmul.f32 0.70710677, %v7784_v27  ;;  %v3646_v19 = vsel %vm3645_vm14, %v5618_v49, %v3642_v26 }
 0xc83   : > { %v3648_v25 = vmul.f32 %v5620_v37, %v3555_v58  ;;  %vm3654_vm15 = vweird.f32 %v5620_v37  ;;  %v3675_v60 = vmul.f32 %v3646_v19, %v7721_v47 }
 0xc84   : > { %v7790_v2 = vand.u32 2147483647, %v7787_v14  ;;  %vm3655_vm2 = vmor %vm3653_vm0, %vm3654_vm15 }
 0xc85   : > { %v3649_v24 = vmul.f32 %v5620_v37, %v3648_v25  ;;  %v3686_v56 = vmul.f32 %v7546_v1, %v3675_v60 }
 0xc86   : > { %v3815_v17 = vmul.f32 0.3275911, %v7790_v2  ;;  %v4101_v6 = vsub.f32 0.0, %v7790_v2 }
 0xc87   : > { %v3650_v21 = vmul.f32 0.5, %v3649_v24  ;;  %v3755_v59 = vpop.f32.mrf.mxu0  ;;  %v3697_v12 = vadd.f32 %v7550_v42, %v3686_v56 }
 0xc88   : > { %v3826_v28 = vadd.f32 1.0, %v3815_v17  ;;  %v7794_v46 = vadd.f32 %v7781_v45, %v3755_v59 }
 0xc89   : > { %v3651_v52 = vsub.f32 1.5, %v3650_v21  ;;  %v3534_v22 = vpop.xlane.xlu1 %3533 }
 0xc8a   : > { %5621 = vrcp.f32 %v3826_v28  ;;  %v7798_v44 = vmul.f32 0.70710677, %v7794_v46  ;;  %v3545_v35 = vmul.f32 %v3534_v22, %v6108_v31  ;;  %v3848_v36 = vand.u32 2147483648, %v3826_v28 }
 0xc8b   : > { %v3652_v23 = vmul.f32 %v5620_v37, %v3651_v52  ;;  %v3846_v54 = vand.u32 2147483647, %v3826_v28  ;;  %vm3842_vm4 = vweird.f32 %v3826_v28 }
 0xc8c   : > { %v7802_v15 = vand.u32 2147483647, %v7798_v44  ;;  %v3556_v33 = vadd.f32 1e-05, %v3545_v35 }
 0xc8d   : > { %v3656_v0 = vsel %vm3655_vm2, %v5620_v37, %v3652_v23  ;;  %vm3847_vm6 = vcmp.eq.f32.partialorder %v3846_v54, 8.507059e+37  ;;  %v4112_v23 = vmul.f32 %v4101_v6, %v7790_v2 }
 0xc8e   : > { %v3676_v32 = vmul.f32 %v3656_v0, %v7736_v8  ;;  %v3816_v47 = vmul.f32 0.3275911, %v7802_v15  ;;  %5623 = vrsqrt.f32 %v3556_v33  ;;  %vm3663_vm9 = vweird.f32 %v3556_v33 }
 0xc90   : > { %v5622_v40 = vpop.eup %5621  ;;  %v3687_v50 = vmul.f32 %v7546_v1, %v3676_v32  ;;  %v3827_v5 = vadd.f32 1.0, %v3816_v47  ;;  %v3849_v1 = vor.u32 1.1754944e-38, %v3848_v36  ;;  %v5703_v36 = vld [vmem:[%s6066_s24] ss:$0 sm:$0xff] }
 0xc91   : > { %v3838_v43 = vmul.f32 %v5622_v40, %v3826_v28  ;;  %vm3843_vm3 = vweird.f32 %v5622_v40 }
 0xc92   : > { %v3698_v31 = vadd.f32 %v7550_v42, %v3687_v50  ;;  %5625 = vrcp.f32 %v3827_v5  ;;  %vm3844_vm5 = vmor %vm3842_vm4, %vm3843_vm3  ;;  %v3863_v19 = vand.u32 2147483648, %v3827_v5  ;;  %vm3857_vm10 = vweird.f32 %v3827_v5 }
 0xc93   : > { %v3839_v30 = vsub.f32 1.0, %v3838_v43  ;;  %v3861_v52 = vand.u32 2147483647, %v3827_v5  ;;  %v5702_v43 = vld [vmem:[%s6060_s17] ss:$0 sm:$0xff]  ;;  %vm4167_vm3 = vcmp.lt.f32.partialorder %v7787_v14, 0.0 }
 0xc94   : > { %v3704_v29 = vpack.c.bf16 %v3698_v31, %v3697_v12  ;;  %v5624_v3 = vpop.eup %5623  ;;  %v3864_v50 = vor.u32 1.1754944e-38, %v3863_v19  ;;  %v4123_v12 = vmul.f32 1.442695, %v4112_v23 }
 0xc95   : > { %v3840_v8 = vmul.f32 %v5622_v40, %v3839_v30  ;;  %v3658_v7 = vmul.f32 %v5624_v3, %v3556_v33  ;;  %vm3664_vm7 = vweird.f32 %v5624_v3  ;;  %vm3862_vm13 = vcmp.eq.f32.partialorder %v3861_v52, 8.507059e+37 }
 0xc96   : > { %5069 = vmatmul.msk.bf16.gmra.mxu1 %vm906_vm1, %v3704_v29  ;;  %vm3665_vm11 = vmor %vm3663_vm9, %vm3664_vm7  ;;  %vm4168_vm9 = vcmp.lt.f32.partialorder %v7798_v44, 0.0 }
 0xc97   : > { %v3841_v20 = vadd.f32 %v5622_v40, %v3840_v8  ;;  %v3659_v55 = vmul.f32 %v5624_v3, %v3658_v7  ;;  %v4102_v8 = vsub.f32 0.0, %v7802_v15 }
 0xc98   : > { %v3758_v9 = vpop.f32.mrf.mxu1  ;;  %v5626_v49 = vpop.eup %5625 }
 0xc99   : > { %v7812_v42 = vadd.f32 %v7781_v45, %v3758_v9  ;;  %v3845_v48 = vsel %vm3844_vm5, %v5622_v40, %v3841_v20  ;;  %v3853_v53 = vmul.f32 %v5626_v49, %v3827_v5  ;;  %v3660_v58 = vmul.f32 0.5, %v3659_v55 }
 0xc9a   : > { %v7814_v41 = vsel %vm3847_vm6, %v3849_v1, %v3845_v48  ;;  %vm3858_vm8 = vweird.f32 %v5626_v49 }
 0xc9b   : > { %v7817_v18 = vmul.f32 0.70710677, %v7812_v42  ;;  %v4002_v16 = vmul.f32 1.0614054, %v7814_v41  ;;  %v3854_v37 = vsub.f32 1.0, %v3853_v53  ;;  %v3661_v26 = vsub.f32 1.5, %v3660_v58  ;;  %vm7827_vm12 = vmor %vm3857_vm10, %vm3858_vm8 }
 0xc9d   : > { %v7822_v25 = vand.u32 2147483647, %v7817_v18  ;;  %v4013_v24 = vadd.f32 -1.4531521, %v4002_v16  ;;  %v3855_v17 = vmul.f32 %v5626_v49, %v3854_v37  ;;  %v3662_v21 = vmul.f32 %v5624_v3, %v3661_v26 }
 0xc9e   : > { %v4113_v16 = vmul.f32 %v4102_v8, %v7802_v15 }
 0xc9f   : > { %v3817_v59 = vmul.f32 0.3275911, %v7822_v25  ;;  %v4024_v28 = vmul.f32 %v4013_v24, %v7814_v41  ;;  %v3856_v60 = vadd.f32 %v5626_v49, %v3855_v17  ;;  %v3666_v0 = vsel %vm3665_vm11, %v5624_v3, %v3662_v21 }
 0xca0   : > { %v3760_v22 = vpop.f32.mrf.mxu1  ;;  %v3677_v56 = vmul.f32 %v3666_v0, %v7747_v62  ;;  %v4125_v52 = vmul.f32 1.442695, %v4113_v16 }
 0xca1   : > { %v7831_v32 = vadd.f32 1.0, %v3817_v59  ;;  %v7834_v33 = vadd.f32 %v7781_v45, %v3760_v22  ;;  %v4035_v47 = vadd.f32 1.4214138, %v4024_v28  ;;  %v3860_v40 = vsel %vm7827_vm12, %v5626_v49, %v3856_v60 }
 0xca2   : > { %v3688_v5 = vmul.f32 %v5702_v43, %v3677_v56  ;;  %v7845_v30 = vsel %vm3862_vm13, %v3864_v50, %v3860_v40 }
 0xca3   : > { %5627 = vrcp.f32 %v7831_v32  ;;  %v7841_v2 = vmul.f32 0.70710677, %v7834_v33  ;;  %v4046_v31 = vmul.f32 %v4035_v47, %v7814_v41  ;;  %v4003_v3 = vmul.f32 1.0614054, %v7845_v30 }
 0xca4   : > { %v3699_v29 = vadd.f32 %v5703_v36, %v3688_v5  ;;  %5629 = vpow2.f32 %v4123_v12  ;;  %v3876_v15 = vand.u32 2147483647, %v7831_v32  ;;  %v3878_v60 = vand.u32 2147483648, %v7831_v32 }
 0xca5   : > { %v7848_v62 = vand.u32 2147483647, %v7841_v2  ;;  %v4057_v54 = vadd.f32 -0.28449672, %v4046_v31  ;;  %v4014_v48 = vadd.f32 -1.4531521, %v4003_v3  ;;  %vm3872_vm15 = vweird.f32 %v7831_v32 }
 0xca6   : > { %v3705_v1 = vpack.c.bf16 %v3699_v29, %v3699_v29  ;;  %v3879_v36 = vor.u32 1.1754944e-38, %v3878_v60  ;;  %vm3877_vm2 = vcmp.eq.f32.partialorder %v3876_v15, 8.507059e+37 }
 0xca7   : > { %v3818_v7 = vmul.f32 0.3275911, %v7848_v62  ;;  %v4068_v55 = vmul.f32 %v4057_v54, %v7814_v41  ;;  %v4025_v26 = vmul.f32 %v4014_v48, %v7845_v30  ;;  %v4103_v48 = vsub.f32 0.0, %v7822_v25 }
 0xca8   : > { %v3763_v20 = vpop.f32.mrf.mxu1  ;;  %5070 = vmatmul.msk.bf16.gmra.mxu1 %vm906_vm1, %v3705_v1 }
 0xca9   : > { %v5628_v9 = vpop.eup %5627  ;;  %v7855_v49 = vadd.f32 %v7781_v45, %v3763_v20  ;;  %v7859_v58 = vadd.f32 1.0, %v3818_v7  ;;  %v4079_v37 = vadd.f32 0.2548296, %v4068_v55  ;;  %v4036_v59 = vadd.f32 1.4214138, %v4025_v26 }
 0xcaa   : > { %v3868_v53 = vmul.f32 %v5628_v9, %v7831_v32  ;;  %v5630_v28 = vpop.eup %5629  ;;  %vm3873_vm14 = vweird.f32 %v5628_v9  ;;  %v3782_v32 = vmul.f32 0.5, %v7784_v27 }
 0xcab   : > { %v7864_v6 = vmul.f32 0.70710677, %v7855_v49  ;;  %5631 = vrcp.f32 %v7859_v58  ;;  %v4090_v21 = vmul.f32 %v4079_v37, %v7814_v41  ;;  %v4047_v0 = vmul.f32 %v4036_v59, %v7845_v30  ;;  %vm7882_vm0 = vmor %vm3872_vm15, %vm3873_vm14 }
 0xcac   : > { %v3869_v24 = vsub.f32 1.0, %v3868_v53  ;;  %v3891_v7 = vand.u32 2147483647, %v7859_v58  ;;  %v3893_v20 = vand.u32 2147483648, %v7859_v58  ;;  %vm3887_vm5 = vweird.f32 %v7859_v58 }
 0xcad   : > { %v7869_v17 = vand.u32 2147483647, %v7864_v6  ;;  %v4145_v35 = vmul.f32 %v5630_v28, %v4090_v21  ;;  %v4058_v5 = vadd.f32 -0.28449672, %v4047_v0 }
 0xcae   : > { %v3870_v19 = vmul.f32 %v5628_v9, %v3869_v24  ;;  %v3894_v21 = vor.u32 1.1754944e-38, %v3893_v20  ;;  %vm3892_vm7 = vcmp.eq.f32.partialorder %v3891_v7, 8.507059e+37 }
 0xcaf   : > { %v3819_v22 = vmul.f32 0.3275911, %v7869_v17  ;;  %v4156_v43 = vsub.f32 1.0, %v4145_v35  ;;  %v4069_v3 = vmul.f32 %v4058_v5, %v7845_v30  ;;  %v4105_v44 = vsub.f32 0.0, %v7869_v17 }
 0xcb0   : > { %v3765_v23 = vpop.f32.mrf.mxu1  ;;  %v3871_v56 = vadd.f32 %v5628_v9, %v3870_v19 }
 0xcb1   : > { %v7877_v47 = vadd.f32 1.0, %v3819_v22  ;;  %v7880_v41 = vadd.f32 %v7781_v45, %v3765_v23  ;;  %v5632_v40 = vpop.eup %5631  ;;  %v4178_v54 = vsub.f32 0.0, %v4156_v43  ;;  %v4080_v16 = vadd.f32 0.2548296, %v4069_v3 }
 0xcb2   : > { %v3883_v12 = vmul.f32 %v5632_v40, %v7859_v58  ;;  %v3875_v31 = vsel %vm7882_vm0, %v5628_v9, %v3871_v56  ;;  %vm3888_vm4 = vweird.f32 %v5632_v40  ;;  %v4114_v23 = vmul.f32 %v4103_v48, %v7822_v25 }
 0xcb3   : > { %5633 = vrcp.f32 %v7877_v47  ;;  %v7892_v8 = vmul.f32 0.70710677, %v7880_v41  ;;  %v7898_v1 = vsel %vm3877_vm2, %v3879_v36, %v3875_v31  ;;  %v4189_v55 = vsel %vm4167_vm3, %v4178_v54, %v4156_v43  ;;  %vm3889_vm6 = vmor %vm3887_vm5, %vm3888_vm4 }
 0xcb4   : > { %5635 = vpow2.f32 %v4125_v52  ;;  %v3884_v29 = vsub.f32 1.0, %v3883_v12  ;;  %v4200_v53 = vadd.f32 1.0, %v4189_v55  ;;  %v4004_v37 = vmul.f32 1.0614054, %v7898_v1 }
 0xcb5   : > { %v7901_v27 = vand.u32 2147483647, %v7892_v8  ;;  %v4091_v52 = vmul.f32 %v4080_v16, %v7845_v30  ;;  %v4104_v56 = vsub.f32 0.0, %v7848_v62  ;;  %v3906_v50 = vand.u32 2147483647, %v7877_v47 }
 0xcb6   : > { %v3885_v9 = vmul.f32 %v5632_v40, %v3884_v29  ;;  %v7908_v28 = vmul.f32 %v4200_v53, %v3782_v32  ;;  %v4015_v22 = vadd.f32 -1.4531521, %v4004_v37  ;;  %v3908_v43 = vand.u32 2147483648, %v7877_v47 }
 0xcb7   : > { %v3820_v14 = vmul.f32 0.3275911, %v7901_v27  ;;  %v3783_v25 = vmul.f32 0.5, %v7794_v46  ;;  %vm3902_vm10 = vweird.f32 %v7877_v47  ;;  %v4127_v29 = vmul.f32 1.442695, %v4114_v23 }
 0xcb8   : > { %v3886_v24 = vadd.f32 %v5632_v40, %v3885_v9  ;;  %4224 = vadd.xlane.f32.xlu2 %v7908_v28  ;;  %v4026_v5 = vmul.f32 %v4015_v22, %v7898_v1  ;;  %v4115_v54 = vmul.f32 %v4104_v56, %v7848_v62  ;;  %v3909_v3 = vor.u32 1.1754944e-38, %v3908_v43 }
 0xcb9   : > { %v5634_v26 = vpop.eup %5633  ;;  %v7911_v15 = vadd.f32 1.0, %v3820_v14  ;;  %vm3907_vm12 = vcmp.eq.f32.partialorder %v3906_v50, 8.507059e+37  ;;  %vm4169_vm2 = vcmp.lt.f32.partialorder %v7817_v18, 0.0  ;;  %vm4170_vm3 = vcmp.lt.f32.partialorder %v7841_v2, 0.0 }
 0xcba   : > { %v5636_v19 = vpop.eup %5635  ;;  %v3898_v59 = vmul.f32 %v5634_v26, %v7877_v47  ;;  %v3890_v60 = vsel %vm3889_vm6, %v5632_v40, %v3886_v24  ;;  %vm3903_vm8 = vweird.f32 %v5634_v26  ;;  %v4037_v32 = vadd.f32 1.4214138, %v4026_v5 }
 0xcbb   : > { %v4146_v35 = vmul.f32 %v5636_v19, %v4091_v52  ;;  %v7915_v0 = vsel %vm3892_vm7, %v3894_v21, %v3890_v60  ;;  %5637 = vrcp.f32 %v7911_v15  ;;  %vm3904_vm11 = vmor %vm3902_vm10, %vm3903_vm8  ;;  %v4129_v62 = vmul.f32 1.442695, %v4115_v54 }
 0xcbc   : > { %v3899_v58 = vsub.f32 1.0, %v3898_v59  ;;  %v4005_v12 = vmul.f32 1.0614054, %v7915_v0  ;;  %v4048_v9 = vmul.f32 %v4037_v32, %v7898_v1  ;;  %5639 = vpow2.f32 %v4127_v29 }
 0xcbd   : > { %v4157_v40 = vsub.f32 1.0, %v4146_v35  ;;  %v4116_v52 = vmul.f32 %v4105_v44, %v7869_v17  ;;  %v3921_v22 = vand.u32 2147483647, %v7911_v15  ;;  %v3923_v60 = vand.u32 2147483648, %v7911_v15 }
 0xcbe   : > { %v3900_v30 = vmul.f32 %v5634_v26, %v3899_v58  ;;  %v4016_v7 = vadd.f32 -1.4531521, %v4005_v12  ;;  %v4059_v37 = vadd.f32 -0.28449672, %v4048_v9  ;;  %5641 = vpow2.f32 %v4129_v62 }
 0xcbf   : > { %v4179_v31 = vsub.f32 0.0, %v4157_v40  ;;  %vm3917_vm14 = vweird.f32 %v7911_v15  ;;  %v4131_v5 = vmul.f32 1.442695, %v4116_v52  ;;  %vm3922_vm0 = vcmp.eq.f32.partialorder %v3921_v22, 8.507059e+37 }
 0xcc0   : > { %v3901_v36 = vadd.f32 %v5634_v26, %v3900_v30  ;;  %v4027_v47 = vmul.f32 %v4016_v7, %v7915_v0  ;;  %vm4171_vm4 = vcmp.lt.f32.partialorder %v7864_v6, 0.0  ;;  %vm4172_vm5 = vcmp.lt.f32.partialorder %v7892_v8, 0.0 }
 0xcc1   : > { %v4190_v20 = vsel %vm4168_vm9, %v4179_v31, %v4157_v40  ;;  %v5638_v46 = vpop.eup %5637  ;;  %5643 = vpow2.f32 %v4131_v5 }
 0xcc2   : > { %v3905_v55 = vsel %vm3904_vm11, %v5634_v26, %v3901_v36  ;;  %v4201_v48 = vadd.f32 1.0, %v4190_v20  ;;  %v3913_v16 = vmul.f32 %v5638_v46, %v7911_v15  ;;  %v4038_v19 = vadd.f32 1.4214138, %v4027_v47  ;;  %v5640_v40 = vpop.eup %5639 }
 0xcc3   : > { %v3910_v53 = vsel %vm3907_vm12, %v3909_v3, %v3905_v55  ;;  %v4070_v26 = vmul.f32 %v4059_v37, %v7898_v1  ;;  %vm3918_vm13 = vweird.f32 %v5638_v46 }
 0xcc4   : > { %v4006_v14 = vmul.f32 1.0614054, %v3910_v53  ;;  %v7931_v24 = vmul.f32 %v4201_v48, %v3783_v25  ;;  %v3914_v21 = vsub.f32 1.0, %v3913_v16  ;;  %v4049_v23 = vmul.f32 %v4038_v19, %v7915_v0  ;;  %vm3919_vm15 = vmor %vm3917_vm14, %vm3918_vm13  ;;  %v5642_v15 = vpop.eup %5641 }
 0xcc5   : > { %v4081_v35 = vadd.f32 0.2548296, %v4070_v26  ;;  %v3924_v25 = vor.u32 1.1754944e-38, %v3923_v60 }
 0xcc6   : > { %v4017_v59 = vadd.f32 -1.4531521, %v4006_v14  ;;  %4226 = vadd.xlane.f32.xlu0 %v7931_v24  ;;  %v3915_v58 = vmul.f32 %v5638_v46, %v3914_v21  ;;  %v4060_v50 = vadd.f32 -0.28449672, %v4049_v23  ;;  %v3784_v14 = vmul.f32 0.5, %v7812_v42 }
 0xcc7   : > { %v4092_v43 = vmul.f32 %v4081_v35, %v7898_v1  ;;  %v4106_v1 = vsub.f32 0.0, %v7901_v27  ;;  %v5644_v22 = vpop.eup %5643 }
 0xcc8   : > { %v4028_v56 = vmul.f32 %v4017_v59, %v3910_v53  ;;  %v3916_v17 = vadd.f32 %v5638_v46, %v3915_v58  ;;  %v4071_v12 = vmul.f32 %v4060_v50, %v7915_v0 }
 0xcc9   : > { %v4147_v31 = vmul.f32 %v5640_v40, %v4092_v43  ;;  %v4117_v62 = vmul.f32 %v4106_v1, %v7901_v27 }
 0xcca   : > { %v4039_v30 = vadd.f32 1.4214138, %v4028_v56  ;;  %v3920_v36 = vsel %vm3919_vm15, %v5638_v46, %v3916_v17  ;;  %v4082_v29 = vadd.f32 0.2548296, %v4071_v12  ;;  %v3785_v56 = vmul.f32 0.5, %v7834_v33 }
 0xccb   : > { %v3925_v54 = vsel %vm3922_vm0, %v3924_v25, %v3920_v36  ;;  %v4158_v3 = vsub.f32 1.0, %v4147_v31  ;;  %v4133_v27 = vmul.f32 1.442695, %v4117_v62 }
 0xccc   : > { %v4050_v32 = vmul.f32 %v4039_v30, %v3910_v53  ;;  %v4007_v20 = vmul.f32 1.0614054, %v3925_v54  ;;  %v4093_v9 = vmul.f32 %v4082_v29, %v7915_v0 }
 0xccd   : > { %v4180_v55 = vsub.f32 0.0, %v4158_v3  ;;  %5645 = vpow2.f32 %v4133_v27 }
 0xcce   : > { %v4061_v7 = vadd.f32 -0.28449672, %v4050_v32  ;;  %v4018_v48 = vadd.f32 -1.4531521, %v4007_v20  ;;  %v4148_v47 = vmul.f32 %v5642_v15, %v4093_v9  ;;  %v3786_v32 = vmul.f32 0.5, %v7855_v49 }
 0xccf   : > { %v4191_v16 = vsel %vm4169_vm2, %v4180_v55, %v4158_v3 }
 0xcd0   : > { %v4072_v44 = vmul.f32 %v4061_v7, %v3910_v53  ;;  %v4029_v37 = vmul.f32 %v4018_v48, %v3925_v54  ;;  %v4202_v19 = vadd.f32 1.0, %v4191_v16  ;;  %v4159_v26 = vsub.f32 1.0, %v4148_v47 }
 0xcd2   : > { %v4083_v46 = vadd.f32 0.2548296, %v4072_v44  ;;  %v4040_v52 = vadd.f32 1.4214138, %v4029_v37  ;;  %v7950_v60 = vmul.f32 %v4202_v19, %v3784_v14  ;;  %v4181_v18 = vsub.f32 0.0, %v4159_v26 }
 0xcd3   : > { %v3768_v21 = vpop.f32.mrf.mxu1  ;;  %v5646_v20 = vpop.eup %5645 }
 0xcd4   : > { %v7948_v59 = vadd.f32 %v7781_v45, %v3768_v21  ;;  %v4094_v0 = vmul.f32 %v4083_v46, %v3910_v53  ;;  %v4051_v58 = vmul.f32 %v4040_v52, %v3925_v54  ;;  %4228 = vadd.xlane.f32.xlu1 %v7950_v60  ;;  %v4192_v35 = vsel %vm4170_vm3, %v4181_v18, %v4159_v26 }
 0xcd5   : > { %v4203_v50 = vadd.f32 1.0, %v4192_v35 }
 0xcd6   : > { %v7954_v23 = vmul.f32 0.70710677, %v7948_v59  ;;  %v4149_v42 = vmul.f32 %v5644_v22, %v4094_v0  ;;  %v4062_v30 = vadd.f32 -0.28449672, %v4051_v58 }
 0xcd7   : > { %v7959_v40 = vmul.f32 %v4203_v50, %v3785_v56 }
 0xcd8   : > { %v3810_v53 = vand.u32 2147483647, %v7954_v23  ;;  %v4160_v43 = vsub.f32 1.0, %v4149_v42  ;;  %v4073_v25 = vmul.f32 %v4062_v30, %v3925_v54  ;;  %vm4173_vm14 = vcmp.lt.f32.partialorder %v7954_v23, 0.0 }
 0xcd9   : > { %4230 = vadd.xlane.f32.xlu2 %v7959_v40 }
 0xcda   : > { %v3821_v17 = vmul.f32 0.3275911, %v3810_v53  ;;  %v4182_v2 = vsub.f32 0.0, %v4160_v43  ;;  %v4084_v29 = vadd.f32 0.2548296, %v4073_v25  ;;  %v4107_v22 = vsub.f32 0.0, %v3810_v53 }
 0xcdb   : > { %v3770_v5 = vpop.f32.mrf.mxu1 }
 0xcdc   : > { %v3832_v12 = vadd.f32 1.0, %v3821_v17  ;;  %v7964_v31 = vadd.f32 %v7781_v45, %v3770_v5  ;;  %v4193_v33 = vsel %vm4171_vm4, %v4182_v2, %v4160_v43  ;;  %v4095_v6 = vmul.f32 %v4084_v29, %v3925_v54 }
 0xcdd   : > { %v4204_v36 = vadd.f32 1.0, %v4193_v33  ;;  %v3787_v54 = vmul.f32 0.5, %v7880_v41  ;;  %v4118_v35 = vmul.f32 %v4107_v22, %v3810_v53 }
 0xcde   : > { %5647 = vrcp.f32 %v3832_v12  ;;  %v7968_v3 = vmul.f32 0.70710677, %v7964_v31  ;;  %v4150_v1 = vmul.f32 %v5646_v20, %v4095_v6  ;;  %v3938_v46 = vand.u32 2147483648, %v3832_v12 }
 0xcdf   : > { %v7970_v7 = vmul.f32 %v4204_v36, %v3786_v32  ;;  %v3936_v62 = vand.u32 2147483647, %v3832_v12  ;;  %vm3932_vm7 = vweird.f32 %v3832_v12  ;;  %v4135_v30 = vmul.f32 1.442695, %v4118_v35 }
 0xce0   : > { %v7973_v15 = vand.u32 2147483647, %v7968_v3  ;;  %v4161_v49 = vsub.f32 1.0, %v4150_v1  ;;  %v3939_v0 = vor.u32 1.1754944e-38, %v3938_v46 }
 0xce1   : > { %4232 = vadd.xlane.f32.xlu0 %v7970_v7  ;;  %vm3937_vm9 = vcmp.eq.f32.partialorder %v3936_v62, 8.507059e+37 }
 0xce2   : > { %v3822_v9 = vmul.f32 0.3275911, %v7973_v15  ;;  %v4183_v47 = vsub.f32 0.0, %v4161_v49 }
 0xce4   : > { %v5648_v55 = vpop.eup %5647  ;;  %v3833_v48 = vadd.f32 1.0, %v3822_v9  ;;  %v4194_v37 = vsel %vm4172_vm5, %v4183_v47, %v4161_v49 }
 0xce5   : > { %v3928_v44 = vmul.f32 %v5648_v55, %v3832_v12  ;;  %vm3933_vm6 = vweird.f32 %v5648_v55  ;;  %v4205_v19 = vadd.f32 1.0, %v4194_v37 }
 0xce6   : > { %5649 = vrcp.f32 %v3833_v48  ;;  %vm3934_vm8 = vmor %vm3932_vm7, %vm3933_vm6  ;;  %v3953_v25 = vand.u32 2147483648, %v3833_v48  ;;  %vm3947_vm11 = vweird.f32 %v3833_v48  ;;  %v3951_v12 = vand.u32 2147483647, %v3833_v48 }
 0xce7   : > { %v3929_v16 = vsub.f32 1.0, %v3928_v44  ;;  %v7979_v21 = vmul.f32 %v4205_v19, %v3787_v54  ;;  %5651 = vpow2.f32 %v4135_v30  ;;  %v4108_v19 = vsub.f32 0.0, %v7973_v15 }
 0xce8   : > { %v3954_v29 = vor.u32 1.1754944e-38, %v3953_v25  ;;  %vm3952_vm13 = vcmp.eq.f32.partialorder %v3951_v12, 8.507059e+37  ;;  %vm4174_vm6 = vcmp.lt.f32.partialorder %v7968_v3, 0.0 }
 0xce9   : > { %v3930_v14 = vmul.f32 %v5648_v55, %v3929_v16  ;;  %4234 = vadd.xlane.f32.xlu1 %v7979_v21  ;;  %v3788_v16 = vmul.f32 0.5, %v7948_v59 }
 0xceb   : > { %v3931_v26 = vadd.f32 %v5648_v55, %v3930_v14 }
 0xcec   : > { %v5650_v52 = vpop.eup %5649 }
 0xced   : > { %v3935_v8 = vsel %vm3934_vm8, %v5648_v55, %v3931_v26  ;;  %v3943_v18 = vmul.f32 %v5650_v52, %v3833_v48  ;;  %vm3948_vm10 = vweird.f32 %v5650_v52  ;;  %v5652_v53 = vpop.eup %5651 }
 0xcee   : > { %v3940_v41 = vsel %vm3937_vm9, %v3939_v0, %v3935_v8  ;;  %vm3949_vm12 = vmor %vm3947_vm11, %vm3948_vm10  ;;  %v5817_v0 = vmov 128.0  }
 0xcef   : > { %v4008_v42 = vmul.f32 1.0614054, %v3940_v41  ;;  %v3944_v58 = vsub.f32 1.0, %v3943_v18  ;;  %5653 = vrcp.f32 %v5817_v0 }
 0xcf1   : > { %v4019_v27 = vadd.f32 -1.4531521, %v4008_v42  ;;  %v3945_v50 = vmul.f32 %v5650_v52, %v3944_v58 }
 0xcf3   : > { %v4030_v56 = vmul.f32 %v4019_v27, %v3940_v41  ;;  %v3946_v5 = vadd.f32 %v5650_v52, %v3945_v50 }
 0xcf5   : > { %v4041_v43 = vadd.f32 1.4214138, %v4030_v56  ;;  %v3950_v36 = vsel %vm3949_vm12, %v5650_v52, %v3946_v5  ;;  %v4119_v52 = vmul.f32 %v4108_v19, %v7973_v15  ;;  %v5654_v22 = vpop.eup %5653 }
 0xcf6   : > { %v3955_v20 = vsel %vm3952_vm13, %v3954_v29, %v3950_v36  ;;  %v4247_v56 = vmul.f32 128.0, %v5654_v22  ;;  %vm4251_vm0 = vweird.f32 %v5654_v22 }
 0xcf7   : > { %v4052_v17 = vmul.f32 %v4041_v43, %v3940_v41  ;;  %v4009_v55 = vmul.f32 1.0614054, %v3955_v20  ;;  %v4137_v58 = vmul.f32 1.442695, %v4119_v52 }
 0xcf8   : > { %v4248_v30 = vsub.f32 1.0, %v4247_v56 }
 0xcf9   : > { %v4063_v2 = vadd.f32 -0.28449672, %v4052_v17  ;;  %v4020_v47 = vadd.f32 -1.4531521, %v4009_v55 }
 0xcfb   : > { %v4074_v33 = vmul.f32 %v4063_v2, %v3940_v41  ;;  %v4031_v46 = vmul.f32 %v4020_v47, %v3955_v20 }
 0xcfd   : > { %v4085_v32 = vadd.f32 0.2548296, %v4074_v33  ;;  %v4042_v37 = vadd.f32 1.4214138, %v4031_v46  ;;  %v4249_v33 = vmul.f32 %v5654_v22, %v4248_v30 }
 0xcff   : > { %v4096_v6 = vmul.f32 %v4085_v32, %v3940_v41  ;;  %v4053_v62 = vmul.f32 %v4042_v37, %v3955_v20  ;;  %v4250_v55 = vadd.f32 %v5654_v22, %v4249_v33 }
 0xd01   : > { %v4151_v1 = vmul.f32 %v5652_v53, %v4096_v6  ;;  %v4064_v59 = vadd.f32 -0.28449672, %v4053_v62 }
 0xd03   : > { %v4162_v9 = vsub.f32 1.0, %v4151_v1  ;;  %v4075_v42 = vmul.f32 %v4064_v59, %v3955_v20 }
 0xd05   : > { %v4184_v49 = vsub.f32 0.0, %v4162_v9  ;;  %v4086_v43 = vadd.f32 0.2548296, %v4075_v42 }
 0xd07   : > { %v4195_v44 = vsel %vm4173_vm14, %v4184_v49, %v4162_v9  ;;  %v4097_v2 = vmul.f32 %v4086_v43, %v3955_v20 }
 0xd08   : > { %v4206_v48 = vadd.f32 1.0, %v4195_v44 }
 0xd0a   : > { %v7984_v54 = vmul.f32 %v4206_v48, %v3788_v16 }
 0xd0c   : > { %4236 = vadd.xlane.f32.xlu1 %v7984_v54 }
 0xd13   : > { %v3773_v14 = vpop.f32.mrf.mxu1 }
 0xd14   : > { %v7989_v26 = vadd.f32 %v7781_v45, %v3773_v14 }
 0xd16   : > { %v7992_v23 = vmul.f32 0.70710677, %v7989_v26 }
 0xd18   : > { %v7996_v8 = vand.u32 2147483647, %v7992_v23  ;;  %vm4175_vm14 = vcmp.lt.f32.partialorder %v7992_v23, 0.0 }
 0xd1a   : > { %v3823_v18 = vmul.f32 0.3275911, %v7996_v8 }
 0xd1b   : > { %v3775_v41 = vpop.f32.mrf.mxu1 }
 0xd1c   : > { %v3834_v27 = vadd.f32 1.0, %v3823_v18  ;;  %v8000_v35 = vadd.f32 %v7781_v45, %v3775_v41  ;;  %v4109_v18 = vsub.f32 0.0, %v7996_v8 }
 0xd1e   : > { %5655 = vrcp.f32 %v3834_v27  ;;  %v8003_v50 = vmul.f32 0.70710677, %v8000_v35  ;;  %v3968_v9 = vand.u32 2147483648, %v3834_v27  ;;  %v3966_v49 = vand.u32 2147483647, %v3834_v27 }
 0xd1f   : > { %5657 = vpow2.f32 %v4137_v58  ;;  %vm3962_vm2 = vweird.f32 %v3834_v27 }
 0xd20   : > { %v8006_v15 = vand.u32 2147483647, %v8003_v50  ;;  %v3969_v46 = vor.u32 1.1754944e-38, %v3968_v9  ;;  %vm3967_vm4 = vcmp.eq.f32.partialorder %v3966_v49, 8.507059e+37 }
 0xd22   : > { %v3824_v17 = vmul.f32 0.3275911, %v8006_v15 }
 0xd24   : > { %v5656_v5 = vpop.eup %5655  ;;  %v3835_v12 = vadd.f32 1.0, %v3824_v17 }
 0xd25   : > { %v3958_v25 = vmul.f32 %v5656_v5, %v3834_v27  ;;  %v5658_v32 = vpop.eup %5657  ;;  %v3778_v29 = vpop.f32.mrf.mxu1  ;;  %vm3963_vm15 = vweird.f32 %v5656_v5 }
 0xd26   : > { %5659 = vrcp.f32 %v3835_v12  ;;  %v4152_v6 = vmul.f32 %v5658_v32, %v4097_v2  ;;  %v8010_v53 = vadd.f32 %v7781_v45, %v3778_v29  ;;  %vm3964_vm3 = vmor %vm3962_vm2, %vm3963_vm15  ;;  %v8018_v45 = vsel %vm4251_vm0, %v5654_v22, %v4250_v55 }
 0xd27   : > { %v3959_v36 = vsub.f32 1.0, %v3958_v25  ;;  %v3983_v27 = vand.u32 2147483648, %v3835_v12  ;;  %v3981_v22 = vand.u32 2147483647, %v3835_v12  ;;  %v4120_v2 = vmul.f32 %v4109_v18, %v7996_v8 }
 0xd28   : > { %v8013_v44 = vmul.f32 0.70710677, %v8010_v53  ;;  %v4163_v20 = vsub.f32 1.0, %v4152_v6  ;;  %vm3977_vm7 = vweird.f32 %v3835_v12  ;;  %v4110_v29 = vsub.f32 0.0, %v8006_v15 }
 0xd29   : > { %v3960_v1 = vmul.f32 %v5656_v5, %v3959_v36  ;;  %v3984_v33 = vor.u32 1.1754944e-38, %v3983_v27  ;;  %vm3982_vm9 = vcmp.eq.f32.partialorder %v3981_v22, 8.507059e+37  ;;  %v4139_v55 = vmul.f32 1.442695, %v4120_v2 }
 0xd2a   : > { %v8016_v16 = vand.u32 2147483647, %v8013_v44  ;;  %v4185_v59 = vsub.f32 0.0, %v4163_v20  ;;  %vm4176_vm15 = vcmp.lt.f32.partialorder %v8003_v50, 0.0  ;;  %vm4177_vm0 = vcmp.lt.f32.partialorder %v8013_v44, 0.0 }
 0xd2b   : > { %v3961_v47 = vadd.f32 %v5656_v5, %v3960_v1  ;;  %v4225_v19 = vpop.xlane.xlu2 %4224 }
 0xd2c   : > { %v5660_v48 = vpop.eup %5659  ;;  %v3825_v62 = vmul.f32 0.3275911, %v8016_v16  ;;  %v4253_v58 = vmul.f32 %v8018_v45, %v4225_v19 }
 0xd2d   : > { %v3965_v37 = vsel %vm3964_vm3, %v5656_v5, %v3961_v47  ;;  %v3973_v14 = vmul.f32 %v5660_v48, %v3835_v12  ;;  %v3780_v0 = vpop.f32.mrf.mxu1  ;;  %vm3978_vm5 = vweird.f32 %v5660_v48  ;;  %v4196_v5 = vsel %vm4174_vm6, %v4185_v59, %v4163_v20 }
 0xd2e   : > { %v3970_v52 = vsel %vm3967_vm4, %v3969_v46, %v3965_v37  ;;  %v3836_v42 = vadd.f32 1.0, %v3825_v62  ;;  %v8025_v30 = vsub.f32 %v7908_v28, %v4253_v58  ;;  %vm3979_vm8 = vmor %vm3977_vm7, %vm3978_vm5  ;;  %v4207_v3 = vadd.f32 1.0, %v4196_v5 }
 0xd2f   : > { %v3974_v41 = vsub.f32 1.0, %v3973_v14  ;;  %v4010_v56 = vmul.f32 1.0614054, %v3970_v52  ;;  %v3789_v12 = vmul.f32 0.5, %v7964_v31  ;;  %v4121_v47 = vmul.f32 %v4110_v29, %v8006_v15 }
 0xd30   : > { %5661 = vrcp.f32 %v3836_v42  ;;  %v4275_v32 = vmul.f32 %v8025_v30, %v8025_v30  ;;  %v3996_v0 = vand.u32 2147483647, %v3836_v42  ;;  %v3998_v59 = vand.u32 2147483648, %v3836_v42 }
 0xd31   : > { %v3975_v43 = vmul.f32 %v5660_v48, %v3974_v41  ;;  %v4021_v17 = vadd.f32 -1.4531521, %v4010_v56  ;;  %5663 = vpow2.f32 %v4139_v55  ;;  %v4141_v27 = vmul.f32 1.442695, %v4121_v47 }
 0xd32   : > { %4286 = vadd.xlane.f32.xlu2 %v4275_v32  ;;  %vm3992_vm11 = vweird.f32 %v3836_v42  ;;  %vm3997_vm13 = vcmp.eq.f32.partialorder %v3996_v0, 8.507059e+37 }
 0xd33   : > { %v3976_v25 = vadd.f32 %v5660_v48, %v3975_v43  ;;  %v4032_v36 = vmul.f32 %v4021_v17, %v3970_v52  ;;  %v3999_v17 = vor.u32 1.1754944e-38, %v3998_v59  ;;  %5665 = vpow2.f32 %v4141_v27 }
 0xd35   : > { %v3980_v6 = vsel %vm3979_vm8, %v5660_v48, %v3976_v25  ;;  %v4043_v28 = vadd.f32 1.4214138, %v4032_v36  ;;  %v8034_v48 = vmul.f32 %v4207_v3, %v3789_v12 }
 0xd36   : > { %v3985_v1 = vsel %vm3982_vm9, %v3984_v33, %v3980_v6  ;;  %v5662_v9 = vpop.eup %5661  ;;  %v4111_v33 = vsub.f32 0.0, %v8016_v16 }
 0xd37   : > { %v4011_v8 = vmul.f32 1.0614054, %v3985_v1  ;;  %v3988_v49 = vmul.f32 %v5662_v9, %v3836_v42  ;;  %v4054_v20 = vmul.f32 %v4043_v28, %v3970_v52  ;;  %vm3993_vm10 = vweird.f32 %v5662_v9 }
 0xd38   : > { %vm3994_vm12 = vmor %vm3992_vm11, %vm3993_vm10  ;;  %v4122_v55 = vmul.f32 %v4111_v33, %v8016_v16 }
 0xd39   : > { %v4227_v46 = vpop.xlane.xlu0 %4226  ;;  %v4022_v37 = vadd.f32 -1.4531521, %v4011_v8  ;;  %v3989_v14 = vsub.f32 1.0, %v3988_v49  ;;  %v4065_v19 = vadd.f32 -0.28449672, %v4054_v20 }
 0xd3a   : > { %v4254_v62 = vmul.f32 %v8018_v45, %v4227_v46  ;;  %4238 = vadd.xlane.f32.xlu2 %v8034_v48  ;;  %v3790_v46 = vmul.f32 0.5, %v7989_v26 }
 0xd3b   : > { %v4033_v18 = vmul.f32 %v4022_v37, %v3985_v1  ;;  %v3990_v41 = vmul.f32 %v5662_v9, %v3989_v14  ;;  %v4076_v58 = vmul.f32 %v4065_v19, %v3970_v52  ;;  %v4143_v37 = vmul.f32 1.442695, %v4122_v55 }
 0xd3c   : > { %v8037_v31 = vsub.f32 %v7931_v24, %v4254_v62  ;;  %v5664_v24 = vpop.eup %5663 }
 0xd3d   : > { %v4044_v15 = vadd.f32 1.4214138, %v4033_v18  ;;  %v4087_v43 = vadd.f32 0.2548296, %v4076_v58  ;;  %v3991_v22 = vadd.f32 %v5662_v9, %v3990_v41  ;;  %5667 = vpow2.f32 %v4143_v37  ;;  %v5133_v37 = vld [vmem:[%s6034_s18 + $0x10] sm:$0xff] }
 0xd3e   : > { %v4276_v56 = vmul.f32 %v8037_v31, %v8037_v31 }
 0xd3f   : > { %v4055_v2 = vmul.f32 %v4044_v15, %v3985_v1  ;;  %v4098_v5 = vmul.f32 %v4087_v43, %v3970_v52  ;;  %v3995_v25 = vsel %vm3994_vm12, %v5662_v9, %v3991_v22  ;;  %v5666_v9 = vpop.eup %5665 }
 0xd40   : > { %4288 = vadd.xlane.f32.xlu0 %v4276_v56  ;;  %v4000_v36 = vsel %vm3997_vm13, %v3999_v17, %v3995_v25  ;;  %v3791_v17 = vmul.f32 0.5, %v8000_v35 }
 0xd41   : > { %v4066_v32 = vadd.f32 -0.28449672, %v4055_v2  ;;  %v4153_v42 = vmul.f32 %v5664_v24, %v4098_v5  ;;  %v4012_v29 = vmul.f32 1.0614054, %v4000_v36 }
 0xd43   : > { %v4077_v6 = vmul.f32 %v4066_v32, %v3985_v1  ;;  %v4164_v3 = vsub.f32 1.0, %v4153_v42  ;;  %v4023_v28 = vadd.f32 -1.4531521, %v4012_v29  ;;  %v5668_v5 = vpop.eup %5667 }
 0xd45   : > { %v4088_v8 = vadd.f32 0.2548296, %v4077_v6  ;;  %v4186_v12 = vsub.f32 0.0, %v4164_v3  ;;  %v4034_v49 = vmul.f32 %v4023_v28, %v4000_v36  ;;  %v3792_v6 = vmul.f32 0.5, %v8010_v53 }
 0xd47   : > { %v4099_v52 = vmul.f32 %v4088_v8, %v3985_v1  ;;  %v4197_v20 = vsel %vm4175_vm14, %v4186_v12, %v4164_v3  ;;  %v4045_v47 = vadd.f32 1.4214138, %v4034_v49  ;;  %v4229_v14 = vpop.xlane.xlu1 %4228 }
 0xd48   : > { %v4208_v62 = vadd.f32 1.0, %v4197_v20  ;;  %v4255_v0 = vmul.f32 %v8018_v45, %v4229_v14  ;;  %v5136_v20 = vld [vmem:[%s6034_s18 + $0x28] sm:$0xff] }
 0xd49   : > { %v4154_v19 = vmul.f32 %v5666_v9, %v4099_v52  ;;  %v4056_v59 = vmul.f32 %v4045_v47, %v4000_v36  ;;  %v5138_v9 = vld [vmem:[%s6034_s18 + $0x38] sm:$0xff]  ;;  %v5135_v47 = vld [vmem:[%s6034_s18 + $0x20] sm:$0xff]  ;;  %v5132_v14 = vld [vmem:[%s6034_s18 + $0x8] sm:$0xff] }
 0xd4a   : > { %v8047_v18 = vmul.f32 %v4208_v62, %v3790_v46  ;;  %v8050_v41 = vsub.f32 %v7950_v60, %v4255_v0  ;;  %4553 = vmatpush.bf16.msra.mxu3 %v5138_v9  ;;  %v5134_v46 = vld [vmem:[%s6034_s18 + $0x18] sm:$0xff]  ;;  %v5131_v0 = vld [vmem:[%s6034_s18] sm:$0xff] }
 0xd4b   : > { %v4165_v16 = vsub.f32 1.0, %v4154_v19  ;;  %v4067_v23 = vadd.f32 -0.28449672, %v4056_v59  ;;  %v8126_v9 = vld [vmem:[%s860_s15] ss:$0 sm:$0xff] }
 0xd4c   : > { %4240 = vadd.xlane.f32.xlu2 %v8047_v18  ;;  %v4277_v26 = vmul.f32 %v8050_v41, %v8050_v41  ;;  %v4231_v58 = vpop.xlane.xlu2 %4230 }
 0xd4d   : > { %v4187_v1 = vsub.f32 0.0, %v4165_v16  ;;  %v4078_v27 = vmul.f32 %v4067_v23, %v4000_v36  ;;  %v4256_v15 = vmul.f32 %v8018_v45, %v4231_v58 }
 0xd4e   : > { %4290 = vadd.xlane.f32.xlu0 %v4277_v26 }
 0xd4f   : > { %v4198_v56 = vsel %vm4176_vm15, %v4187_v1, %v4165_v16  ;;  %v4089_v22 = vadd.f32 0.2548296, %v4078_v27  ;;  %v8058_v60 = vsub.f32 %v7959_v40, %v4256_v15 }
 0xd50   : > { %v4209_v43 = vadd.f32 1.0, %v4198_v56 }
 0xd51   : > { %v4100_v2 = vmul.f32 %v4089_v22, %v4000_v36  ;;  %v4278_v50 = vmul.f32 %v8058_v60, %v8058_v60 }
 0xd52   : > { %v8064_v33 = vmul.f32 %v4209_v43, %v3791_v17 }
 0xd53   : > { %v4155_v32 = vmul.f32 %v5668_v5, %v4100_v2  ;;  %4292 = vadd.xlane.f32.xlu1 %v4278_v50 }
 0xd54   : > { %v4233_v25 = vpop.xlane.xlu0 %4232 }
 0xd55   : > { %v4257_v24 = vmul.f32 %v8018_v45, %v4233_v25  ;;  %v4166_v29 = vsub.f32 1.0, %v4155_v32 }
 0xd56   : > { %4242 = vadd.xlane.f32.xlu0 %v8064_v33 }
 0xd57   : > { %v8067_v42 = vsub.f32 %v7970_v7, %v4257_v24  ;;  %v4188_v40 = vsub.f32 0.0, %v4166_v29 }
 0xd59   : > { %v4279_v35 = vmul.f32 %v8067_v42, %v8067_v42  ;;  %v4199_v36 = vsel %vm4177_vm0, %v4188_v40, %v4166_v29 }
 0xd5a   : > { %v4210_v3 = vadd.f32 1.0, %v4199_v36 }
 0xd5b   : > { %4294 = vadd.xlane.f32.xlu1 %v4279_v35 }
 0xd5c   : > { %v8074_v28 = vmul.f32 %v4210_v3, %v3792_v6  ;;  %v4235_v7 = vpop.xlane.xlu1 %4234 }
 0xd5d   : > { %v4258_v55 = vmul.f32 %v8018_v45, %v4235_v7  ;;  %v8117_v7 = vld [vmem:[%s857_s5] ss:$0 sm:$0xff] }
 0xd5e   : > { %4244 = vadd.xlane.f32.xlu0 %v8074_v28 }
 0xd5f   : > { %v8079_v44 = vsub.f32 %v7979_v21, %v4258_v55  ;;  %v5137_v21 = vld [vmem:[%s6034_s18 + $0x30] sm:$0xff] }
 0xd60   : > { %4554 = vmatpush.bf16.msra.mxu3 %v5137_v21 }
 0xd61   : > { %v4280_v8 = vmul.f32 %v8079_v44, %v8079_v44 }
 0xd63   : > { %4296 = vadd.xlane.f32.xlu2 %v4280_v8 }
 0xd64   : > { %4555 = vmatpush.bf16.msra.mxu3 %v5136_v20 }
 0xd68   : > { %4556 = vmatpush.bf16.msra.mxu3 %v5135_v47 }
 0xd6c   : > { %4557 = vmatpush.bf16.msra.mxu3 %v5134_v46 }
 0xd70   : > { %4558 = vmatpush.bf16.msra.mxu3 %v5133_v37 }
 0xd74   : > { %4559 = vmatpush.bf16.msra.mxu3 %v5132_v14 }
 0xd78   : > { %4560 = vmatpush.bf16.msra.mxu3 %v5131_v0 }
 0xd7f   : > { %v4237_v53 = vpop.xlane.xlu1 %4236 }
 0xd80   : > { %v4259_v12 = vmul.f32 %v8018_v45, %v4237_v53 }
 0xd82   : > { %v8085_v49 = vsub.f32 %v7984_v54, %v4259_v12 }
 0xd84   : > { %v4281_v52 = vmul.f32 %v8085_v49, %v8085_v49 }
 0xd86   : > { %4298 = vadd.xlane.f32.xlu1 %v4281_v52 }
 0xda5   : > { %v4287_v54 = vpop.xlane.xlu2 %4286 }
 0xda6   : > { %v4308_v62 = vmul.f32 %v4287_v54, %v8018_v45 }
 0xda8   : > { %v4319_v19 = vadd.f32 1e-05, %v4308_v62 }
 0xdaa   : > { %5669 = vrsqrt.f32 %v4319_v19  ;;  %vm4336_vm3 = vweird.f32 %v4319_v19 }
 0xdad   : > { %v4239_v59 = vpop.xlane.xlu2 %4238 }
 0xdae   : > { %v4260_v16 = vmul.f32 %v8018_v45, %v4239_v59 }
 0xdb0   : > { %v5670_v1 = vpop.eup %5669  ;;  %v8101_v58 = vsub.f32 %v8034_v48, %v4260_v16 }
 0xdb1   : > { %v4331_v27 = vmul.f32 %v5670_v1, %v4319_v19  ;;  %vm4337_vm2 = vweird.f32 %v5670_v1 }
 0xdb2   : > { %v4282_v56 = vmul.f32 %v8101_v58, %v8101_v58  ;;  %vm4338_vm4 = vmor %vm4336_vm3, %vm4337_vm2 }
 0xdb3   : > { %v4289_v23 = vpop.xlane.xlu0 %4288  ;;  %v4332_v43 = vmul.f32 %v5670_v1, %v4331_v27 }
 0xdb4   : > { %v4309_v26 = vmul.f32 %v4289_v23, %v8018_v45  ;;  %4300 = vadd.xlane.f32.xlu2 %v4282_v56 }
 0xdb5   : > { %v4333_v22 = vmul.f32 0.5, %v4332_v43 }
 0xdb6   : > { %v4320_v15 = vadd.f32 1e-05, %v4309_v26 }
 0xdb7   : > { %v4334_v17 = vsub.f32 1.5, %v4333_v22 }
 0xdb8   : > { %5671 = vrsqrt.f32 %v4320_v15  ;;  %vm4346_vm6 = vweird.f32 %v4320_v15 }
 0xdb9   : > { %v4335_v5 = vmul.f32 %v5670_v1, %v4334_v17 }
 0xdbb   : > { %v4339_v32 = vsel %vm4338_vm4, %v5670_v1, %v4335_v5 }
 0xdbc   : > { %v4440_v55 = vmul.f32 %v4339_v32, %v8025_v30 }
 0xdbe   : > { %v5672_v2 = vpop.eup %5671  ;;  %v4454_v21 = vmul.f32 %v8117_v7, %v4440_v55 }
 0xdbf   : > { %v4341_v50 = vmul.f32 %v5672_v2, %v4320_v15  ;;  %v4241_v25 = vpop.xlane.xlu2 %4240  ;;  %vm4347_vm5 = vweird.f32 %v5672_v2 }
 0xdc0   : > { %v4261_v48 = vmul.f32 %v8018_v45, %v4241_v25  ;;  %vm4348_vm7 = vmor %vm4346_vm6, %vm4347_vm5  ;;  %v4468_v14 = vadd.f32 %v8126_v9, %v4454_v21 }
 0xdc1   : > { %v4342_v24 = vmul.f32 %v5672_v2, %v4341_v50  ;;  %v4291_v40 = vpop.xlane.xlu0 %4290 }
 0xdc2   : > { %v8107_v35 = vsub.f32 %v8047_v18, %v4261_v48  ;;  %v4310_v36 = vmul.f32 %v4291_v40, %v8018_v45 }
 0xdc3   : > { %v4343_v29 = vmul.f32 0.5, %v4342_v24 }
 0xdc4   : > { %v4283_v3 = vmul.f32 %v8107_v35, %v8107_v35  ;;  %v4321_v8 = vadd.f32 1e-05, %v4310_v36 }
 0xdc5   : > { %v4344_v6 = vsub.f32 1.5, %v4343_v29 }
 0xdc6   : > { %4302 = vadd.xlane.f32.xlu0 %v4283_v3  ;;  %5673 = vrsqrt.f32 %v4321_v8  ;;  %v4293_v18 = vpop.xlane.xlu1 %4292  ;;  %vm4356_vm9 = vweird.f32 %v4321_v8 }
 0xdc7   : > { %v4345_v53 = vmul.f32 %v5672_v2, %v4344_v6  ;;  %v4311_v52 = vmul.f32 %v4293_v18, %v8018_v45 }
 0xdc9   : > { %v4349_v12 = vsel %vm4348_vm7, %v5672_v2, %v4345_v53  ;;  %v4322_v20 = vadd.f32 1e-05, %v4311_v52  ;;  %v4243_v47 = vpop.xlane.xlu0 %4242 }
 0xdca   : > { %v4441_v30 = vmul.f32 %v4349_v12, %v8037_v31  ;;  %v4262_v37 = vmul.f32 %v8018_v45, %v4243_v47 }
 0xdcb   : > { %5675 = vrsqrt.f32 %v4322_v20  ;;  %vm4366_vm12 = vweird.f32 %v4322_v20 }
 0xdcc   : > { %v4455_v46 = vmul.f32 %v8117_v7, %v4441_v30  ;;  %v5674_v54 = vpop.eup %5673  ;;  %v8135_v19 = vsub.f32 %v8064_v33, %v4262_v37 }
 0xdcd   : > { %v4351_v0 = vmul.f32 %v5674_v54, %v4321_v8  ;;  %vm4357_vm8 = vweird.f32 %v5674_v54 }
 0xdce   : > { %v4469_v62 = vadd.f32 %v8126_v9, %v4455_v46  ;;  %v4284_v31 = vmul.f32 %v8135_v19, %v8135_v19  ;;  %v4295_v16 = vpop.xlane.xlu1 %4294  ;;  %vm4358_vm10 = vmor %vm4356_vm9, %vm4357_vm8 }
 0xdcf   : > { %v4352_v23 = vmul.f32 %v5674_v54, %v4351_v0  ;;  %v4312_v1 = vmul.f32 %v4295_v16, %v8018_v45 }
 0xdd0   : > { %v4479_v59 = vpack.c.bf16 %v4469_v62, %v4468_v14  ;;  %4304 = vadd.xlane.f32.xlu1 %v4284_v31 }
 0xdd1   : > { %v5676_v26 = vpop.eup %5675  ;;  %v4353_v27 = vmul.f32 0.5, %v4352_v23  ;;  %v4323_v15 = vadd.f32 1e-05, %v4312_v1  ;;  %v4245_v56 = vpop.xlane.xlu0 %4244 }
 0xdd2   : > { %4561 = vmatmul.bf16.vlgmr.msra.gmra.mxu3 %v4479_v59  ;;  %v4361_v43 = vmul.f32 %v5676_v26, %v4322_v20  ;;  %v4263_v22 = vmul.f32 %v8018_v45, %v4245_v56  ;;  %vm4367_vm11 = vweird.f32 %v5676_v26 }
 0xdd3   : > { %v4354_v33 = vsub.f32 1.5, %v4353_v27  ;;  %5677 = vrsqrt.f32 %v4323_v15  ;;  %vm4368_vm13 = vmor %vm4366_vm12, %vm4367_vm11  ;;  %vm4376_vm15 = vweird.f32 %v4323_v15 }
 0xdd4   : > { %v4362_v17 = vmul.f32 %v5676_v26, %v4361_v43  ;;  %v8142_v2 = vsub.f32 %v8074_v28, %v4263_v22 }
 0xdd5   : > { %v4355_v5 = vmul.f32 %v5674_v54, %v4354_v33 }
 0xdd6   : > { %v4363_v50 = vmul.f32 0.5, %v4362_v17  ;;  %v4285_v25 = vmul.f32 %v8142_v2, %v8142_v2  ;;  %v4297_v48 = vpop.xlane.xlu2 %4296 }
 0xdd7   : > { %v4359_v24 = vsel %vm4358_vm10, %v5674_v54, %v4355_v5  ;;  %v4313_v29 = vmul.f32 %v4297_v48, %v8018_v45 }
 0xdd8   : > { %v4364_v32 = vsub.f32 1.5, %v4363_v50  ;;  %4306 = vadd.xlane.f32.xlu2 %v4285_v25  ;;  %v4442_v36 = vmul.f32 %v4359_v24, %v8050_v41 }
 0xdd9   : > { %v5678_v40 = vpop.eup %5677  ;;  %v4324_v3 = vadd.f32 1e-05, %v4313_v29 }
 0xdda   : > { %v4365_v6 = vmul.f32 %v5676_v26, %v4364_v32  ;;  %v4371_v28 = vmul.f32 %v5678_v40, %v4323_v15  ;;  %v4456_v18 = vmul.f32 %v8117_v7, %v4442_v36  ;;  %vm4377_vm14 = vweird.f32 %v5678_v40 }
 0xddb   : > { %5679 = vrsqrt.f32 %v4324_v3  ;;  %vm4378_vm0 = vmor %vm4376_vm15, %vm4377_vm14  ;;  %vm4386_vm3 = vweird.f32 %v4324_v3 }
 0xddc   : > { %v4369_v55 = vsel %vm4368_vm13, %v5676_v26, %v4365_v6  ;;  %v4372_v8 = vmul.f32 %v5678_v40, %v4371_v28  ;;  %v4470_v30 = vadd.f32 %v8126_v9, %v4456_v18 }
 0xddd   : > { %v4443_v53 = vmul.f32 %v4369_v55, %v8058_v60 }
 0xdde   : > { %v4373_v12 = vmul.f32 0.5, %v4372_v8 }
 0xddf   : > { %v4457_v52 = vmul.f32 %v8117_v7, %v4443_v53 }
 0xde0   : > { %v4374_v21 = vsub.f32 1.5, %v4373_v12 }
 0xde1   : > { %v4471_v41 = vadd.f32 %v8126_v9, %v4457_v52  ;;  %v5680_v47 = vpop.eup %5679 }
 0xde2   : > { %v4375_v20 = vmul.f32 %v5678_v40, %v4374_v21  ;;  %v4381_v46 = vmul.f32 %v5680_v47, %v4324_v3  ;;  %vm4387_vm2 = vweird.f32 %v5680_v47 }
 0xde3   : > { %v4480_v37 = vpack.c.bf16 %v4471_v41, %v4470_v30  ;;  %vm4388_vm4 = vmor %vm4386_vm3, %vm4387_vm2 }
 0xde4   : > { %v4382_v54 = vmul.f32 %v5680_v47, %v4381_v46  ;;  %v4379_v60 = vsel %vm4378_vm0, %v5678_v40, %v4375_v20 }
 0xde5   : > { %4566 = vmatmul.bf16.gmra.mxu3 %v4480_v37  ;;  %v4444_v0 = vmul.f32 %v4379_v60, %v8067_v42 }
 0xde6   : > { %v4383_v14 = vmul.f32 0.5, %v4382_v54 }
 0xde7   : > { %v4458_v23 = vmul.f32 %v8117_v7, %v4444_v0 }
 0xde8   : > { %v4384_v62 = vsub.f32 1.5, %v4383_v14 }
 0xde9   : > { %v4472_v26 = vadd.f32 %v8126_v9, %v4458_v23 }
 0xdea   : > { %v4385_v59 = vmul.f32 %v5680_v47, %v4384_v62 }
 0xdec   : > { %v4389_v31 = vsel %vm4388_vm4, %v5680_v47, %v4385_v59 }
 0xded   : > { %v4445_v16 = vmul.f32 %v4389_v31, %v8079_v44 }
 0xdef   : > { %v4459_v1 = vmul.f32 %v8117_v7, %v4445_v16 }
 0xdf1   : > { %v4473_v27 = vadd.f32 %v8126_v9, %v4459_v1 }
 0xdf3   : > { %v4481_v15 = vpack.c.bf16 %v4473_v27, %v4472_v26  ;;  %v8175_v26 = vld [vmem:[%s8390_s21] ss:$0 sm:$0xff] }
 0xdf5   : > { %4571 = vmatmul.bf16.gmra.mxu3 %v4481_v15 }
 0xdf9   : > { %v4299_v56 = vpop.xlane.xlu1 %4298 }
 0xdfa   : > { %v4314_v43 = vmul.f32 %v4299_v56, %v8018_v45 }
 0xdfc   : > { %v4325_v42 = vadd.f32 1e-05, %v4314_v43 }
 0xdfe   : > { %5681 = vrsqrt.f32 %v4325_v42  ;;  %vm4396_vm6 = vweird.f32 %v4325_v42 }
 0xe04   : > { %v5682_v22 = vpop.eup %5681 }
 0xe05   : > { %v4391_v33 = vmul.f32 %v5682_v22, %v4325_v42  ;;  %vm4397_vm5 = vweird.f32 %v5682_v22 }
 0xe06   : > { %vm4398_vm7 = vmor %vm4396_vm6, %vm4397_vm5 }
 0xe07   : > { %v4392_v17 = vmul.f32 %v5682_v22, %v4391_v33 }
 0xe09   : > { %v4393_v25 = vmul.f32 0.5, %v4392_v17 }
 0xe0b   : > { %v4394_v24 = vsub.f32 1.5, %v4393_v25 }
 0xe0d   : > { %v4395_v32 = vmul.f32 %v5682_v22, %v4394_v24 }
 0xe0f   : > { %v4399_v6 = vsel %vm4398_vm7, %v5682_v22, %v4395_v32 }
 0xe10   : > { %v4446_v53 = vmul.f32 %v4399_v6, %v8085_v49 }
 0xe12   : > { %v4460_v21 = vmul.f32 %v8117_v7, %v4446_v53 }
 0xe14   : > { %v4474_v37 = vadd.f32 %v8126_v9, %v4460_v21 }
 0xe27   : > { %v4301_v5 = vpop.xlane.xlu2 %4300 }
 0xe28   : > { %v4315_v44 = vmul.f32 %v4301_v5, %v8018_v45 }
 0xe2a   : > { %v4326_v50 = vadd.f32 1e-05, %v4315_v44 }
 0xe2c   : > { %5683 = vrsqrt.f32 %v4326_v50  ;;  %vm4406_vm9 = vweird.f32 %v4326_v50 }
 0xe32   : > { %v5684_v48 = vpop.eup %5683 }
 0xe33   : > { %v4401_v29 = vmul.f32 %v5684_v48, %v4326_v50  ;;  %vm4407_vm8 = vweird.f32 %v5684_v48 }
 0xe34   : > { %vm4408_vm10 = vmor %vm4406_vm9, %vm4407_vm8 }
 0xe35   : > { %v4402_v40 = vmul.f32 %v5684_v48, %v4401_v29 }
 0xe37   : > { %v4403_v28 = vmul.f32 0.5, %v4402_v40 }
 0xe39   : > { %v4303_v36 = vpop.xlane.xlu0 %4302  ;;  %v4404_v55 = vsub.f32 1.5, %v4403_v28 }
 0xe3a   : > { %v4316_v3 = vmul.f32 %v4303_v36, %v8018_v45 }
 0xe3b   : > { %v4405_v18 = vmul.f32 %v5684_v48, %v4404_v55 }
 0xe3c   : > { %v4327_v8 = vadd.f32 1e-05, %v4316_v3 }
 0xe3d   : > { %v4409_v12 = vsel %vm4408_vm10, %v5684_v48, %v4405_v18 }
 0xe3e   : > { %5685 = vrsqrt.f32 %v4327_v8  ;;  %v4447_v52 = vmul.f32 %v4409_v12, %v8101_v58  ;;  %vm4416_vm12 = vweird.f32 %v4327_v8 }
 0xe40   : > { %v4461_v30 = vmul.f32 %v8117_v7, %v4447_v52 }
 0xe42   : > { %v4475_v49 = vadd.f32 %v8126_v9, %v4461_v30 }
 0xe43   : > { %v4305_v47 = vpop.xlane.xlu1 %4304 }
 0xe44   : > { %v5686_v41 = vpop.eup %5685  ;;  %v4317_v46 = vmul.f32 %v4305_v47, %v8018_v45  ;;  %v4482_v14 = vpack.c.bf16 %v4475_v49, %v4474_v37 }
 0xe45   : > { %v4411_v20 = vmul.f32 %v5686_v41, %v4327_v8  ;;  %vm4417_vm11 = vweird.f32 %v5686_v41 }
 0xe46   : > { %v4328_v60 = vadd.f32 1e-05, %v4317_v46  ;;  %4576 = vmatmul.bf16.gmra.mxu3 %v4482_v14  ;;  %vm4418_vm13 = vmor %vm4416_vm12, %vm4417_vm11 }
 0xe47   : > { %v4412_v54 = vmul.f32 %v5686_v41, %v4411_v20 }
 0xe48   : > { %5687 = vrsqrt.f32 %v4328_v60  ;;  %vm4426_vm15 = vweird.f32 %v4328_v60 }
 0xe49   : > { %v4413_v62 = vmul.f32 0.5, %v4412_v54 }
 0xe4b   : > { %v4414_v58 = vsub.f32 1.5, %v4413_v62  ;;  %v4307_v0 = vpop.xlane.xlu2 %4306 }
 0xe4c   : > { %v4318_v59 = vmul.f32 %v4307_v0, %v8018_v45 }
 0xe4d   : > { %v4415_v23 = vmul.f32 %v5686_v41, %v4414_v58 }
 0xe4e   : > { %v5688_v31 = vpop.eup %5687  ;;  %v4329_v16 = vadd.f32 1e-05, %v4318_v59 }
 0xe4f   : > { %v4421_v1 = vmul.f32 %v5688_v31, %v4328_v60  ;;  %v4419_v15 = vsel %vm4418_vm13, %v5686_v41, %v4415_v23  ;;  %vm4427_vm14 = vweird.f32 %v5688_v31 }
 0xe50   : > { %5689 = vrsqrt.f32 %v4329_v16  ;;  %v4448_v33 = vmul.f32 %v4419_v15, %v8107_v35  ;;  %vm4428_vm0 = vmor %vm4426_vm15, %vm4427_vm14  ;;  %vm4436_vm3 = vweird.f32 %v4329_v16 }
 0xe51   : > { %v4422_v27 = vmul.f32 %v5688_v31, %v4421_v1 }
 0xe52   : > { %v4462_v48 = vmul.f32 %v8117_v7, %v4448_v33 }
 0xe53   : > { %v4423_v56 = vmul.f32 0.5, %v4422_v27 }
 0xe54   : > { %v4476_v6 = vadd.f32 %v8126_v9, %v4462_v48 }
 0xe55   : > { %v4562_v43 = vpop.f32.mrf.mxu3  ;;  %v4424_v42 = vsub.f32 1.5, %v4423_v56 }
 0xe56   : > { %v4563_v45 = vadd.f32 %v8175_v26, %v4562_v43  ;;  %v5690_v22 = vpop.eup %5689 }
 0xe57   : > { %v4425_v5 = vmul.f32 %v5688_v31, %v4424_v42  ;;  %v4431_v44 = vmul.f32 %v5690_v22, %v4329_v16  ;;  %vm4437_vm2 = vweird.f32 %v5690_v22 }
 0xe58   : > { %v8180_v17 = vadd.f32 %v4563_v45, %v7384_v51  ;;  %vm4438_vm4 = vmor %vm4436_vm3, %vm4437_vm2 }
 0xe59   : > { %v4429_v50 = vsel %vm4428_vm0, %v5688_v31, %v4425_v5  ;;  %v4432_v25 = vmul.f32 %v5690_v22, %v4431_v44 }
 0xe5a   : > { %4602 = vst.msk [vmem:[#allocation2] sm:$0xff] %vm906_vm1, %v8180_v17  ;;  %v4449_v24 = vmul.f32 %v4429_v50, %v8135_v19 }
 0xe5b   : > { %v4433_v32 = vmul.f32 0.5, %v4432_v25 }
 0xe5c   : > { %v4463_v51 = vmul.f32 %v8117_v7, %v4449_v24 }
 0xe5d   : > { %v4564_v29 = vpop.f32.mrf.mxu3  ;;  %v4434_v40 = vsub.f32 1.5, %v4433_v32 }
 0xe5e   : > { %v4565_v35 = vadd.f32 %v8175_v26, %v4564_v29  ;;  %v4477_v28 = vadd.f32 %v8126_v9, %v4463_v51 }
 0xe5f   : > { %v4435_v3 = vmul.f32 %v5690_v22, %v4434_v40 }
 0xe60   : > { %v8189_v36 = vadd.f32 %v4565_v35, %v7399_v34  ;;  %v4483_v19 = vpack.c.bf16 %v4477_v28, %v4476_v6 }
 0xe61   : > { %v4439_v55 = vsel %vm4438_vm4, %v5690_v22, %v4435_v3 }
 0xe62   : > { %4603 = vst.msk [vmem:[#allocation2 + $0x8] sm:$0xff] %vm906_vm1, %v8189_v36  ;;  %4581 = vmatmul.bf16.gmra.mxu3 %v4483_v19  ;;  %v4450_v8 = vmul.f32 %v4439_v55, %v8142_v2 }
 0xe64   : > { %v4464_v18 = vmul.f32 %v8117_v7, %v4450_v8 }
 0xe66   : > { %v4478_v52 = vadd.f32 %v8126_v9, %v4464_v18 }
 0xe68   : > { %v4567_v53 = vpop.f32.mrf.mxu3  ;;  %v4484_v30 = vpack.c.bf16 %v4478_v52, %v4478_v52 }
 0xe69   : > { %v4568_v34 = vadd.f32 %v8175_v26, %v4567_v53 }
 0xe6b   : > { %v4593_v12 = vadd.f32 %v4568_v34, %v7420_v13 }
 0xe6d   : > { %4604 = vst.msk [vmem:[#allocation2 + $0x10] sm:$0xff] %vm906_vm1, %v4593_v12 }
 0xe70   : > { %v4569_v21 = vpop.f32.mrf.mxu3 }
 0xe71   : > { %v4570_v41 = vadd.f32 %v8175_v26, %v4569_v21 }
 0xe72   : > { %4586 = vmatmul.bf16.gmra.mxu3 %v4484_v30 }
 0xe73   : > { %v4594_v47 = vadd.f32 %v4570_v41, %v7431_v4 }
 0xe75   : > { %4605 = vst.msk [vmem:[#allocation2 + $0x18] sm:$0xff] %vm906_vm1, %v4594_v47 }
 0xe78   : > { %v4572_v2 = vpop.f32.mrf.mxu3 }
 0xe79   : > { %v4573_v7 = vadd.f32 %v8175_v26, %v4572_v2 }
 0xe7b   : > { %v4595_v20 = vadd.f32 %v4573_v7, %v7438_v39 }
 0xe7d   : > { %4606 = vst.msk [vmem:[#allocation2 + $0x20] sm:$0xff] %vm906_vm1, %v4595_v20 }
 0xe80   : > { %v4574_v13 = vpop.f32.mrf.mxu3 }
 0xe81   : > { %v4575_v9 = vadd.f32 %v8175_v26, %v4574_v13 }
 0xe83   : > { %v4596_v46 = vadd.f32 %v4575_v9, %v7445_v10 }
 0xe85   : > { %4607 = vst.msk [vmem:[#allocation2 + $0x28] sm:$0xff] %vm906_vm1, %v4596_v46 }
 0xec9   : > { %v4577_v37 = vpop.f32.mrf.mxu3 }
 0xeca   : > { %v4578_v49 = vadd.f32 %v8175_v26, %v4577_v37 }
 0xecc   : > { %v4597_v4 = vadd.f32 %v4578_v49, %v7452_v11 }
 0xece   : > { %4608 = vst.msk [vmem:[#allocation2 + $0x30] sm:$0xff] %vm906_vm1, %v4597_v4 }
 0xed1   : > { %v4579_v54 = vpop.f32.mrf.mxu3 }
 0xed2   : > { %v4580_v60 = vadd.f32 %v8175_v26, %v4579_v54 }
 0xed4   : > { %v4598_v39 = vadd.f32 %v4580_v60, %v7467_v63 }
 0xed6   : > { %4609 = vst.msk [vmem:[#allocation2 + $0x38] sm:$0xff] %vm906_vm1, %v4598_v39 }
 0xee5   : > { %v4582_v14 = vpop.f32.mrf.mxu3 }
 0xee6   : > { %v4583_v62 = vadd.f32 %v8175_v26, %v4582_v14 }
 0xee8   : > { %v4599_v10 = vadd.f32 %v4583_v62, %v7484_v57 }
 0xeea   : > { %4610 = vst.msk [vmem:[#allocation2 + $0x40] sm:$0xff] %vm906_vm1, %v4599_v10 }
 0xeed   : > { %v4584_v58 = vpop.f32.mrf.mxu3 }
 0xeee   : > { %v4585_v0 = vadd.f32 %v8175_v26, %v4584_v58 }
 0xef0   : > { %v4600_v11 = vadd.f32 %v4585_v0, %v7502_v61 }
 0xef2   : > { %4611 = vst.msk [vmem:[#allocation2 + $0x48] sm:$0xff] %vm906_vm1, %v4600_v11 }
 0xef5   : > { %v4587_v59 = vpop.f32.mrf.mxu3 }
 0xef6   : > { %v4588_v31 = vadd.f32 %v8175_v26, %v4587_v59 }
 0xef8   : > { %v4601_v63 = vadd.f32 %v4588_v31, %v7526_v38 }
 0xef9   : > { %4616 = sbr.rel (%p5103_p1) target bundleno = 4007 (0xfa7), region = 104 }
 0xefa   : > { %4612 = vst.msk [vmem:[#allocation2 + $0x50] sm:$0xff] %vm906_vm1, %v4601_v63 }
 0xefd   : > { %v4589_v16 = vpop.f32.mrf.mxu3 }
 0xefe   : > { %v5140_v57 = vld [vmem:[%s8392_s22 + $0x8] sm:$0xff]  ;;  %v5139_v61 = vld [vmem:[%s8393_s19] sm:$0xff]  ;;  %v4618_v23 = vpack.c.bf16 %v4594_v47, %v4593_v12  ;;  %v4620_v38 = vpack.c.bf16 %v4598_v39, %v4597_v4  ;;  %v4622_v1 = vpack.c.bf16 %v4601_v63, %v4601_v63  ;;  %v4617_v26 = vpack.c.bf16 %v8189_v36, %v8180_v17 }
 0xeff   : > { %5172 = vmatpush.bf16.msra.mxu1 %v5140_v57  ;;  %5173 = vmatpush.bf16.msra.mxu2 %v5140_v57  ;;  %v4619_v27 = vpack.c.bf16 %v4596_v46, %v4595_v20  ;;  %v4621_v15 = vpack.c.bf16 %v4600_v11, %v4599_v10  ;;  %v5704_v45 = vld [vmem:[%s8394_s27] ss:$0 sm:$0xff] }
 0xf00   : > { %5174 = vmatpush.bf16.msra.mxu3 %v5140_v57  ;;  %4667 = vmatpush.bf16.msra.mxu0 %v5140_v57 }
 0xf03   : > { %5175 = vmatpush.bf16.msra.mxu1 %v5139_v61  ;;  %5176 = vmatpush.bf16.msra.mxu2 %v5139_v61 }
 0xf04   : > { %5177 = vmatpush.bf16.msra.mxu3 %v5139_v61  ;;  %4668 = vmatpush.bf16.msra.mxu0 %v5139_v61 }
 0xf06   : > { %5113 = vmatmul.msk.bf16.vlgmr.msra.gmra.mxu1 %vm906_vm1, %v4618_v23  ;;  %5115 = vmatmul.msk.bf16.vlgmr.msra.gmra.mxu2 %vm906_vm1, %v4620_v38 }
 0xf07   : > { %5117 = vmatmul.msk.bf16.vlgmr.msra.gmra.mxu3 %vm906_vm1, %v4622_v1  ;;  %5112 = vmatmul.msk.bf16.vlgmr.msra.gmra.mxu0 %vm906_vm1, %v4617_v26 }
 0xf16   : > { %5114 = vmatmul.msk.bf16.gmra.mxu1 %vm906_vm1, %v4619_v27  ;;  %5116 = vmatmul.msk.bf16.gmra.mxu2 %vm906_vm1, %v4621_v15 }
 0xf83   : > { %v4675_v56 = vpop.f32.mrf.mxu1 }
 0xf84   : > { %v4670_v43 = vpop.f32.mrf.mxu0  ;;  %v4676_v44 = vadd.f32 %v5704_v45, %v4675_v56 }
 0xf85   : > { %v4671_v17 = vadd.f32 %v5704_v45, %v4670_v43 }
 0xf89   : > { %v4685_v42 = vpop.f32.mrf.mxu2 }
 0xf8a   : > { %v4695_v22 = vpop.f32.mrf.mxu3  ;;  %v4686_v51 = vadd.f32 %v5704_v45, %v4685_v42 }
 0xf8b   : > { %v4677_v33 = vpop.f32.mrf.mxu1  ;;  %v4696_v5 = vadd.f32 %v5704_v45, %v4695_v22 }
 0xf8c   : > { %v4678_v50 = vadd.f32 %v5704_v45, %v4677_v33  ;;  %v4672_v25 = vpop.f32.mrf.mxu0 }
 0xf8d   : > { %v4709_v24 = vpack.c.bf16 %v4696_v5, %v4696_v5  ;;  %v4673_v48 = vadd.f32 %v5704_v45, %v4672_v25 }
 0xf8e   : > { %v5149_v32 = vpack.c.bf16 %v4678_v50, %v4676_v44 }
 0xf8f   : > { %4720 = vst [vmem:[%s6076_s6 + $0x28] sm:$0xf] %v4709_v24  ;;  %v5144_v29 = vpack.c.bf16 %v4673_v48, %v4671_v17 }
 0xf90   : > { %5166 = vst [vmem:[%s6076_s6 + $0x8] sm:$0xff] %v5149_v32  }
 0xf91   : > { %v4687_v35 = vpop.f32.mrf.mxu2  ;;  %5145 = vst [vmem:[%s6076_s6] sm:$0xff] %v5144_v29  }
 0xf92   : > { %v4688_v40 = vadd.f32 %v5704_v45, %v4687_v35  ;;  %v4697_v36 = vpop.f32.mrf.mxu3 }
 0xf93   : > { %v4680_v6 = vpop.f32.mrf.mxu1 }
 0xf94   : > { %v5159_v28 = vpack.c.bf16 %v4688_v40, %v4686_v51  ;;  %v4681_v55 = vadd.f32 %v5704_v45, %v4680_v6 }
 0xf96   : > { %5168 = vst [vmem:[%s6076_s6 + $0x18] sm:$0xff] %v5159_v28  }
 0xf99   : > { %v4690_v3 = vpop.f32.mrf.mxu2 }
 0xf9a   : > { %v4691_v34 = vadd.f32 %v5704_v45, %v4690_v3 }
 0xf9b   : > { %v4682_v19 = vpop.f32.mrf.mxu1 }
 0xf9c   : > { %v4683_v8 = vadd.f32 %v5704_v45, %v4682_v19 }
 0xf9e   : > { %v5154_v53 = vpack.c.bf16 %v4683_v8, %v4681_v55 }
 0xfa0   : > { %5167 = vst [vmem:[%s6076_s6 + $0x10] sm:$0xff] %v5154_v53  }
 0xfa1   : > { %v4692_v18 = vpop.f32.mrf.mxu2 }
 0xfa2   : > { %v4693_v12 = vadd.f32 %v5704_v45, %v4692_v18 }
 0xfa4   : > { %v5164_v52 = vpack.c.bf16 %v4693_v12, %v4691_v34 }
 0xfa6   : > { %5169 = vst [vmem:[%s6076_s6 + $0x20] sm:$0xff] %v5164_v52  }
 0xfa7 PF: > { %s8395_s25 = sld [smem:[#allocation10_spill]]  ;;  %s4734_s24 = sshll.u32 %s6076_s6, 4  ;;  %s4735_s24 = int_to_ptr.vmem [resolvable:$true] %s4734_s24 }
 0xfa8   : > { %s8396_s16 = sld [smem:[#allocation7_spill]] }
 0xfa9   : > { %s8398_s3 = sld [smem:[#allocation31_spill]] }
 0xfad   : > { %s5180_s17 = smul.u32 44, %s8395_s25 }
 0xfae   : > { %s8399_s21 = sand.u32 1, %s8396_s16  }
 0xfaf   : > { %s4733_s5 = scalar_lea.hbm %s8398_s3, %s5180_s17  ;;  %s4722_s23 = scalar_lea.sflag [#allocation4], %s8399_s21 }
 0xfb0   : > { %s4736_s15 = sshll.u32 %s4733_s5, 4  ;;  %s5725_s6 = scalar_lea.hbm %s8398_s3, 88  ;;  %s4737_s15 = int_to_ptr.hbm [resolvable:$true] %s4736_s15 }
 0xfb1   : > { %s5719_s26 = sshra.s32 %s4737_s15, 4  ;;  %s5720_s26 = int_to_ptr.hbm [resolvable:$true] %s5719_s26 }
 0xfb2   : > { %s5721_s30 = scalar_lea.hbm %s5720_s26, 44  ;;  %p5726_p6 = scmp.lt.s32.totalorder %s5720_s26, %s8398_s3 }
 0xfb3   : > { %p5722_p2 = scmp.ne.s32.totalorder %s5720_s26, %s5721_s30  ;;  %p5727_p7 = scmp.lt.s32.totalorder %s5725_s6, %s5721_s30 }
 0xfb5   : > { %p5723_p4 = pnand %p5722_p2, %p5968_p3  ;;  %p5728_p8 = por %p5727_p7, %p5726_p6 }
 0xfb7   : > { %p5724_p5 = pneg %p5723_p4 }
 0xfb9   : > { %p5729_p10 = pnand %p5728_p8, %p5724_p5 }
 0xfbb   : > { %5732 = shalt.err (!%p5729_p10)
}
 0xfbc   : > { %s5818_s2 = smov 4  }
 0xfbd   : > { %5181 = dma.vmem_to_hbm [thread:$0]  (%p5968_p3), %s4735_s24, 704, %s4737_s15, %s4722_s23, %s5804_s7, %s5804_s7, %s5818_s2  }
 0xfbe PF: > { %s8400_s27 = sld [smem:[#allocation13_spill]] }
 0xfbf   : > { %s8401_s25 = sld [smem:[#allocation6_spill]] }
 0xfc4   : > { %p5187_p11 = scmp.ge.s32.totalorder %s8400_s27, 2 }
 0xfc5   : > { %s4751_s17 = sand.u32 1, %s8401_s25  }
 0xfc6   : > { %p5184_p12 = pnand %p5187_p11, %p5978_p9  ;;  %s4752_s0 = scalar_lea.sflag [#allocation4], %s4751_s17 }
 0xfc8   : > { %p5185_p13 = pneg %p5184_p12 }
 0xfca   : > { %5766 = dma.done.wait (%p5185_p13), %s4752_s0, 704  }
 0xfcb   : > { %5768 = vsyncadd (%p5185_p13), %s4752_s0, 4294966592  ;;  %s32_s23 = sadd.s32 1, %s8400_s27   ;;  %s8403_s0 = sld [smem:[#allocation7_spill]] }
 0xfcc   : > { %p29_p0 = scmp.ge.s32.totalorder %s32_s23, 6   ;;  %s8404_s30 = sld [smem:[#allocation8_spill]] }
 0xfcd   : > { %s8405_s20 = sld [smem:[#allocation18_spill]] }
 0xfce   : > { %s8406_s21 = sld [smem:[#allocation11_spill]]  ;;  %31 = sbr.rel (!%p29_p0) target bundleno = 18 (0x12), region = 187 }
 0xfcf   : > { %s8407_s1 = sld [smem:[#allocation12_spill]] }
 0xfd0   : > { %s8408_s22 = sld [smem:[#allocation14_spill]] }
 0xfd1   : > { %s8409_s2 = sld [smem:[#allocation16_spill]] }
 0xfd3   :  { %4758 = vsyncpa [#allocation4], 1 }
 0xfd4   :  { %4760 = vsyncpa [#allocation4 + $0x1], 1 }

</bundles_post_ra>
